<compile_context>
chip_gen: v5e
topology: v5e:2x2
jax: 0.10.0
libtpu: 0.0.40
codegen_flags: <defaults>
</compile_context>

<pallas_src>
import functools

import jax
import jax.numpy as jnp
from jax import lax
from jax.experimental import pallas as pl
from jax.experimental.pallas import tpu as pltpu


# ---------------------------------------------------------------------------
# Fused Conv2d(3x3, pad=1) + ReLU + MaxPool2d(2,2): ONE matmul per grid step
# ---------------------------------------------------------------------------

def _conv_relu_pool_kernel(z_ref, w_ref, b_ref, o_ref):
    """Y = W_expanded @ Z evaluates the conv at all 4 pool-quadrant offsets with the
    weight MXU-stationary; running max over the 8-aligned quadrant row groups, then
    bias + ReLU in f32 and a lane-dense bf16 store."""
    cpad = b_ref.shape[0]
    cout = o_ref.shape[1]
    y = jnp.dot(w_ref[...], z_ref[0], preferred_element_type=jnp.float32)  # (4*cpad, T)
    m = y[0:cpad]
    m = jnp.maximum(m, y[cpad:2 * cpad])
    m = jnp.maximum(m, y[2 * cpad:3 * cpad])
    m = jnp.maximum(m, y[3 * cpad:4 * cpad])
    m = jnp.maximum(m + b_ref[...], 0.0)          # relu(max_q(.)) == max_q(relu(.))
    o_ref[0] = m[0:cout].astype(o_ref.dtype)


def _pool_im2col(x_nchw):
    """(B,C,H,W) -> (B, 16*C, (H//2)*(W//2)) bf16 phase-slab tensor.

    Z[b, (u*4+v)*C + ci, i*Wo + j] = xpad[b, ci, 2i+u, 2j+v],  u,v in {0..3}.
    Every (pool-quadrant, 3x3-offset) im2col row is exactly one of these 16 slabs,
    so the kernel needs no in-VMEM gathers; the HBM intermediate is ~4x the input
    elements in bf16 instead of the previous ~9x quadrant-im2col.
    """
    B, C, H, W = x_nchw.shape
    Ho, Wo = H // 2, W // 2
    xp = jnp.pad(x_nchw, ((0, 0), (0, 0), (1, 1), (1, 1)))
    slabs = [xp[:, :, u:u + 2 * Ho:2, v:v + 2 * Wo:2]
             for u in range(4) for v in range(4)]            # 16 x (B, C, Ho, Wo)
    z = jnp.stack(slabs, axis=1)                             # (B, 16, C, Ho, Wo)
    return z.reshape(B, 16 * C, Ho * Wo).astype(jnp.bfloat16)


def _expand_conv_weight(w, b):
    """torch (Cout,Cin,3,3)/(Cout,) -> ((4*Cpad, 16*Cin) bf16, (Cpad, 1) f32).

    Row (q=py*2+px)*Cpad+co, col (u*4+v)*Cin+ci holds w[co, ci, u-py, v-px] (zero
    outside the 3x3 window).  Cout is padded to a multiple of 8 so quadrant row
    groups stay sublane-aligned in the kernel."""
    cout, cin = w.shape[:2]
    cpad = ((cout + 7) // 8) * 8
    w_all = jnp.zeros((4, cpad, 4, 4, cin), jnp.float32)
    for py in range(2):
        for px in range(2):
            q = py * 2 + px
            for ky in range(3):
                for kx in range(3):
                    w_all = w_all.at[q, :cout, py + ky, px + kx, :].set(w[:, :, ky, kx])
    w_all = w_all.reshape(4 * cpad, 16 * cin).astype(jnp.bfloat16)
    b_all = jnp.zeros((cpad,), jnp.float32).at[:cout].set(b).reshape(cpad, 1)
    return w_all, b_all


def conv_relu_pool(x_nchw, w_all, b_all, cout):
    B, C, H, W = x_nchw.shape
    Ho, Wo = H // 2, W // 2
    T = Ho * Wo
    kdim = 16 * C
    cpad4 = w_all.shape[0]
    cpad = b_all.shape[0]
    z = _pool_im2col(x_nchw)                                 # (B, 16C, T) bf16

    tile = T if T <= 2048 else 2048                          # lane-dense (mult. of 128)
    assert T % tile == 0
    grid = (B, T // tile)

    out = pl.pallas_call(
        _conv_relu_pool_kernel,
        out_shape=jax.ShapeDtypeStruct((B, cout, T), jnp.bfloat16),
        grid=grid,
        in_specs=[pl.BlockSpec((1, kdim, tile), lambda i, j: (i, 0, j)),
                  pl.BlockSpec((cpad4, kdim), lambda i, j: (0, 0)),
                  pl.BlockSpec((cpad, 1), lambda i, j: (0, 0))],
        out_specs=pl.BlockSpec((1, cout, tile), lambda i, j: (i, 0, j)),
        compiler_params=pltpu.CompilerParams(
            dimension_semantics=("parallel", "parallel")),
    )(z, w_all, b_all)
    return out.reshape(B, cout, Ho, Wo)


def cnn_conv_stack(cp, img_nchw):
    x = conv_relu_pool(img_nchw, cp['c1_w'], cp['c1_b'], 6)   # (B,  6, 64, 64)
    x = conv_relu_pool(x, cp['c2_w'], cp['c2_b'], 12)         # (B, 12, 32, 32)
    x = conv_relu_pool(x, cp['c3_w'], cp['c3_b'], 24)         # (B, 24, 16, 16)
    B = x.shape[0]
    return x.reshape(B, -1)                                   # NCHW flatten == torch .view


# ---------------------------------------------------------------------------
# Fused tail kernel: CNN fc1/fc2 + full GNN layer + pool/LN/pred1 + hybrid head
# ---------------------------------------------------------------------------

def _tail_kernel(flat_ref, cfc1_w_ref, cfc1_b_ref, cfc2_w_ref, cfc2_b_ref,
                 x_ref, ea_ref, row0_ref, col0_ref, col0t_ref, batcht_ref,
                 wmx_ref, wme_ref, bm_ref, wax_ref, waa_ref, ba_ref,
                 lng_ref, lnb_ref, wp_ref, bp_ref,
                 f1wg_ref, f1wc_ref, f1b_ref, f2w_ref, f2b_ref, f3w_ref, f3b_ref,
                 o_ref, *, num_graphs):
    f32 = jnp.float32
    bf16 = jnp.bfloat16

    # ---- CNN fully-connected head: relu(fc1) -> relu(fc2)  (bf16 MXU, f32 acc) ----
    c = jnp.dot(flat_ref[...], cfc1_w_ref[...], preferred_element_type=f32)
    c = jnp.maximum(c + cfc1_b_ref[...], 0.0)                                  # (B, 128)
    c = jnp.dot(c.astype(bf16), cfc2_w_ref[...],
                preferred_element_type=f32) + cfc2_b_ref[...]
    cnn_feats = jnp.maximum(c, 0.0)                                            # (B, 64)

    # ---- GNN layer (add_self_loops(fill='mean'), sym-norm, message/agg/update) ----
    x = x_ref[...]                                  # (N, Fn)
    ea = ea_ref[...]                                # (E0, Fe)
    N = x.shape[0]
    E0 = ea.shape[0]
    G = num_graphs

    # one-hots built in-kernel from int32 index vectors (no HBM one-hot traffic)
    oh_row0 = (lax.broadcasted_iota(jnp.int32, (E0, N), 1) == row0_ref[...]).astype(f32)
    oh_col0 = (lax.broadcasted_iota(jnp.int32, (E0, N), 1) == col0_ref[...]).astype(f32)
    ohT_col0 = (lax.broadcasted_iota(jnp.int32, (N, E0), 0) == col0t_ref[...]).astype(f32)

    deg_in_c = jnp.sum(ohT_col0, axis=1, keepdims=True)        # (N, 1) real in-degree
    deg_in_t = jnp.sum(oh_col0, axis=0, keepdims=True)         # (1, N) same, row vector

    # self-loop edge attr = scatter-mean of incoming edge attrs (PyG fill_value='mean')
    loop_attr = (jnp.dot(ohT_col0, ea, preferred_element_type=f32)
                 / jnp.maximum(deg_in_c, 1.0))                 # (N, Fe)

    # degree(col) after adding one self loop per node => deg >= 1 (no inf/where needed)
    norm_c = lax.rsqrt(deg_in_c + 1.0)                         # (N, 1)
    norm_t = lax.rsqrt(deg_in_t + 1.0)                         # (1, N)
    ew_real = (jnp.sum(oh_row0 * norm_t, axis=1, keepdims=True) *
               jnp.sum(oh_col0 * norm_t, axis=1, keepdims=True))   # (E0, 1)
    ew_self = norm_c * norm_c                                  # (N, 1) = 1/deg

    # message = edge_weight * relu(W_msg([x_j, edge_attr]))  (concat folded into 2 matmuls)
    wmx = wmx_ref[...]; wme = wme_ref[...]; bm = bm_ref[...]
    x_j = jnp.dot(oh_row0, x, preferred_element_type=f32)      # (E0, Fn) gather x[row]
    msg_real = ew_real * jnp.maximum(
        jnp.dot(x_j, wmx, preferred_element_type=f32)
        + jnp.dot(ea, wme, preferred_element_type=f32) + bm, 0.0)
    msg_self = ew_self * jnp.maximum(
        jnp.dot(x, wmx, preferred_element_type=f32)
        + jnp.dot(loop_attr, wme, preferred_element_type=f32) + bm, 0.0)

    # aggregate (add) onto target nodes, then update = relu(W_apply([x, aggr]))
    aggr = jnp.dot(ohT_col0, msg_real, preferred_element_type=f32) + msg_self   # (N, Fn)
    h = jnp.maximum(jnp.dot(x, wax_ref[...], preferred_element_type=f32)
                    + jnp.dot(aggr, waa_ref[...], preferred_element_type=f32)
                    + ba_ref[...], 0.0)                        # (N, 256)

    # ---- readout: global_mean_pool -> LayerNorm -> relu(predict1) ----
    pool = (lax.broadcasted_iota(jnp.int32, (G, N), 0) == batcht_ref[...]).astype(f32)
    cnt = jnp.maximum(jnp.sum(pool, axis=1, keepdims=True), 1.0)
    g = jnp.dot(pool, h, preferred_element_type=f32) / cnt     # (G, 256)
    mu = jnp.mean(g, axis=-1, keepdims=True)
    var = jnp.mean(jnp.square(g - mu), axis=-1, keepdims=True)
    g = (g - mu) * lax.rsqrt(var + 1e-5) * lng_ref[...] + lnb_ref[...]
    gnn_feats = jnp.maximum(jnp.dot(g, wp_ref[...], preferred_element_type=f32)
                            + bp_ref[...], 0.0)                # (G, 128)

    # ---- hybrid head: concat folded into split fc1 weights, relu(fc1), relu(fc2), fc3 ----
    z = (jnp.dot(gnn_feats, f1wg_ref[...], preferred_element_type=f32)
         + jnp.dot(cnn_feats, f1wc_ref[...], preferred_element_type=f32)
         + f1b_ref[...])
    z = jnp.maximum(z, 0.0)
    z = jnp.maximum(jnp.dot(z, f2w_ref[...], preferred_element_type=f32) + f2b_ref[...], 0.0)
    # fc3 is zero-padded to 128 output lanes so the store is lane-dense; col 0 is real.
    z = jnp.dot(z, f3w_ref[...], preferred_element_type=f32) + f3b_ref[...]
    o_ref[...] = z.astype(o_ref.dtype)


def _full_spec(a):
    nd = a.ndim
    return pl.BlockSpec(a.shape, lambda i, _nd=nd: (0,) * _nd)


@functools.partial(jax.jit, static_argnames=("num_graphs",))
def hybrid_forward(params, img, x, edge_index, edge_attr, batch, num_graphs):
    cp, gp = params['cnn'], params['gnn']

    flat = cnn_conv_stack(cp, img)                  # (B, 6144) bf16
    B = flat.shape[0]
    assert B == num_graphs, "images and graphs must be paired 1:1 and in order"

    x = x.astype(jnp.float32)
    ea = edge_attr.astype(jnp.float32)
    ei = edge_index.astype(jnp.int32)
    E0 = ea.shape[0]
    N = x.shape[0]
    row0 = ei[0].reshape(E0, 1)
    col0 = ei[1].reshape(E0, 1)
    col0_t = ei[1].reshape(1, E0)
    batch_t = batch.astype(jnp.int32).reshape(1, N)

    def b2(v):
        return v.astype(jnp.float32).reshape(1, -1)

    hidden = params['fc2_w'].shape[0]
    # lane-dense head output: zero-pad fc3 (hidden,1) -> (hidden,128); slice col 0 outside
    f3w = jnp.zeros((hidden, 128), jnp.float32).at[:, 0].set(params['fc3_w'][:, 0])
    f3b = jnp.zeros((1, 128), jnp.float32).at[0, 0].set(params['fc3_b'][0])

    args = [
        flat,
        cp['fc1_w'].astype(jnp.bfloat16), b2(cp['fc1_b']),
        cp['fc2_w'].astype(jnp.bfloat16), b2(cp['fc2_b']),
        x, ea, row0, col0, col0_t, batch_t,
        gp['msg_wx'], gp['msg_we'], b2(gp['msg_b']),
        gp['apply_wx'], gp['apply_wa'], b2(gp['apply_b']),
        b2(gp['ln_g']), b2(gp['ln_b']),
        gp['pred1_w'], b2(gp['pred1_b']),
        params['fc1_wg'], params['fc1_wc'], b2(params['fc1_b']),
        params['fc2_w'], b2(params['fc2_b']),
        f3w, f3b,
    ]

    out = pl.pallas_call(
        functools.partial(_tail_kernel, num_graphs=num_graphs),
        out_shape=jax.ShapeDtypeStruct((B, 128), jnp.float32),
        grid=(1,),
        in_specs=[_full_spec(a) for a in args],
        out_specs=pl.BlockSpec((B, 128), lambda i: (0, 0)),
    )(*args)
    return out[:, :1]


# ---------------------------------------------------------------------------
# Deterministic parameter init (synthetic; shapes follow the module __init__)
# ---------------------------------------------------------------------------

def init_params(key, node_feats, edge_feats, hidden_dim):
    keys = iter(jax.random.split(key, 32))

    def mat(shape, s=0.05):
        return jax.random.normal(next(keys), shape, jnp.float32) * s

    def vec(n, s=0.05):
        return jax.random.normal(next(keys), (n,), jnp.float32) * s

    gnn = dict(
        # W_msg: Linear(node+edge -> node), stored split ([x_j | edge_attr] concat folded)
        msg_wx=mat((node_feats, node_feats)), msg_we=mat((edge_feats, node_feats)),
        msg_b=vec(node_feats),
        # W_apply: Linear(2*node -> 256), stored split ([x | aggr] concat folded)
        apply_wx=mat((node_feats, 256)), apply_wa=mat((node_feats, 256)),
        apply_b=vec(256),
        ln_g=jnp.ones((256,), jnp.float32), ln_b=jnp.zeros((256,), jnp.float32),
        pred1_w=mat((256, 128)), pred1_b=vec(128),
    )

    # conv weights initialised in torch (Cout, Cin, 3, 3) layout, then expanded to the
    # fused quadrant-matmul layout used by the Pallas conv kernel.
    c1_w, c1_b = _expand_conv_weight(mat((6, 3, 3, 3)), vec(6))
    c2_w, c2_b = _expand_conv_weight(mat((12, 6, 3, 3)), vec(12))
    c3_w, c3_b = _expand_conv_weight(mat((24, 12, 3, 3)), vec(24))
    cnn = dict(
        c1_w=c1_w, c1_b=c1_b, c2_w=c2_w, c2_b=c2_b, c3_w=c3_w, c3_b=c3_b,
        fc1_w=mat((24 * 16 * 16, 128), s=0.02), fc1_b=vec(128),
        fc2_w=mat((128, 64)), fc2_b=vec(64),
    )

    p = dict(gnn=gnn, cnn=cnn)
    # hybrid head fc1: Linear(128 + 64 -> hidden), stored split for the concat
    p['fc1_wg'] = mat((128, hidden_dim))
    p['fc1_wc'] = mat((64, hidden_dim))
    p['fc1_b'] = vec(hidden_dim)
    p['fc2_w'] = mat((hidden_dim, hidden_dim)); p['fc2_b'] = vec(hidden_dim)
    p['fc3_w'] = mat((hidden_dim, 1)); p['fc3_b'] = vec(1)
    return p


# ---------------------------------------------------------------------------

if __name__ == "__main__":
    key = jax.random.PRNGKey(0)
    k_param, k_img, k_x, k_e = jax.random.split(key, 4)

    NODE_F, EDGE_F = 4, 3        # node_in_feats / edge_in_feats (synthetic dataset)
    HIDDEN = 32                  # HybridModel hidden_dim
    B = 2                        # 2 images and 2 graphs

    params = init_params(k_param, NODE_F, EDGE_F, HIDDEN)

    # CNNModel hard-codes fc1_input_dim = 24*16*16, which implies 128x128 images
    # (three 2x max-pools: 128 -> 64 -> 32 -> 16).
    img = jax.random.normal(k_img, (B, 3, 128, 128), jnp.float32)

    # Synthetic batched graph: B graphs, 6 nodes each, bidirectional ring edges.
    n_per = 6
    N = B * n_per
    node_x = jax.random.normal(k_x, (N, NODE_F), jnp.float32)
    src, dst = [], []
    for g in range(B):
        for i in range(n_per):
            a = g * n_per + i
            b_ = g * n_per + (i + 1) % n_per
            src += [a, b_]
            dst += [b_, a]
    edge_index = jnp.array([src, dst], dtype=jnp.int32)
    edge_attr = jax.random.normal(k_e, (edge_index.shape[1], EDGE_F), jnp.float32)
    batch = jnp.repeat(jnp.arange(B, dtype=jnp.int32), n_per)

    out = hybrid_forward(params, img, node_x, edge_index, edge_attr, batch,
                         num_graphs=B)
    out = jax.block_until_ready(out)
    assert out.shape == (B, 1), out.shape
    assert bool(jnp.all(jnp.isfinite(out)))
    print("KERNEL_OK")
</pallas_src>

<mosaic_0001>
module attributes {stable_mosaic.version = 11 : i64} {
  func.func @_conv_relu_pool_kernel(%arg0: i32, %arg1: i32, %arg2: memref<1x48x2048xbf16, #tpu.memory_space<vmem>>, %arg3: memref<32x48xbf16, #tpu.memory_space<vmem>>, %arg4: memref<8x1xf32, #tpu.memory_space<vmem>>, %arg5: memref<1x6x2048xbf16, #tpu.memory_space<vmem>>) attributes {dimension_semantics = [#tpu.dimension_semantics<parallel>, #tpu.dimension_semantics<parallel>], iteration_bounds = array<i64: 2, 2>, scalar_prefetch = 0 : i64, scratch_operands = 0 : i64, tpu.core_type = #tpu.core_type<tc>, window_params = [{transform_indices = @transform_0, window_bounds = array<i64: 1, 48, 2048>}, {pipeline_mode = #tpu.pipeline_mode<synchronous>, transform_indices = @transform_1, window_bounds = array<i64: 32, 48>}, {pipeline_mode = #tpu.pipeline_mode<synchronous>, transform_indices = @transform_2, window_bounds = array<i64: 8, 1>}, {transform_indices = @transform_3, window_bounds = array<i64: 1, 6, 2048>}]} {
    %c0 = arith.constant 0 : index
    %c0_0 = arith.constant 0 : index
    %0 = vector.load %arg3[%c0, %c0_0] : memref<32x48xbf16, #tpu.memory_space<vmem>>, vector<32x48xbf16>
    %c0_1 = arith.constant 0 : index
    %c0_2 = arith.constant 0 : index
    %c0_3 = arith.constant 0 : index
    %1 = vector.load %arg2[%c0_1, %c0_2, %c0_3] : memref<1x48x2048xbf16, #tpu.memory_space<vmem>>, vector<1x48x2048xbf16>
    %2 = vector.shape_cast %1 : vector<1x48x2048xbf16> to vector<48x2048xbf16>
    %cst = arith.constant dense<0.000000e+00> : vector<32x2048xf32>
    %3 = tpu.matmul %0, %2, %cst {dimension_numbers = #tpu.dot_dimension_numbers<[1], [0], [0], [1], [0, 0, 1, 1], [], []>} : vector<32x48xbf16>, vector<48x2048xbf16>, vector<32x2048xf32> -> vector<32x2048xf32>
    %4 = vector.extract_strided_slice %3 {offsets = [0, 0], sizes = [8, 2048], strides = [1, 1]} : vector<32x2048xf32> to vector<8x2048xf32>
    %5 = vector.extract_strided_slice %3 {offsets = [8, 0], sizes = [8, 2048], strides = [1, 1]} : vector<32x2048xf32> to vector<8x2048xf32>
    %6 = arith.maximumf %4, %5 : vector<8x2048xf32>
    %7 = vector.extract_strided_slice %3 {offsets = [16, 0], sizes = [8, 2048], strides = [1, 1]} : vector<32x2048xf32> to vector<8x2048xf32>
    %8 = arith.maximumf %6, %7 : vector<8x2048xf32>
    %9 = vector.extract_strided_slice %3 {offsets = [24, 0], sizes = [8, 2048], strides = [1, 1]} : vector<32x2048xf32> to vector<8x2048xf32>
    %10 = arith.maximumf %8, %9 : vector<8x2048xf32>
    %c0_4 = arith.constant 0 : index
    %c0_5 = arith.constant 0 : index
    %11 = vector.load %arg4[%c0_4, %c0_5] : memref<8x1xf32, #tpu.memory_space<vmem>>, vector<8x1xf32>
    %12 = vector.broadcast %11 : vector<8x1xf32> to vector<8x2048xf32>
    %13 = arith.addf %10, %12 : vector<8x2048xf32>
    %cst_6 = arith.constant 0.000000e+00 : f32
    %14 = vector.broadcast %cst_6 : f32 to vector<8x2048xf32>
    %15 = arith.maximumf %13, %14 : vector<8x2048xf32>
    %16 = vector.extract_strided_slice %15 {offsets = [0, 0], sizes = [6, 2048], strides = [1, 1]} : vector<8x2048xf32> to vector<6x2048xf32>
    %17 = arith.truncf %16 : vector<6x2048xf32> to vector<6x2048xbf16>
    %c0_7 = arith.constant 0 : index
    %c0_8 = arith.constant 0 : index
    %c0_9 = arith.constant 0 : index
    %18 = vector.load %arg5[%c0_7, %c0_8, %c0_9] : memref<1x6x2048xbf16, #tpu.memory_space<vmem>>, vector<1x6x2048xbf16>
    %19 = vector.shape_cast %18 : vector<1x6x2048xbf16> to vector<6x2048xbf16>
    %20 = vector.shape_cast %17 : vector<6x2048xbf16> to vector<1x6x2048xbf16>
    tpu.vector_store %arg5[%c0_7, %c0_8, %c0_9], %20 {strides = array<i32>} : memref<1x6x2048xbf16, #tpu.memory_space<vmem>>, vector<1x6x2048xbf16>,
    return
  }
  func.func @transform_0(%arg0: i32, %arg1: i32) -> (i32, i32, i32) {
    %c0_i32 = arith.constant 0 : i32
    %c0_i32_0 = arith.constant 0 : i32
    return %arg0, %c0_i32, %arg1 : i32, i32, i32
  }
  func.func @transform_1(%arg0: i32, %arg1: i32) -> (i32, i32) {
    %c0_i32 = arith.constant 0 : i32
    %c0_i32_0 = arith.constant 0 : i32
    %c0_i32_1 = arith.constant 0 : i32
    return %c0_i32, %c0_i32_0 : i32, i32
  }
  func.func @transform_2(%arg0: i32, %arg1: i32) -> (i32, i32) {
    %c0_i32 = arith.constant 0 : i32
    %c0_i32_0 = arith.constant 0 : i32
    %c0_i32_1 = arith.constant 0 : i32
    return %c0_i32, %c0_i32_0 : i32, i32
  }
  func.func @transform_3(%arg0: i32, %arg1: i32) -> (i32, i32, i32) {
    %c0_i32 = arith.constant 0 : i32
    %c0_i32_0 = arith.constant 0 : i32
    return %arg0, %c0_i32, %arg1 : i32, i32, i32
  }
}

module attributes {stable_mosaic.version = 11 : i64} {
  func.func @_conv_relu_pool_kernel(%arg0: i32, %arg1: i32, %arg2: memref<1x96x1024xbf16, #tpu.memory_space<vmem>>, %arg3: memref<64x96xbf16, #tpu.memory_space<vmem>>, %arg4: memref<16x1xf32, #tpu.memory_space<vmem>>, %arg5: memref<1x12x1024xbf16, #tpu.memory_space<vmem>>) attributes {dimension_semantics = [#tpu.dimension_semantics<parallel>, #tpu.dimension_semantics<parallel>], iteration_bounds = array<i64: 2, 1>, scalar_prefetch = 0 : i64, scratch_operands = 0 : i64, tpu.core_type = #tpu.core_type<tc>, window_params = [{transform_indices = @transform_0, window_bounds = array<i64: 1, 96, 1024>}, {pipeline_mode = #tpu.pipeline_mode<synchronous>, transform_indices = @transform_1, window_bounds = array<i64: 64, 96>}, {pipeline_mode = #tpu.pipeline_mode<synchronous>, transform_indices = @transform_2, window_bounds = array<i64: 16, 1>}, {transform_indices = @transform_3, window_bounds = array<i64: 1, 12, 1024>}]} {
    %c0 = arith.constant 0 : index
    %c0_0 = arith.constant 0 : index
    %0 = vector.load %arg3[%c0, %c0_0] : memref<64x96xbf16, #tpu.memory_space<vmem>>, vector<64x96xbf16>
    %c0_1 = arith.constant 0 : index
    %c0_2 = arith.constant 0 : index
    %c0_3 = arith.constant 0 : index
    %1 = vector.load %arg2[%c0_1, %c0_2, %c0_3] : memref<1x96x1024xbf16, #tpu.memory_space<vmem>>, vector<1x96x1024xbf16>
    %2 = vector.shape_cast %1 : vector<1x96x1024xbf16> to vector<96x1024xbf16>
    %cst = arith.constant dense<0.000000e+00> : vector<64x1024xf32>
    %3 = tpu.matmul %0, %2, %cst {dimension_numbers = #tpu.dot_dimension_numbers<[1], [0], [0], [1], [0, 0, 1, 1], [], []>} : vector<64x96xbf16>, vector<96x1024xbf16>, vector<64x1024xf32> -> vector<64x1024xf32>
    %4 = vector.extract_strided_slice %3 {offsets = [0, 0], sizes = [16, 1024], strides = [1, 1]} : vector<64x1024xf32> to vector<16x1024xf32>
    %5 = vector.extract_strided_slice %3 {offsets = [16, 0], sizes = [16, 1024], strides = [1, 1]} : vector<64x1024xf32> to vector<16x1024xf32>
    %6 = arith.maximumf %4, %5 : vector<16x1024xf32>
    %7 = vector.extract_strided_slice %3 {offsets = [32, 0], sizes = [16, 1024], strides = [1, 1]} : vector<64x1024xf32> to vector<16x1024xf32>
    %8 = arith.maximumf %6, %7 : vector<16x1024xf32>
    %9 = vector.extract_strided_slice %3 {offsets = [48, 0], sizes = [16, 1024], strides = [1, 1]} : vector<64x1024xf32> to vector<16x1024xf32>
    %10 = arith.maximumf %8, %9 : vector<16x1024xf32>
    %c0_4 = arith.constant 0 : index
    %c0_5 = arith.constant 0 : index
    %11 = vector.load %arg4[%c0_4, %c0_5] : memref<16x1xf32, #tpu.memory_space<vmem>>, vector<16x1xf32>
    %12 = vector.broadcast %11 : vector<16x1xf32> to vector<16x1024xf32>
    %13 = arith.addf %10, %12 : vector<16x1024xf32>
    %cst_6 = arith.constant 0.000000e+00 : f32
    %14 = vector.broadcast %cst_6 : f32 to vector<16x1024xf32>
    %15 = arith.maximumf %13, %14 : vector<16x1024xf32>
    %16 = vector.extract_strided_slice %15 {offsets = [0, 0], sizes = [12, 1024], strides = [1, 1]} : vector<16x1024xf32> to vector<12x1024xf32>
    %17 = arith.truncf %16 : vector<12x1024xf32> to vector<12x1024xbf16>
    %c0_7 = arith.constant 0 : index
    %c0_8 = arith.constant 0 : index
    %c0_9 = arith.constant 0 : index
    %18 = vector.load %arg5[%c0_7, %c0_8, %c0_9] : memref<1x12x1024xbf16, #tpu.memory_space<vmem>>, vector<1x12x1024xbf16>
    %19 = vector.shape_cast %18 : vector<1x12x1024xbf16> to vector<12x1024xbf16>
    %20 = vector.shape_cast %17 : vector<12x1024xbf16> to vector<1x12x1024xbf16>
    tpu.vector_store %arg5[%c0_7, %c0_8, %c0_9], %20 {strides = array<i32>} : memref<1x12x1024xbf16, #tpu.memory_space<vmem>>, vector<1x12x1024xbf16>,
    return
  }
  func.func @transform_0(%arg0: i32, %arg1: i32) -> (i32, i32, i32) {
    %c0_i32 = arith.constant 0 : i32
    %c0_i32_0 = arith.constant 0 : i32
    return %arg0, %c0_i32, %arg1 : i32, i32, i32
  }
  func.func @transform_1(%arg0: i32, %arg1: i32) -> (i32, i32) {
    %c0_i32 = arith.constant 0 : i32
    %c0_i32_0 = arith.constant 0 : i32
    %c0_i32_1 = arith.constant 0 : i32
    return %c0_i32, %c0_i32_0 : i32, i32
  }
  func.func @transform_2(%arg0: i32, %arg1: i32) -> (i32, i32) {
    %c0_i32 = arith.constant 0 : i32
    %c0_i32_0 = arith.constant 0 : i32
    %c0_i32_1 = arith.constant 0 : i32
    return %c0_i32, %c0_i32_0 : i32, i32
  }
  func.func @transform_3(%arg0: i32, %arg1: i32) -> (i32, i32, i32) {
    %c0_i32 = arith.constant 0 : i32
    %c0_i32_0 = arith.constant 0 : i32
    return %arg0, %c0_i32, %arg1 : i32, i32, i32
  }
}

module attributes {stable_mosaic.version = 11 : i64} {
  func.func @_conv_relu_pool_kernel(%arg0: i32, %arg1: i32, %arg2: memref<1x192x256xbf16, #tpu.memory_space<vmem>>, %arg3: memref<96x192xbf16, #tpu.memory_space<vmem>>, %arg4: memref<24x1xf32, #tpu.memory_space<vmem>>, %arg5: memref<1x24x256xbf16, #tpu.memory_space<vmem>>) attributes {dimension_semantics = [#tpu.dimension_semantics<parallel>, #tpu.dimension_semantics<parallel>], iteration_bounds = array<i64: 2, 1>, scalar_prefetch = 0 : i64, scratch_operands = 0 : i64, tpu.core_type = #tpu.core_type<tc>, window_params = [{transform_indices = @transform_0, window_bounds = array<i64: 1, 192, 256>}, {pipeline_mode = #tpu.pipeline_mode<synchronous>, transform_indices = @transform_1, window_bounds = array<i64: 96, 192>}, {pipeline_mode = #tpu.pipeline_mode<synchronous>, transform_indices = @transform_2, window_bounds = array<i64: 24, 1>}, {transform_indices = @transform_3, window_bounds = array<i64: 1, 24, 256>}]} {
    %c0 = arith.constant 0 : index
    %c0_0 = arith.constant 0 : index
    %0 = vector.load %arg3[%c0, %c0_0] : memref<96x192xbf16, #tpu.memory_space<vmem>>, vector<96x192xbf16>
    %c0_1 = arith.constant 0 : index
    %c0_2 = arith.constant 0 : index
    %c0_3 = arith.constant 0 : index
    %1 = vector.load %arg2[%c0_1, %c0_2, %c0_3] : memref<1x192x256xbf16, #tpu.memory_space<vmem>>, vector<1x192x256xbf16>
    %2 = vector.shape_cast %1 : vector<1x192x256xbf16> to vector<192x256xbf16>
    %cst = arith.constant dense<0.000000e+00> : vector<96x256xf32>
    %3 = tpu.matmul %0, %2, %cst {dimension_numbers = #tpu.dot_dimension_numbers<[1], [0], [0], [1], [0, 0, 1, 1], [], []>} : vector<96x192xbf16>, vector<192x256xbf16>, vector<96x256xf32> -> vector<96x256xf32>
    %4 = vector.extract_strided_slice %3 {offsets = [0, 0], sizes = [24, 256], strides = [1, 1]} : vector<96x256xf32> to vector<24x256xf32>
    %5 = vector.extract_strided_slice %3 {offsets = [24, 0], sizes = [24, 256], strides = [1, 1]} : vector<96x256xf32> to vector<24x256xf32>
    %6 = arith.maximumf %4, %5 : vector<24x256xf32>
    %7 = vector.extract_strided_slice %3 {offsets = [48, 0], sizes = [24, 256], strides = [1, 1]} : vector<96x256xf32> to vector<24x256xf32>
    %8 = arith.maximumf %6, %7 : vector<24x256xf32>
    %9 = vector.extract_strided_slice %3 {offsets = [72, 0], sizes = [24, 256], strides = [1, 1]} : vector<96x256xf32> to vector<24x256xf32>
    %10 = arith.maximumf %8, %9 : vector<24x256xf32>
    %c0_4 = arith.constant 0 : index
    %c0_5 = arith.constant 0 : index
    %11 = vector.load %arg4[%c0_4, %c0_5] : memref<24x1xf32, #tpu.memory_space<vmem>>, vector<24x1xf32>
    %12 = vector.broadcast %11 : vector<24x1xf32> to vector<24x256xf32>
    %13 = arith.addf %10, %12 : vector<24x256xf32>
    %cst_6 = arith.constant 0.000000e+00 : f32
    %14 = vector.broadcast %cst_6 : f32 to vector<24x256xf32>
    %15 = arith.maximumf %13, %14 : vector<24x256xf32>
    %16 = arith.truncf %15 : vector<24x256xf32> to vector<24x256xbf16>
    %c0_7 = arith.constant 0 : index
    %c0_8 = arith.constant 0 : index
    %c0_9 = arith.constant 0 : index
    %17 = vector.load %arg5[%c0_7, %c0_8, %c0_9] : memref<1x24x256xbf16, #tpu.memory_space<vmem>>, vector<1x24x256xbf16>
    %18 = vector.shape_cast %17 : vector<1x24x256xbf16> to vector<24x256xbf16>
    %19 = vector.shape_cast %16 : vector<24x256xbf16> to vector<1x24x256xbf16>
    tpu.vector_store %arg5[%c0_7, %c0_8, %c0_9], %19 {strides = array<i32>} : memref<1x24x256xbf16, #tpu.memory_space<vmem>>, vector<1x24x256xbf16>,
    return
  }
  func.func @transform_0(%arg0: i32, %arg1: i32) -> (i32, i32, i32) {
    %c0_i32 = arith.constant 0 : i32
    %c0_i32_0 = arith.constant 0 : i32
    return %arg0, %c0_i32, %arg1 : i32, i32, i32
  }
  func.func @transform_1(%arg0: i32, %arg1: i32) -> (i32, i32) {
    %c0_i32 = arith.constant 0 : i32
    %c0_i32_0 = arith.constant 0 : i32
    %c0_i32_1 = arith.constant 0 : i32
    return %c0_i32, %c0_i32_0 : i32, i32
  }
  func.func @transform_2(%arg0: i32, %arg1: i32) -> (i32, i32) {
    %c0_i32 = arith.constant 0 : i32
    %c0_i32_0 = arith.constant 0 : i32
    %c0_i32_1 = arith.constant 0 : i32
    return %c0_i32, %c0_i32_0 : i32, i32
  }
  func.func @transform_3(%arg0: i32, %arg1: i32) -> (i32, i32, i32) {
    %c0_i32 = arith.constant 0 : i32
    %c0_i32_0 = arith.constant 0 : i32
    return %arg0, %c0_i32, %arg1 : i32, i32, i32
  }
}

module attributes {stable_mosaic.version = 11 : i64} {
  func.func @_tail_kernel(%arg0: i32, %arg1: memref<2x6144xbf16, #tpu.memory_space<vmem>>, %arg2: memref<6144x128xbf16, #tpu.memory_space<vmem>>, %arg3: memref<1x128xf32, #tpu.memory_space<vmem>>, %arg4: memref<128x64xbf16, #tpu.memory_space<vmem>>, %arg5: memref<1x64xf32, #tpu.memory_space<vmem>>, %arg6: memref<12x4xf32, #tpu.memory_space<vmem>>, %arg7: memref<24x3xf32, #tpu.memory_space<vmem>>, %arg8: memref<24x1xi32, #tpu.memory_space<vmem>>, %arg9: memref<24x1xi32, #tpu.memory_space<vmem>>, %arg10: memref<1x24xi32, #tpu.memory_space<vmem>>, %arg11: memref<1x12xi32, #tpu.memory_space<vmem>>, %arg12: memref<4x4xf32, #tpu.memory_space<vmem>>, %arg13: memref<3x4xf32, #tpu.memory_space<vmem>>, %arg14: memref<1x4xf32, #tpu.memory_space<vmem>>, %arg15: memref<4x256xf32, #tpu.memory_space<vmem>>, %arg16: memref<4x256xf32, #tpu.memory_space<vmem>>, %arg17: memref<1x256xf32, #tpu.memory_space<vmem>>, %arg18: memref<1x256xf32, #tpu.memory_space<vmem>>, %arg19: memref<1x256xf32, #tpu.memory_space<vmem>>, %arg20: memref<256x128xf32, #tpu.memory_space<vmem>>, %arg21: memref<1x128xf32, #tpu.memory_space<vmem>>, %arg22: memref<128x32xf32, #tpu.memory_space<vmem>>, %arg23: memref<64x32xf32, #tpu.memory_space<vmem>>, %arg24: memref<1x32xf32, #tpu.memory_space<vmem>>, %arg25: memref<32x32xf32, #tpu.memory_space<vmem>>, %arg26: memref<1x32xf32, #tpu.memory_space<vmem>>, %arg27: memref<32x128xf32, #tpu.memory_space<vmem>>, %arg28: memref<1x128xf32, #tpu.memory_space<vmem>>, %arg29: memref<2x128xf32, #tpu.memory_space<vmem>>) attributes {dimension_semantics = [#tpu.dimension_semantics<arbitrary>], iteration_bounds = array<i64: 1>, scalar_prefetch = 0 : i64, scratch_operands = 0 : i64, tpu.core_type = #tpu.core_type<tc>, window_params = [{pipeline_mode = #tpu.pipeline_mode<synchronous>, transform_indices = @transform_0, window_bounds = array<i64: 2, 6144>}, {pipeline_mode = #tpu.pipeline_mode<synchronous>, transform_indices = @transform_1, window_bounds = array<i64: 6144, 128>}, {pipeline_mode = #tpu.pipeline_mode<synchronous>, transform_indices = @transform_2, window_bounds = array<i64: 1, 128>}, {pipeline_mode = #tpu.pipeline_mode<synchronous>, transform_indices = @transform_3, window_bounds = array<i64: 128, 64>}, {pipeline_mode = #tpu.pipeline_mode<synchronous>, transform_indices = @transform_4, window_bounds = array<i64: 1, 64>}, {pipeline_mode = #tpu.pipeline_mode<synchronous>, transform_indices = @transform_5, window_bounds = array<i64: 12, 4>}, {pipeline_mode = #tpu.pipeline_mode<synchronous>, transform_indices = @transform_6, window_bounds = array<i64: 24, 3>}, {pipeline_mode = #tpu.pipeline_mode<synchronous>, transform_indices = @transform_7, window_bounds = array<i64: 24, 1>}, {pipeline_mode = #tpu.pipeline_mode<synchronous>, transform_indices = @transform_8, window_bounds = array<i64: 24, 1>}, {pipeline_mode = #tpu.pipeline_mode<synchronous>, transform_indices = @transform_9, window_bounds = array<i64: 1, 24>}, {pipeline_mode = #tpu.pipeline_mode<synchronous>, transform_indices = @transform_10, window_bounds = array<i64: 1, 12>}, {pipeline_mode = #tpu.pipeline_mode<synchronous>, transform_indices = @transform_11, window_bounds = array<i64: 4, 4>}, {pipeline_mode = #tpu.pipeline_mode<synchronous>, transform_indices = @transform_12, window_bounds = array<i64: 3, 4>}, {pipeline_mode = #tpu.pipeline_mode<synchronous>, transform_indices = @transform_13, window_bounds = array<i64: 1, 4>}, {pipeline_mode = #tpu.pipeline_mode<synchronous>, transform_indices = @transform_14, window_bounds = array<i64: 4, 256>}, {pipeline_mode = #tpu.pipeline_mode<synchronous>, transform_indices = @transform_15, window_bounds = array<i64: 4, 256>}, {pipeline_mode = #tpu.pipeline_mode<synchronous>, transform_indices = @transform_16, window_bounds = array<i64: 1, 256>}, {pipeline_mode = #tpu.pipeline_mode<synchronous>, transform_indices = @transform_17, window_bounds = array<i64: 1, 256>}, {pipeline_mode = #tpu.pipeline_mode<synchronous>, transform_indices = @transform_18, window_bounds = array<i64: 1, 256>}, {pipeline_mode = #tpu.pipeline_mode<synchronous>, transform_indices = @transform_19, window_bounds = array<i64: 256, 128>}, {pipeline_mode = #tpu.pipeline_mode<synchronous>, transform_indices = @transform_20, window_bounds = array<i64: 1, 128>}, {pipeline_mode = #tpu.pipeline_mode<synchronous>, transform_indices = @transform_21, window_bounds = array<i64: 128, 32>}, {pipeline_mode = #tpu.pipeline_mode<synchronous>, transform_indices = @transform_22, window_bounds = array<i64: 64, 32>}, {pipeline_mode = #tpu.pipeline_mode<synchronous>, transform_indices = @transform_23, window_bounds = array<i64: 1, 32>}, {pipeline_mode = #tpu.pipeline_mode<synchronous>, transform_indices = @transform_24, window_bounds = array<i64: 32, 32>}, {pipeline_mode = #tpu.pipeline_mode<synchronous>, transform_indices = @transform_25, window_bounds = array<i64: 1, 32>}, {pipeline_mode = #tpu.pipeline_mode<synchronous>, transform_indices = @transform_26, window_bounds = array<i64: 32, 128>}, {pipeline_mode = #tpu.pipeline_mode<synchronous>, transform_indices = @transform_27, window_bounds = array<i64: 1, 128>}, {pipeline_mode = #tpu.pipeline_mode<synchronous>, transform_indices = @transform_28, window_bounds = array<i64: 2, 128>}]} {
    %c0 = arith.constant 0 : index
    %c0_0 = arith.constant 0 : index
    %0 = vector.load %arg1[%c0, %c0_0] : memref<2x6144xbf16, #tpu.memory_space<vmem>>, vector<2x6144xbf16>
    %c0_1 = arith.constant 0 : index
    %c0_2 = arith.constant 0 : index
    %1 = vector.load %arg2[%c0_1, %c0_2] : memref<6144x128xbf16, #tpu.memory_space<vmem>>, vector<6144x128xbf16>
    %cst = arith.constant dense<0.000000e+00> : vector<2x128xf32>
    %2 = tpu.matmul %0, %1, %cst {dimension_numbers = #tpu.dot_dimension_numbers<[1], [0], [0], [1], [0, 0, 1, 1], [], []>} : vector<2x6144xbf16>, vector<6144x128xbf16>, vector<2x128xf32> -> vector<2x128xf32>
    %c0_3 = arith.constant 0 : index
    %c0_4 = arith.constant 0 : index
    %3 = vector.load %arg3[%c0_3, %c0_4] : memref<1x128xf32, #tpu.memory_space<vmem>>, vector<1x128xf32>
    %4 = vector.broadcast %3 : vector<1x128xf32> to vector<2x128xf32>
    %5 = arith.addf %2, %4 : vector<2x128xf32>
    %cst_5 = arith.constant 0.000000e+00 : f32
    %6 = vector.broadcast %cst_5 : f32 to vector<2x128xf32>
    %7 = arith.maximumf %5, %6 : vector<2x128xf32>
    %8 = arith.truncf %7 : vector<2x128xf32> to vector<2x128xbf16>
    %c0_6 = arith.constant 0 : index
    %c0_7 = arith.constant 0 : index
    %9 = vector.load %arg4[%c0_6, %c0_7] : memref<128x64xbf16, #tpu.memory_space<vmem>>, vector<128x64xbf16>
    %cst_8 = arith.constant dense<0.000000e+00> : vector<2x64xf32>
    %10 = tpu.matmul %8, %9, %cst_8 {dimension_numbers = #tpu.dot_dimension_numbers<[1], [0], [0], [1], [0, 0, 1, 1], [], []>} : vector<2x128xbf16>, vector<128x64xbf16>, vector<2x64xf32> -> vector<2x64xf32>
    %c0_9 = arith.constant 0 : index
    %c0_10 = arith.constant 0 : index
    %11 = vector.load %arg5[%c0_9, %c0_10] : memref<1x64xf32, #tpu.memory_space<vmem>>, vector<1x64xf32>
    %12 = vector.broadcast %11 : vector<1x64xf32> to vector<2x64xf32>
    %13 = arith.addf %10, %12 : vector<2x64xf32>
    %cst_11 = arith.constant 0.000000e+00 : f32
    %14 = vector.broadcast %cst_11 : f32 to vector<2x64xf32>
    %15 = arith.maximumf %13, %14 : vector<2x64xf32>
    %c0_12 = arith.constant 0 : index
    %c0_13 = arith.constant 0 : index
    %16 = vector.load %arg6[%c0_12, %c0_13] : memref<12x4xf32, #tpu.memory_space<vmem>>, vector<12x4xf32>
    %c0_14 = arith.constant 0 : index
    %c0_15 = arith.constant 0 : index
    %17 = vector.load %arg7[%c0_14, %c0_15] : memref<24x3xf32, #tpu.memory_space<vmem>>, vector<24x3xf32>
    %18 = tpu.iota {dimensions = array<i32: 1>} : vector<24x12xi32>
    %c0_16 = arith.constant 0 : index
    %c0_17 = arith.constant 0 : index
    %19 = vector.load %arg8[%c0_16, %c0_17] : memref<24x1xi32, #tpu.memory_space<vmem>>, vector<24x1xi32>
    %20 = vector.broadcast %19 : vector<24x1xi32> to vector<24x12xi32>
    %21 = arith.cmpi eq, %18, %20 : vector<24x12xi32>
    %22 = arith.extui %21 : vector<24x12xi1> to vector<24x12xi32>
    %23 = arith.sitofp %22 : vector<24x12xi32> to vector<24x12xf32>
    %24 = tpu.iota {dimensions = array<i32: 1>} : vector<24x12xi32>
    %c0_18 = arith.constant 0 : index
    %c0_19 = arith.constant 0 : index
    %25 = vector.load %arg9[%c0_18, %c0_19] : memref<24x1xi32, #tpu.memory_space<vmem>>, vector<24x1xi32>
    %26 = vector.broadcast %25 : vector<24x1xi32> to vector<24x12xi32>
    %27 = arith.cmpi eq, %24, %26 : vector<24x12xi32>
    %28 = arith.extui %27 : vector<24x12xi1> to vector<24x12xi32>
    %29 = arith.sitofp %28 : vector<24x12xi32> to vector<24x12xf32>
    %30 = tpu.iota {dimensions = array<i32: 0>} : vector<12x24xi32>
    %c0_20 = arith.constant 0 : index
    %c0_21 = arith.constant 0 : index
    %31 = vector.load %arg10[%c0_20, %c0_21] : memref<1x24xi32, #tpu.memory_space<vmem>>, vector<1x24xi32>
    %32 = vector.broadcast %31 : vector<1x24xi32> to vector<12x24xi32>
    %33 = arith.cmpi eq, %30, %32 : vector<12x24xi32>
    %34 = arith.extui %33 : vector<12x24xi1> to vector<12x24xi32>
    %35 = arith.sitofp %34 : vector<12x24xi32> to vector<12x24xf32>
    %cst_22 = arith.constant dense<0.000000e+00> : vector<12xf32>
    %36 = vector.multi_reduction <add>, %35, %cst_22 [1] : vector<12x24xf32> to vector<12xf32>
    %37 = vector.shape_cast %36 : vector<12xf32> to vector<12x1xf32>
    %cst_23 = arith.constant dense<0.000000e+00> : vector<12xf32>
    %38 = vector.multi_reduction <add>, %29, %cst_23 [0] : vector<24x12xf32> to vector<12xf32>
    %39 = vector.shape_cast %38 : vector<12xf32> to vector<1x12xf32>
    %cst_24 = arith.constant dense<0.000000e+00> : vector<12x3xf32>
    %40 = tpu.matmul %35, %17, %cst_24 {dimension_numbers = #tpu.dot_dimension_numbers<[1], [0], [0], [1], [0, 0, 1, 1], [], []>} : vector<12x24xf32>, vector<24x3xf32>, vector<12x3xf32> -> vector<12x3xf32>
    %cst_25 = arith.constant 1.000000e+00 : f32
    %41 = vector.broadcast %cst_25 : f32 to vector<12x1xf32>
    %42 = arith.maximumf %37, %41 : vector<12x1xf32>
    %43 = vector.broadcast %42 : vector<12x1xf32> to vector<12x3xf32>
    %44 = arith.divf %40, %43 : vector<12x3xf32>
    %cst_26 = arith.constant 1.000000e+00 : f32
    %45 = vector.broadcast %cst_26 : f32 to vector<12x1xf32>
    %46 = arith.addf %37, %45 : vector<12x1xf32>
    %47 = math.rsqrt %46 : vector<12x1xf32>
    %cst_27 = arith.constant 1.000000e+00 : f32
    %48 = vector.broadcast %cst_27 : f32 to vector<1x12xf32>
    %49 = arith.addf %39, %48 : vector<1x12xf32>
    %50 = math.rsqrt %49 : vector<1x12xf32>
    %51 = vector.broadcast %50 : vector<1x12xf32> to vector<24x12xf32>
    %52 = arith.mulf %23, %51 : vector<24x12xf32>
    %cst_28 = arith.constant dense<0.000000e+00> : vector<24xf32>
    %53 = vector.multi_reduction <add>, %52, %cst_28 [1] : vector<24x12xf32> to vector<24xf32>
    %54 = vector.shape_cast %53 : vector<24xf32> to vector<24x1xf32>
    %55 = vector.broadcast %50 : vector<1x12xf32> to vector<24x12xf32>
    %56 = arith.mulf %29, %55 : vector<24x12xf32>
    %cst_29 = arith.constant dense<0.000000e+00> : vector<24xf32>
    %57 = vector.multi_reduction <add>, %56, %cst_29 [1] : vector<24x12xf32> to vector<24xf32>
    %58 = vector.shape_cast %57 : vector<24xf32> to vector<24x1xf32>
    %59 = arith.mulf %54, %58 : vector<24x1xf32>
    %60 = arith.mulf %47, %47 : vector<12x1xf32>
    %c0_30 = arith.constant 0 : index
    %c0_31 = arith.constant 0 : index
    %61 = vector.load %arg12[%c0_30, %c0_31] : memref<4x4xf32, #tpu.memory_space<vmem>>, vector<4x4xf32>
    %c0_32 = arith.constant 0 : index
    %c0_33 = arith.constant 0 : index
    %62 = vector.load %arg13[%c0_32, %c0_33] : memref<3x4xf32, #tpu.memory_space<vmem>>, vector<3x4xf32>
    %c0_34 = arith.constant 0 : index
    %c0_35 = arith.constant 0 : index
    %63 = vector.load %arg14[%c0_34, %c0_35] : memref<1x4xf32, #tpu.memory_space<vmem>>, vector<1x4xf32>
    %cst_36 = arith.constant dense<0.000000e+00> : vector<24x4xf32>
    %64 = tpu.matmul %23, %16, %cst_36 {dimension_numbers = #tpu.dot_dimension_numbers<[1], [0], [0], [1], [0, 0, 1, 1], [], []>} : vector<24x12xf32>, vector<12x4xf32>, vector<24x4xf32> -> vector<24x4xf32>
    %cst_37 = arith.constant dense<0.000000e+00> : vector<24x4xf32>
    %65 = tpu.matmul %64, %61, %cst_37 {dimension_numbers = #tpu.dot_dimension_numbers<[1], [0], [0], [1], [0, 0, 1, 1], [], []>} : vector<24x4xf32>, vector<4x4xf32>, vector<24x4xf32> -> vector<24x4xf32>
    %cst_38 = arith.constant dense<0.000000e+00> : vector<24x4xf32>
    %66 = tpu.matmul %17, %62, %cst_38 {dimension_numbers = #tpu.dot_dimension_numbers<[1], [0], [0], [1], [0, 0, 1, 1], [], []>} : vector<24x3xf32>, vector<3x4xf32>, vector<24x4xf32> -> vector<24x4xf32>
    %67 = arith.addf %65, %66 : vector<24x4xf32>
    %68 = vector.broadcast %63 : vector<1x4xf32> to vector<24x4xf32>
    %69 = arith.addf %67, %68 : vector<24x4xf32>
    %cst_39 = arith.constant 0.000000e+00 : f32
    %70 = vector.broadcast %cst_39 : f32 to vector<24x4xf32>
    %71 = arith.maximumf %69, %70 : vector<24x4xf32>
    %72 = vector.broadcast %59 : vector<24x1xf32> to vector<24x4xf32>
    %73 = arith.mulf %72, %71 : vector<24x4xf32>
    %cst_40 = arith.constant dense<0.000000e+00> : vector<12x4xf32>
    %74 = tpu.matmul %16, %61, %cst_40 {dimension_numbers = #tpu.dot_dimension_numbers<[1], [0], [0], [1], [0, 0, 1, 1], [], []>} : vector<12x4xf32>, vector<4x4xf32>, vector<12x4xf32> -> vector<12x4xf32>
    %cst_41 = arith.constant dense<0.000000e+00> : vector<12x4xf32>
    %75 = tpu.matmul %44, %62, %cst_41 {dimension_numbers = #tpu.dot_dimension_numbers<[1], [0], [0], [1], [0, 0, 1, 1], [], []>} : vector<12x3xf32>, vector<3x4xf32>, vector<12x4xf32> -> vector<12x4xf32>
    %76 = arith.addf %74, %75 : vector<12x4xf32>
    %77 = vector.broadcast %63 : vector<1x4xf32> to vector<12x4xf32>
    %78 = arith.addf %76, %77 : vector<12x4xf32>
    %cst_42 = arith.constant 0.000000e+00 : f32
    %79 = vector.broadcast %cst_42 : f32 to vector<12x4xf32>
    %80 = arith.maximumf %78, %79 : vector<12x4xf32>
    %81 = vector.broadcast %60 : vector<12x1xf32> to vector<12x4xf32>
    %82 = arith.mulf %81, %80 : vector<12x4xf32>
    %cst_43 = arith.constant dense<0.000000e+00> : vector<12x4xf32>
    %83 = tpu.matmul %35, %73, %cst_43 {dimension_numbers = #tpu.dot_dimension_numbers<[1], [0], [0], [1], [0, 0, 1, 1], [], []>} : vector<12x24xf32>, vector<24x4xf32>, vector<12x4xf32> -> vector<12x4xf32>
    %84 = arith.addf %83, %82 : vector<12x4xf32>
    %c0_44 = arith.constant 0 : index
    %c0_45 = arith.constant 0 : index
    %85 = vector.load %arg15[%c0_44, %c0_45] : memref<4x256xf32, #tpu.memory_space<vmem>>, vector<4x256xf32>
    %cst_46 = arith.constant dense<0.000000e+00> : vector<12x256xf32>
    %86 = tpu.matmul %16, %85, %cst_46 {dimension_numbers = #tpu.dot_dimension_numbers<[1], [0], [0], [1], [0, 0, 1, 1], [], []>} : vector<12x4xf32>, vector<4x256xf32>, vector<12x256xf32> -> vector<12x256xf32>
    %c0_47 = arith.constant 0 : index
    %c0_48 = arith.constant 0 : index
    %87 = vector.load %arg16[%c0_47, %c0_48] : memref<4x256xf32, #tpu.memory_space<vmem>>, vector<4x256xf32>
    %cst_49 = arith.constant dense<0.000000e+00> : vector<12x256xf32>
    %88 = tpu.matmul %84, %87, %cst_49 {dimension_numbers = #tpu.dot_dimension_numbers<[1], [0], [0], [1], [0, 0, 1, 1], [], []>} : vector<12x4xf32>, vector<4x256xf32>, vector<12x256xf32> -> vector<12x256xf32>
    %89 = arith.addf %86, %88 : vector<12x256xf32>
    %c0_50 = arith.constant 0 : index
    %c0_51 = arith.constant 0 : index
    %90 = vector.load %arg17[%c0_50, %c0_51] : memref<1x256xf32, #tpu.memory_space<vmem>>, vector<1x256xf32>
    %91 = vector.broadcast %90 : vector<1x256xf32> to vector<12x256xf32>
    %92 = arith.addf %89, %91 : vector<12x256xf32>
    %cst_52 = arith.constant 0.000000e+00 : f32
    %93 = vector.broadcast %cst_52 : f32 to vector<12x256xf32>
    %94 = arith.maximumf %92, %93 : vector<12x256xf32>
    %95 = tpu.iota {dimensions = array<i32: 0>} : vector<2x12xi32>
    %c0_53 = arith.constant 0 : index
    %c0_54 = arith.constant 0 : index
    %96 = vector.load %arg11[%c0_53, %c0_54] : memref<1x12xi32, #tpu.memory_space<vmem>>, vector<1x12xi32>
    %97 = vector.broadcast %96 : vector<1x12xi32> to vector<2x12xi32>
    %98 = arith.cmpi eq, %95, %97 : vector<2x12xi32>
    %99 = arith.extui %98 : vector<2x12xi1> to vector<2x12xi32>
    %100 = arith.sitofp %99 : vector<2x12xi32> to vector<2x12xf32>
    %cst_55 = arith.constant dense<0.000000e+00> : vector<2xf32>
    %101 = vector.multi_reduction <add>, %100, %cst_55 [1] : vector<2x12xf32> to vector<2xf32>
    %102 = vector.shape_cast %101 : vector<2xf32> to vector<2x1xf32>
    %cst_56 = arith.constant 1.000000e+00 : f32
    %103 = vector.broadcast %cst_56 : f32 to vector<2x1xf32>
    %104 = arith.maximumf %102, %103 : vector<2x1xf32>
    %cst_57 = arith.constant dense<0.000000e+00> : vector<2x256xf32>
    %105 = tpu.matmul %100, %94, %cst_57 {dimension_numbers = #tpu.dot_dimension_numbers<[1], [0], [0], [1], [0, 0, 1, 1], [], []>} : vector<2x12xf32>, vector<12x256xf32>, vector<2x256xf32> -> vector<2x256xf32>
    %106 = vector.broadcast %104 : vector<2x1xf32> to vector<2x256xf32>
    %107 = arith.divf %105, %106 : vector<2x256xf32>
    %cst_58 = arith.constant dense<0.000000e+00> : vector<2xf32>
    %108 = vector.multi_reduction <add>, %107, %cst_58 [1] : vector<2x256xf32> to vector<2xf32>
    %109 = vector.shape_cast %108 : vector<2xf32> to vector<2x1xf32>
    %cst_59 = arith.constant 2.560000e+02 : f32
    %110 = vector.broadcast %cst_59 : f32 to vector<2x1xf32>
    %111 = arith.divf %109, %110 : vector<2x1xf32>
    %112 = vector.broadcast %111 : vector<2x1xf32> to vector<2x256xf32>
    %113 = arith.subf %107, %112 : vector<2x256xf32>
    %114 = arith.mulf %113, %113 : vector<2x256xf32>
    %cst_60 = arith.constant dense<0.000000e+00> : vector<2xf32>
    %115 = vector.multi_reduction <add>, %114, %cst_60 [1] : vector<2x256xf32> to vector<2xf32>
    %116 = vector.shape_cast %115 : vector<2xf32> to vector<2x1xf32>
    %cst_61 = arith.constant 2.560000e+02 : f32
    %117 = vector.broadcast %cst_61 : f32 to vector<2x1xf32>
    %118 = arith.divf %116, %117 : vector<2x1xf32>
    %119 = vector.broadcast %111 : vector<2x1xf32> to vector<2x256xf32>
    %120 = arith.subf %107, %119 : vector<2x256xf32>
    %cst_62 = arith.constant 9.99999974E-6 : f32
    %121 = vector.broadcast %cst_62 : f32 to vector<2x1xf32>
    %122 = arith.addf %118, %121 : vector<2x1xf32>
    %123 = math.rsqrt %122 : vector<2x1xf32>
    %124 = vector.broadcast %123 : vector<2x1xf32> to vector<2x256xf32>
    %125 = arith.mulf %120, %124 : vector<2x256xf32>
    %c0_63 = arith.constant 0 : index
    %c0_64 = arith.constant 0 : index
    %126 = vector.load %arg18[%c0_63, %c0_64] : memref<1x256xf32, #tpu.memory_space<vmem>>, vector<1x256xf32>
    %127 = vector.broadcast %126 : vector<1x256xf32> to vector<2x256xf32>
    %128 = arith.mulf %125, %127 : vector<2x256xf32>
    %c0_65 = arith.constant 0 : index
    %c0_66 = arith.constant 0 : index
    %129 = vector.load %arg19[%c0_65, %c0_66] : memref<1x256xf32, #tpu.memory_space<vmem>>, vector<1x256xf32>
    %130 = vector.broadcast %129 : vector<1x256xf32> to vector<2x256xf32>
    %131 = arith.addf %128, %130 : vector<2x256xf32>
    %c0_67 = arith.constant 0 : index
    %c0_68 = arith.constant 0 : index
    %132 = vector.load %arg20[%c0_67, %c0_68] : memref<256x128xf32, #tpu.memory_space<vmem>>, vector<256x128xf32>
    %cst_69 = arith.constant dense<0.000000e+00> : vector<2x128xf32>
    %133 = tpu.matmul %131, %132, %cst_69 {dimension_numbers = #tpu.dot_dimension_numbers<[1], [0], [0], [1], [0, 0, 1, 1], [], []>} : vector<2x256xf32>, vector<256x128xf32>, vector<2x128xf32> -> vector<2x128xf32>
    %c0_70 = arith.constant 0 : index
    %c0_71 = arith.constant 0 : index
    %134 = vector.load %arg21[%c0_70, %c0_71] : memref<1x128xf32, #tpu.memory_space<vmem>>, vector<1x128xf32>
    %135 = vector.broadcast %134 : vector<1x128xf32> to vector<2x128xf32>
    %136 = arith.addf %133, %135 : vector<2x128xf32>
    %cst_72 = arith.constant 0.000000e+00 : f32
    %137 = vector.broadcast %cst_72 : f32 to vector<2x128xf32>
    %138 = arith.maximumf %136, %137 : vector<2x128xf32>
    %c0_73 = arith.constant 0 : index
    %c0_74 = arith.constant 0 : index
    %139 = vector.load %arg22[%c0_73, %c0_74] : memref<128x32xf32, #tpu.memory_space<vmem>>, vector<128x32xf32>
    %cst_75 = arith.constant dense<0.000000e+00> : vector<2x32xf32>
    %140 = tpu.matmul %138, %139, %cst_75 {dimension_numbers = #tpu.dot_dimension_numbers<[1], [0], [0], [1], [0, 0, 1, 1], [], []>} : vector<2x128xf32>, vector<128x32xf32>, vector<2x32xf32> -> vector<2x32xf32>
    %c0_76 = arith.constant 0 : index
    %c0_77 = arith.constant 0 : index
    %141 = vector.load %arg23[%c0_76, %c0_77] : memref<64x32xf32, #tpu.memory_space<vmem>>, vector<64x32xf32>
    %cst_78 = arith.constant dense<0.000000e+00> : vector<2x32xf32>
    %142 = tpu.matmul %15, %141, %cst_78 {dimension_numbers = #tpu.dot_dimension_numbers<[1], [0], [0], [1], [0, 0, 1, 1], [], []>} : vector<2x64xf32>, vector<64x32xf32>, vector<2x32xf32> -> vector<2x32xf32>
    %143 = arith.addf %140, %142 : vector<2x32xf32>
    %c0_79 = arith.constant 0 : index
    %c0_80 = arith.constant 0 : index
    %144 = vector.load %arg24[%c0_79, %c0_80] : memref<1x32xf32, #tpu.memory_space<vmem>>, vector<1x32xf32>
    %145 = vector.broadcast %144 : vector<1x32xf32> to vector<2x32xf32>
    %146 = arith.addf %143, %145 : vector<2x32xf32>
    %cst_81 = arith.constant 0.000000e+00 : f32
    %147 = vector.broadcast %cst_81 : f32 to vector<2x32xf32>
    %148 = arith.maximumf %146, %147 : vector<2x32xf32>
    %c0_82 = arith.constant 0 : index
    %c0_83 = arith.constant 0 : index
    %149 = vector.load %arg25[%c0_82, %c0_83] : memref<32x32xf32, #tpu.memory_space<vmem>>, vector<32x32xf32>
    %cst_84 = arith.constant dense<0.000000e+00> : vector<2x32xf32>
    %150 = tpu.matmul %148, %149, %cst_84 {dimension_numbers = #tpu.dot_dimension_numbers<[1], [0], [0], [1], [0, 0, 1, 1], [], []>} : vector<2x32xf32>, vector<32x32xf32>, vector<2x32xf32> -> vector<2x32xf32>
    %c0_85 = arith.constant 0 : index
    %c0_86 = arith.constant 0 : index
    %151 = vector.load %arg26[%c0_85, %c0_86] : memref<1x32xf32, #tpu.memory_space<vmem>>, vector<1x32xf32>
    %152 = vector.broadcast %151 : vector<1x32xf32> to vector<2x32xf32>
    %153 = arith.addf %150, %152 : vector<2x32xf32>
    %cst_87 = arith.constant 0.000000e+00 : f32
    %154 = vector.broadcast %cst_87 : f32 to vector<2x32xf32>
    %155 = arith.maximumf %153, %154 : vector<2x32xf32>
    %c0_88 = arith.constant 0 : index
    %c0_89 = arith.constant 0 : index
    %156 = vector.load %arg27[%c0_88, %c0_89] : memref<32x128xf32, #tpu.memory_space<vmem>>, vector<32x128xf32>
    %cst_90 = arith.constant dense<0.000000e+00> : vector<2x128xf32>
    %157 = tpu.matmul %155, %156, %cst_90 {dimension_numbers = #tpu.dot_dimension_numbers<[1], [0], [0], [1], [0, 0, 1, 1], [], []>} : vector<2x32xf32>, vector<32x128xf32>, vector<2x128xf32> -> vector<2x128xf32>
    %c0_91 = arith.constant 0 : index
    %c0_92 = arith.constant 0 : index
    %158 = vector.load %arg28[%c0_91, %c0_92] : memref<1x128xf32, #tpu.memory_space<vmem>>, vector<1x128xf32>
    %159 = vector.broadcast %158 : vector<1x128xf32> to vector<2x128xf32>
    %160 = arith.addf %157, %159 : vector<2x128xf32>
    %c0_93 = arith.constant 0 : index
    %c0_94 = arith.constant 0 : index
    %161 = vector.load %arg29[%c0_93, %c0_94] : memref<2x128xf32, #tpu.memory_space<vmem>>, vector<2x128xf32>
    tpu.vector_store %arg29[%c0_93, %c0_94], %160 {strides = array<i32>} : memref<2x128xf32, #tpu.memory_space<vmem>>, vector<2x128xf32>,
    return
  }
  func.func @transform_0(%arg0: i32) -> (i32, i32) {
    %c0_i32 = arith.constant 0 : i32
    %c0_i32_0 = arith.constant 0 : i32
    %c0_i32_1 = arith.constant 0 : i32
    return %c0_i32, %c0_i32_0 : i32, i32
  }
  func.func @transform_1(%arg0: i32) -> (i32, i32) {
    %c0_i32 = arith.constant 0 : i32
    %c0_i32_0 = arith.constant 0 : i32
    %c0_i32_1 = arith.constant 0 : i32
    return %c0_i32, %c0_i32_0 : i32, i32
  }
  func.func @transform_2(%arg0: i32) -> (i32, i32) {
    %c0_i32 = arith.constant 0 : i32
    %c0_i32_0 = arith.constant 0 : i32
    %c0_i32_1 = arith.constant 0 : i32
    return %c0_i32, %c0_i32_0 : i32, i32
  }
  func.func @transform_3(%arg0: i32) -> (i32, i32) {
    %c0_i32 = arith.constant 0 : i32
    %c0_i32_0 = arith.constant 0 : i32
    %c0_i32_1 = arith.constant 0 : i32
    return %c0_i32, %c0_i32_0 : i32, i32
  }
  func.func @transform_4(%arg0: i32) -> (i32, i32) {
    %c0_i32 = arith.constant 0 : i32
    %c0_i32_0 = arith.constant 0 : i32
    %c0_i32_1 = arith.constant 0 : i32
    return %c0_i32, %c0_i32_0 : i32, i32
  }
  func.func @transform_5(%arg0: i32) -> (i32, i32) {
    %c0_i32 = arith.constant 0 : i32
    %c0_i32_0 = arith.constant 0 : i32
    %c0_i32_1 = arith.constant 0 : i32
    return %c0_i32, %c0_i32_0 : i32, i32
  }
  func.func @transform_6(%arg0: i32) -> (i32, i32) {
    %c0_i32 = arith.constant 0 : i32
    %c0_i32_0 = arith.constant 0 : i32
    %c0_i32_1 = arith.constant 0 : i32
    return %c0_i32, %c0_i32_0 : i32, i32
  }
  func.func @transform_7(%arg0: i32) -> (i32, i32) {
    %c0_i32 = arith.constant 0 : i32
    %c0_i32_0 = arith.constant 0 : i32
    %c0_i32_1 = arith.constant 0 : i32
    return %c0_i32, %c0_i32_0 : i32, i32
  }
  func.func @transform_8(%arg0: i32) -> (i32, i32) {
    %c0_i32 = arith.constant 0 : i32
    %c0_i32_0 = arith.constant 0 : i32
    %c0_i32_1 = arith.constant 0 : i32
    return %c0_i32, %c0_i32_0 : i32, i32
  }
  func.func @transform_9(%arg0: i32) -> (i32, i32) {
    %c0_i32 = arith.constant 0 : i32
    %c0_i32_0 = arith.constant 0 : i32
    %c0_i32_1 = arith.constant 0 : i32
    return %c0_i32, %c0_i32_0 : i32, i32
  }
  func.func @transform_10(%arg0: i32) -> (i32, i32) {
    %c0_i32 = arith.constant 0 : i32
    %c0_i32_0 = arith.constant 0 : i32
    %c0_i32_1 = arith.constant 0 : i32
    return %c0_i32, %c0_i32_0 : i32, i32
  }
  func.func @transform_11(%arg0: i32) -> (i32, i32) {
    %c0_i32 = arith.constant 0 : i32
    %c0_i32_0 = arith.constant 0 : i32
    %c0_i32_1 = arith.constant 0 : i32
    return %c0_i32, %c0_i32_0 : i32, i32
  }
  func.func @transform_12(%arg0: i32) -> (i32, i32) {
    %c0_i32 = arith.constant 0 : i32
    %c0_i32_0 = arith.constant 0 : i32
    %c0_i32_1 = arith.constant 0 : i32
    return %c0_i32, %c0_i32_0 : i32, i32
  }
  func.func @transform_13(%arg0: i32) -> (i32, i32) {
    %c0_i32 = arith.constant 0 : i32
    %c0_i32_0 = arith.constant 0 : i32
    %c0_i32_1 = arith.constant 0 : i32
    return %c0_i32, %c0_i32_0 : i32, i32
  }
  func.func @transform_14(%arg0: i32) -> (i32, i32) {
    %c0_i32 = arith.constant 0 : i32
    %c0_i32_0 = arith.constant 0 : i32
    %c0_i32_1 = arith.constant 0 : i32
    return %c0_i32, %c0_i32_0 : i32, i32
  }
  func.func @transform_15(%arg0: i32) -> (i32, i32) {
    %c0_i32 = arith.constant 0 : i32
    %c0_i32_0 = arith.constant 0 : i32
    %c0_i32_1 = arith.constant 0 : i32
    return %c0_i32, %c0_i32_0 : i32, i32
  }
  func.func @transform_16(%arg0: i32) -> (i32, i32) {
    %c0_i32 = arith.constant 0 : i32
    %c0_i32_0 = arith.constant 0 : i32
    %c0_i32_1 = arith.constant 0 : i32
    return %c0_i32, %c0_i32_0 : i32, i32
  }
  func.func @transform_17(%arg0: i32) -> (i32, i32) {
    %c0_i32 = arith.constant 0 : i32
    %c0_i32_0 = arith.constant 0 : i32
    %c0_i32_1 = arith.constant 0 : i32
    return %c0_i32, %c0_i32_0 : i32, i32
  }
  func.func @transform_18(%arg0: i32) -> (i32, i32) {
    %c0_i32 = arith.constant 0 : i32
    %c0_i32_0 = arith.constant 0 : i32
    %c0_i32_1 = arith.constant 0 : i32
    return %c0_i32, %c0_i32_0 : i32, i32
  }
  func.func @transform_19(%arg0: i32) -> (i32, i32) {
    %c0_i32 = arith.constant 0 : i32
    %c0_i32_0 = arith.constant 0 : i32
    %c0_i32_1 = arith.constant 0 : i32
    return %c0_i32, %c0_i32_0 : i32, i32
  }
  func.func @transform_20(%arg0: i32) -> (i32, i32) {
    %c0_i32 = arith.constant 0 : i32
    %c0_i32_0 = arith.constant 0 : i32
    %c0_i32_1 = arith.constant 0 : i32
    return %c0_i32, %c0_i32_0 : i32, i32
  }
  func.func @transform_21(%arg0: i32) -> (i32, i32) {
    %c0_i32 = arith.constant 0 : i32
    %c0_i32_0 = arith.constant 0 : i32
    %c0_i32_1 = arith.constant 0 : i32
    return %c0_i32, %c0_i32_0 : i32, i32
  }
  func.func @transform_22(%arg0: i32) -> (i32, i32) {
    %c0_i32 = arith.constant 0 : i32
    %c0_i32_0 = arith.constant 0 : i32
    %c0_i32_1 = arith.constant 0 : i32
    return %c0_i32, %c0_i32_0 : i32, i32
  }
  func.func @transform_23(%arg0: i32) -> (i32, i32) {
    %c0_i32 = arith.constant 0 : i32
    %c0_i32_0 = arith.constant 0 : i32
    %c0_i32_1 = arith.constant 0 : i32
    return %c0_i32, %c0_i32_0 : i32, i32
  }
  func.func @transform_24(%arg0: i32) -> (i32, i32) {
    %c0_i32 = arith.constant 0 : i32
    %c0_i32_0 = arith.constant 0 : i32
    %c0_i32_1 = arith.constant 0 : i32
    return %c0_i32, %c0_i32_0 : i32, i32
  }
  func.func @transform_25(%arg0: i32) -> (i32, i32) {
    %c0_i32 = arith.constant 0 : i32
    %c0_i32_0 = arith.constant 0 : i32
    %c0_i32_1 = arith.constant 0 : i32
    return %c0_i32, %c0_i32_0 : i32, i32
  }
  func.func @transform_26(%arg0: i32) -> (i32, i32) {
    %c0_i32 = arith.constant 0 : i32
    %c0_i32_0 = arith.constant 0 : i32
    %c0_i32_1 = arith.constant 0 : i32
    return %c0_i32, %c0_i32_0 : i32, i32
  }
  func.func @transform_27(%arg0: i32) -> (i32, i32) {
    %c0_i32 = arith.constant 0 : i32
    %c0_i32_0 = arith.constant 0 : i32
    %c0_i32_1 = arith.constant 0 : i32
    return %c0_i32, %c0_i32_0 : i32, i32
  }
  func.func @transform_28(%arg0: i32) -> (i32, i32) {
    %c0_i32 = arith.constant 0 : i32
    %c0_i32_0 = arith.constant 0 : i32
    %c0_i32_1 = arith.constant 0 : i32
    return %c0_i32, %c0_i32_0 : i32, i32
  }
}

</mosaic_0001>

<bundles_post_ra>
// kernel: hybrid_forward.4
= control target key start
LH: loop header
LB: loop body
LE: loop exit
PB: predicated region body
PF: predicated region fallthrough
CT: control target
= control target key end

     0   :  { %s1554_s12 = smov 0   ;;  %s1556_s13 = smov 0   ;;  %s1947_s0 = inlined_call_operand.vmem [shape: bf16[2,48,4096], index: 0, kind: input, shape index: {}]   ;;  %s1948_s1 = inlined_call_operand.vmem [shape: bf16[32,48], index: 1, kind: input, shape index: {}]   ;;  %s1949_s2 = inlined_call_operand.vmem [shape: f32[8,1], index: 2, kind: input, shape index: {}]   ;;  %s1950_s3 = inlined_call_operand.vmem [shape: bf16[2,6,4096], index: 3, kind: output, shape index: {}]  }
   0x1   :  { %s1558_s14 = smov 0   ;;  %s1560_s15 = smov 0  }
   0x2   :  { %s1562_s16 = smov 0   ;;  %s1564_s17 = smov 0  }
   0x3   :  { %s1566_s18 = smov 0  }
   0x4 LB: > { %s22_s19 = sadd.s32 1, %s1523_s16  ;;  %s25_s20 = sadd.s32 1, %s1527_s17  ;;  %s1531_s18 = sphi %s1566_s18, %s13_s18   ;;  %s1527_s17 = sphi %s1564_s17, %s1956_s17   ;;  %s1523_s16 = sphi %s1562_s16, %s1955_s16   ;;  %s1519_s15 = sphi %s1560_s15, %s1954_s15   ;;  %s1515_s14 = sphi %s1558_s14, %s1953_s14   ;;  %s1511_s13 = sphi %s1556_s13, %s1952_s13   ;;  %s1507_s12 = sphi %s1554_s12, %s1951_s12  }
   0x5   : > { %p23_p0 = scmp.ge.s32.totalorder %s22_s19, 2  ;;  %p41_p1 = scmp.ne.s32.totalorder %s1511_s13, %s1507_s12 }
   0x6   : > { %p42_p2 = scmp.eq.s32.totalorder %s1531_s18, 0  ;;  %s34_s24 = sadd.s32 1, %s1511_s13 }
   0x7   : > { %s1958_s19 = smov (%p23_p0, %s22_s19), 0  ;;  %s1960_s20 = smov (!%p23_p0, %s25_s20), %s1527_s17 }
   0x8   : > { %p43_p3 = por %p42_p2, %p41_p1  ;;  %p27_p4 = scmp.ge.s32.totalorder %s1960_s20, 2 }
   0x9   : > { %s30_s21 = ssub.s32 %s1523_s16, %s1958_s19  ;;  %p1125_p6 = scmp.ge.s32.totalorder %s1531_s18, 4 }
   0xa   : > { %s1962_s20 = smov (%p27_p4, %s1960_s20), 0 }
   0xb   : > { %s29_s22 = ssub.s32 %s1527_s17, %s1962_s20  ;;  %143 = sbr.rel (%p1125_p6) target bundleno = 72 (0x48), region = 24 }
   0xc   : > { %s31_s23 = sor.u32 %s30_s21, %s29_s22 }
   0xd   : > { %p32_p5 = scmp.eq.s32.totalorder %s31_s23, 0 }
   0xf   : > { %s1605_s25 = scalar_select %p32_p5, %s1511_s13, %s34_s24  }
  0x10   : > { %146 = sbr.rel (!%p43_p3) target bundleno = 72 (0x48), region = 28  ;;  %s148_s26 = sand.u32 (%p43_p3), 1, %s1511_s13  }
  0x11   : > { %s1416_s27 = smul.u32 (%p43_p3), 384, %s148_s26  ;;  %s1126_s28 = sshll.u32 (%p43_p3), %s1523_s16, 4 }
  0x12   : > { %s1417_s29 = smul.u32 (%p43_p3), 192, %s1527_s17 }
  0x13   : > { %s1619_s8 = scalar_lea.vmem (%p43_p3), [#allocation2], %s1416_s27 }
  0x14   : > { %s153_s30 = sadd.s32 (%p43_p3), %s1417_s29, %s1126_s28 }
  0x15   : > { %s1127_s4 = sshll.u32 %s153_s30, 2 }
  0x16   : > { %s1614_s7 = scalar_lea.vmem %s1947_s0, %s1127_s4 }
  0x17   : > { %v168_v0 = vld [vmem:[%s1614_s7] sm:$0xff]  ;;  %v170_v1 = vld [vmem:[%s1614_s7 + $0x8] sm:$0xff]  ;;  %v172_v2 = vld [vmem:[%s1614_s7 + $0x10] sm:$0xff] }
  0x18   : > { %169 = vst [vmem:[%s1619_s8] sm:$0xff] %v168_v0  ;;  %v174_v3 = vld [vmem:[%s1614_s7 + $0x18] sm:$0xff]  ;;  %v176_v4 = vld [vmem:[%s1614_s7 + $0x20] sm:$0xff]  ;;  %v178_v5 = vld [vmem:[%s1614_s7 + $0x28] sm:$0xff] }
  0x19   : > { %171 = vst [vmem:[%s1619_s8 + $0x8] sm:$0xff] %v170_v1  ;;  %v180_v6 = vld [vmem:[%s1614_s7 + $0x30] sm:$0xff]  ;;  %v182_v7 = vld [vmem:[%s1614_s7 + $0x38] sm:$0xff]  ;;  %v184_v8 = vld [vmem:[%s1614_s7 + $0x80] sm:$0xff] }
  0x1a   : > { %173 = vst [vmem:[%s1619_s8 + $0x10] sm:$0xff] %v172_v2  ;;  %v186_v9 = vld [vmem:[%s1614_s7 + $0x88] sm:$0xff]  ;;  %v188_v10 = vld [vmem:[%s1614_s7 + $0x90] sm:$0xff]  ;;  %v190_v11 = vld [vmem:[%s1614_s7 + $0x98] sm:$0xff] }
  0x1b   : > { %175 = vst [vmem:[%s1619_s8 + $0x18] sm:$0xff] %v174_v3  ;;  %v192_v12 = vld [vmem:[%s1614_s7 + $0xa0] sm:$0xff]  ;;  %v194_v13 = vld [vmem:[%s1614_s7 + $0xa8] sm:$0xff]  ;;  %v196_v14 = vld [vmem:[%s1614_s7 + $0xb0] sm:$0xff] }
  0x1c   : > { %177 = vst [vmem:[%s1619_s8 + $0x20] sm:$0xff] %v176_v4  ;;  %v198_v15 = vld [vmem:[%s1614_s7 + $0xb8] sm:$0xff]  ;;  %v200_v16 = vld [vmem:[%s1614_s7 + $0x100] sm:$0xff]  ;;  %v202_v17 = vld [vmem:[%s1614_s7 + $0x108] sm:$0xff] }
  0x1d   : > { %179 = vst [vmem:[%s1619_s8 + $0x28] sm:$0xff] %v178_v5  ;;  %v204_v18 = vld [vmem:[%s1614_s7 + $0x110] sm:$0xff]  ;;  %v206_v19 = vld [vmem:[%s1614_s7 + $0x118] sm:$0xff]  ;;  %v208_v20 = vld [vmem:[%s1614_s7 + $0x120] sm:$0xff] }
  0x1e   : > { %181 = vst [vmem:[%s1619_s8 + $0x30] sm:$0xff] %v180_v6  ;;  %v210_v21 = vld [vmem:[%s1614_s7 + $0x128] sm:$0xff]  ;;  %v212_v22 = vld [vmem:[%s1614_s7 + $0x130] sm:$0xff]  ;;  %v214_v23 = vld [vmem:[%s1614_s7 + $0x138] sm:$0xff] }
  0x1f   : > { %183 = vst [vmem:[%s1619_s8 + $0x38] sm:$0xff] %v182_v7  ;;  %v216_v24 = vld [vmem:[%s1614_s7 + $0x180] sm:$0xff]  ;;  %v218_v25 = vld [vmem:[%s1614_s7 + $0x188] sm:$0xff]  ;;  %v220_v26 = vld [vmem:[%s1614_s7 + $0x190] sm:$0xff] }
  0x20   : > { %185 = vst [vmem:[%s1619_s8 + $0x40] sm:$0xff] %v184_v8  ;;  %v222_v27 = vld [vmem:[%s1614_s7 + $0x198] sm:$0xff]  ;;  %v224_v28 = vld [vmem:[%s1614_s7 + $0x1a0] sm:$0xff]  ;;  %v226_v29 = vld [vmem:[%s1614_s7 + $0x1a8] sm:$0xff] }
  0x21   : > { %187 = vst [vmem:[%s1619_s8 + $0x48] sm:$0xff] %v186_v9  ;;  %v228_v30 = vld [vmem:[%s1614_s7 + $0x1b0] sm:$0xff]  ;;  %v230_v31 = vld [vmem:[%s1614_s7 + $0x1b8] sm:$0xff]  ;;  %v232_v32 = vld [vmem:[%s1614_s7 + $0x200] sm:$0xff] }
  0x22   : > { %189 = vst [vmem:[%s1619_s8 + $0x50] sm:$0xff] %v188_v10  ;;  %v234_v33 = vld [vmem:[%s1614_s7 + $0x208] sm:$0xff]  ;;  %v236_v34 = vld [vmem:[%s1614_s7 + $0x210] sm:$0xff]  ;;  %v238_v35 = vld [vmem:[%s1614_s7 + $0x218] sm:$0xff] }
  0x23   : > { %191 = vst [vmem:[%s1619_s8 + $0x58] sm:$0xff] %v190_v11  ;;  %v240_v36 = vld [vmem:[%s1614_s7 + $0x220] sm:$0xff]  ;;  %v242_v37 = vld [vmem:[%s1614_s7 + $0x228] sm:$0xff]  ;;  %v244_v38 = vld [vmem:[%s1614_s7 + $0x230] sm:$0xff] }
  0x24   : > { %193 = vst [vmem:[%s1619_s8 + $0x60] sm:$0xff] %v192_v12  ;;  %v246_v39 = vld [vmem:[%s1614_s7 + $0x238] sm:$0xff]  ;;  %v248_v40 = vld [vmem:[%s1614_s7 + $0x280] sm:$0xff]  ;;  %v250_v41 = vld [vmem:[%s1614_s7 + $0x288] sm:$0xff] }
  0x25   : > { %195 = vst [vmem:[%s1619_s8 + $0x68] sm:$0xff] %v194_v13  ;;  %v252_v42 = vld [vmem:[%s1614_s7 + $0x290] sm:$0xff]  ;;  %v254_v43 = vld [vmem:[%s1614_s7 + $0x298] sm:$0xff]  ;;  %v256_v44 = vld [vmem:[%s1614_s7 + $0x2a0] sm:$0xff] }
  0x26   : > { %197 = vst [vmem:[%s1619_s8 + $0x70] sm:$0xff] %v196_v14  ;;  %v258_v45 = vld [vmem:[%s1614_s7 + $0x2a8] sm:$0xff]  ;;  %v260_v46 = vld [vmem:[%s1614_s7 + $0x2b0] sm:$0xff]  ;;  %v262_v47 = vld [vmem:[%s1614_s7 + $0x2b8] sm:$0xff] }
  0x27   : > { %199 = vst [vmem:[%s1619_s8 + $0x78] sm:$0xff] %v198_v15 }
  0x28   : > { %201 = vst [vmem:[%s1619_s8 + $0x80] sm:$0xff] %v200_v16 }
  0x29   : > { %203 = vst [vmem:[%s1619_s8 + $0x88] sm:$0xff] %v202_v17 }
  0x2a   : > { %205 = vst [vmem:[%s1619_s8 + $0x90] sm:$0xff] %v204_v18 }
  0x2b   : > { %207 = vst [vmem:[%s1619_s8 + $0x98] sm:$0xff] %v206_v19 }
  0x2c   : > { %209 = vst [vmem:[%s1619_s8 + $0xa0] sm:$0xff] %v208_v20 }
  0x2d   : > { %211 = vst [vmem:[%s1619_s8 + $0xa8] sm:$0xff] %v210_v21 }
  0x2e   : > { %213 = vst [vmem:[%s1619_s8 + $0xb0] sm:$0xff] %v212_v22 }
  0x2f   : > { %215 = vst [vmem:[%s1619_s8 + $0xb8] sm:$0xff] %v214_v23 }
  0x30   : > { %217 = vst [vmem:[%s1619_s8 + $0xc0] sm:$0xff] %v216_v24 }
  0x31   : > { %219 = vst [vmem:[%s1619_s8 + $0xc8] sm:$0xff] %v218_v25 }
  0x32   : > { %221 = vst [vmem:[%s1619_s8 + $0xd0] sm:$0xff] %v220_v26 }
  0x33   : > { %223 = vst [vmem:[%s1619_s8 + $0xd8] sm:$0xff] %v222_v27 }
  0x34   : > { %225 = vst [vmem:[%s1619_s8 + $0xe0] sm:$0xff] %v224_v28 }
  0x35   : > { %227 = vst [vmem:[%s1619_s8 + $0xe8] sm:$0xff] %v226_v29 }
  0x36   : > { %229 = vst [vmem:[%s1619_s8 + $0xf0] sm:$0xff] %v228_v30 }
  0x37   : > { %231 = vst [vmem:[%s1619_s8 + $0xf8] sm:$0xff] %v230_v31 }
  0x38   : > { %233 = vst [vmem:[%s1619_s8 + $0x100] sm:$0xff] %v232_v32 }
  0x39   : > { %235 = vst [vmem:[%s1619_s8 + $0x108] sm:$0xff] %v234_v33 }
  0x3a   : > { %237 = vst [vmem:[%s1619_s8 + $0x110] sm:$0xff] %v236_v34 }
  0x3b   : > { %239 = vst [vmem:[%s1619_s8 + $0x118] sm:$0xff] %v238_v35 }
  0x3c   : > { %241 = vst [vmem:[%s1619_s8 + $0x120] sm:$0xff] %v240_v36 }
  0x3d   : > { %243 = vst [vmem:[%s1619_s8 + $0x128] sm:$0xff] %v242_v37 }
  0x3e   : > { %245 = vst [vmem:[%s1619_s8 + $0x130] sm:$0xff] %v244_v38 }
  0x3f   : > { %247 = vst [vmem:[%s1619_s8 + $0x138] sm:$0xff] %v246_v39 }
  0x40   : > { %249 = vst [vmem:[%s1619_s8 + $0x140] sm:$0xff] %v248_v40 }
  0x41   : > { %251 = vst [vmem:[%s1619_s8 + $0x148] sm:$0xff] %v250_v41 }
  0x42   : > { %253 = vst [vmem:[%s1619_s8 + $0x150] sm:$0xff] %v252_v42 }
  0x43   : > { %255 = vst [vmem:[%s1619_s8 + $0x158] sm:$0xff] %v254_v43 }
  0x44   : > { %257 = vst [vmem:[%s1619_s8 + $0x160] sm:$0xff] %v256_v44 }
  0x45   : > { %259 = vst [vmem:[%s1619_s8 + $0x168] sm:$0xff] %v258_v45 }
  0x46   : > { %261 = vst [vmem:[%s1619_s8 + $0x170] sm:$0xff] %v260_v46 }
  0x47   : > { %263 = vst [vmem:[%s1619_s8 + $0x178] sm:$0xff] %v262_v47 }
  0x48 PF: > { %p1128_p7 = scmp.ge.s32.totalorder %s1531_s18, 1  ;;  %p268_p8 = scmp.lt.s32.totalorder %s1531_s18, 5 }
  0x4a   : > { %p269_p9 = pnand %p1128_p7, %p268_p8 }
  0x4b   : > { %s275_s9 = sand.u32 (!%p269_p9), 1, %s1507_s12   ;;  %s1129_s27 = sshll.u32 (!%p269_p9), %s1515_s14, 4 }
  0x4c   : > { %272 = sbr.rel (%p269_p9) target bundleno = 359 (0x167), region = 51  ;;  %p304_p10 = scmp.lt.s32.totalorder (!%p269_p9), %s1519_s15, 1 }
  0x4d   : > { %s1418_s10 = smul.u32 (!%p269_p9), 384, %s275_s9  ;;  %p306_p11 = scmp.lt.s32.totalorder (!%p269_p9), %s1129_s27, 31 }
  0x4f   : > { %s1717_s11 = scalar_lea.vmem (!%p269_p9), [#allocation2], %s1418_s10 }
  0x51   : > { %v1270_v48 = vld [vmem:[%s1717_s11 + $0x100] sm:$0xf]  ;;  %v1400_v50 = vld [vmem:[%s1717_s11 + $0x104] sm:$0xf]  ;;  %v1278_v53 = vld [vmem:[%s1717_s11 + $0x108] sm:$0xf] }
  0x52   : > { %v1408_v49 = vld [vmem:[%s1717_s11 + $0x13c] sm:$0xf0]  ;;  %v1272_v52 = vld [vmem:[%s1717_s11 + $0x140] sm:$0xf0]  ;;  %v1409_v54 = vld [vmem:[%s1717_s11 + $0x144] sm:$0xf0] }
  0x53   : > { %v1271_v51 = vor.u32 %v1408_v49, %v1270_v48  ;;  %v1275_v55 = vor.u32 %v1400_v50, %v1272_v52  ;;  %v1279_v56 = vor.u32 %v1409_v54, %v1278_v53  ;;  %v1401_v57 = vld [vmem:[%s1717_s11 + $0x10c] sm:$0xf]  ;;  %v1206_v59 = vld [vmem:[%s1717_s11 + $0x80] sm:$0xf]  ;;  %v1384_v62 = vld [vmem:[%s1717_s11 + $0x84] sm:$0xf] }
  0x54   : > { %v1280_v58 = vld [vmem:[%s1717_s11 + $0x148] sm:$0xf0]  ;;  %v1392_v61 = vld [vmem:[%s1717_s11 + $0xbc] sm:$0xf0]  ;;  %v1208_v63 = vld [vmem:[%s1717_s11 + $0xc0] sm:$0xf0] }
  0x55   : > { %628 = vmatpush.bf16.msra.mxu0 %v1271_v51  ;;  %v1283_v60 = vor.u32 %v1401_v57, %v1280_v58  ;;  %vm616_vm0 = vcmask 392192   ;;  %647 = vmatpush.bf16.msra.mxu1 %v1275_v55  ;;  %v1207_v0 = vor.u32 %v1392_v61, %v1206_v59  ;;  %v1211_v1 = vor.u32 %v1384_v62, %v1208_v63  ;;  %v1214_v2 = vld [vmem:[%s1717_s11 + $0x88] sm:$0xf]  ;;  %v1385_v4 = vld [vmem:[%s1717_s11 + $0x8c] sm:$0xf]  ;;  %v1746_v19 = vld [vmem:[%s1948_s1] sm:$0xff] }
  0x56   : > { %666 = vmatpush.bf16.msra.mxu2 %v1279_v56  ;;  %v1393_v3 = vld [vmem:[%s1717_s11 + $0xc4] sm:$0xf0]  ;;  %v1216_v6 = vld [vmem:[%s1717_s11 + $0xc8] sm:$0xf0]  ;;  %v1142_v7 = vld [vmem:[%s1717_s11] sm:$0xf] }
  0x57   : > { %685 = vmatpush.bf16.msra.mxu3 %v1283_v60  ;;  %v1215_v5 = vor.u32 %v1393_v3, %v1214_v2  ;;  %v1376_v8 = vld [vmem:[%s1717_s11 + $0x3c] sm:$0xf0]  ;;  %v1219_v9 = vor.u32 %v1385_v4, %v1216_v6  ;;  %v1368_v10 = vld [vmem:[%s1717_s11 + $0x4] sm:$0xf]  ;;  %v1150_v12 = vld [vmem:[%s1717_s11 + $0x8] sm:$0xf] }
  0x58   : > { %v1144_v11 = vld [vmem:[%s1717_s11 + $0x40] sm:$0xf0]  ;;  %v1143_v13 = vor.u32 %v1376_v8, %v1142_v7  ;;  %v1377_v14 = vld [vmem:[%s1717_s11 + $0x44] sm:$0xf0]  ;;  %v1369_v15 = vld [vmem:[%s1717_s11 + $0xc] sm:$0xf] }
  0x59   : > { %629 = vmatpush.bf16.msra.mxu0 %v1207_v0  ;;  %v1152_v16 = vld [vmem:[%s1717_s11 + $0x48] sm:$0xf0]  ;;  %648 = vmatpush.bf16.msra.mxu1 %v1211_v1  ;;  %v1147_v17 = vor.u32 %v1368_v10, %v1144_v11  ;;  %v1151_v18 = vor.u32 %v1377_v14, %v1150_v12  ;;  %v1294_v20 = vld [vmem:[%s1717_s11 + $0x118] sm:$0xf]  ;;  %v1403_v22 = vld [vmem:[%s1717_s11 + $0x11c] sm:$0xf] }
  0x5a   : > { %667 = vmatpush.bf16.msra.mxu2 %v1215_v5  ;;  %v1411_v21 = vld [vmem:[%s1717_s11 + $0x154] sm:$0xf0]  ;;  %v1155_v23 = vor.u32 %v1369_v15, %v1152_v16  ;;  %v1296_v25 = vld [vmem:[%s1717_s11 + $0x158] sm:$0xf0]  ;;  %v1286_v26 = vld [vmem:[%s1717_s11 + $0x110] sm:$0xf] }
  0x5b   : > { %686 = vmatpush.bf16.msra.mxu3 %v1219_v9  ;;  %v1295_v24 = vor.u32 %v1411_v21, %v1294_v20  ;;  %v1410_v27 = vld [vmem:[%s1717_s11 + $0x14c] sm:$0xf0]  ;;  %v1299_v28 = vor.u32 %v1403_v22, %v1296_v25  ;;  %v1402_v29 = vld [vmem:[%s1717_s11 + $0x114] sm:$0xf]  ;;  %v1230_v31 = vld [vmem:[%s1717_s11 + $0x98] sm:$0xf] }
  0x5c   : > { %v1288_v30 = vld [vmem:[%s1717_s11 + $0x150] sm:$0xf0]  ;;  %v1395_v32 = vld [vmem:[%s1717_s11 + $0xd4] sm:$0xf0]  ;;  %v1387_v33 = vld [vmem:[%s1717_s11 + $0x9c] sm:$0xf]  ;;  %v1287_v35 = vor.u32 %v1410_v27, %v1286_v26 }
  0x5d   : > { %630 = vmatpush.bf16.msra.mxu0 %v1143_v13  ;;  %v1232_v34 = vld [vmem:[%s1717_s11 + $0xd8] sm:$0xf0]  ;;  %649 = vmatpush.bf16.msra.mxu1 %v1147_v17  ;;  %v1222_v36 = vld [vmem:[%s1717_s11 + $0x90] sm:$0xf]  ;;  %v1291_v37 = vor.u32 %v1402_v29, %v1288_v30  ;;  %v1231_v38 = vor.u32 %v1395_v32, %v1230_v31  ;;  %v1386_v40 = vld [vmem:[%s1717_s11 + $0x94] sm:$0xf] }
  0x5e   : > { %668 = vmatpush.bf16.msra.mxu2 %v1151_v18  ;;  %v1394_v39 = vld [vmem:[%s1717_s11 + $0xcc] sm:$0xf0]  ;;  %v1224_v41 = vld [vmem:[%s1717_s11 + $0xd0] sm:$0xf0]  ;;  %v1235_v42 = vor.u32 %v1387_v33, %v1232_v34  ;;  %v1166_v43 = vld [vmem:[%s1717_s11 + $0x18] sm:$0xf] }
  0x5f   : > { %687 = vmatpush.bf16.msra.mxu3 %v1155_v23  ;;  %v1379_v44 = vld [vmem:[%s1717_s11 + $0x54] sm:$0xf0]  ;;  %v1371_v45 = vld [vmem:[%s1717_s11 + $0x1c] sm:$0xf]  ;;  %v1158_v47 = vld [vmem:[%s1717_s11 + $0x10] sm:$0xf]  ;;  %v1223_v49 = vor.u32 %v1394_v39, %v1222_v36  ;;  %v1227_v54 = vor.u32 %v1386_v40, %v1224_v41 }
  0x60   : > { %1332 = vmatmul.msk.bf16.vlgmr.msra.gmra.mxu0 %vm616_vm0, %v1746_v19  ;;  %1334 = vmatmul.msk.bf16.vlgmr.msra.gmra.mxu1 %vm616_vm0, %v1746_v19  ;;  %v1168_v46 = vld [vmem:[%s1717_s11 + $0x58] sm:$0xf0]  ;;  %v1378_v48 = vld [vmem:[%s1717_s11 + $0x4c] sm:$0xf0]  ;;  %v1370_v50 = vld [vmem:[%s1717_s11 + $0x14] sm:$0xf]  ;;  %v1167_v55 = vor.u32 %v1379_v44, %v1166_v43 }
  0x61   : > { %1336 = vmatmul.msk.bf16.vlgmr.msra.gmra.mxu2 %vm616_vm0, %v1746_v19  ;;  %704 = vmatpush.bf16.msrb.mxu0 %v1287_v35  ;;  %v1310_v51 = vld [vmem:[%s1717_s11 + $0x128] sm:$0xf]  ;;  %v1405_v53 = vld [vmem:[%s1717_s11 + $0x12c] sm:$0xf]  ;;  %v1160_v56 = vld [vmem:[%s1717_s11 + $0x50] sm:$0xf0]  ;;  %v1171_v59 = vor.u32 %v1371_v45, %v1168_v46  ;;  %v1159_v5 = vor.u32 %v1378_v48, %v1158_v47 }
  0x62   : > { %742 = vmatpush.bf16.msrb.mxu2 %v1295_v24  ;;  %1338 = vmatmul.msk.bf16.vlgmr.msra.gmra.mxu3 %vm616_vm0, %v1746_v19  ;;  %v1413_v52 = vld [vmem:[%s1717_s11 + $0x164] sm:$0xf0]  ;;  %v1312_v57 = vld [vmem:[%s1717_s11 + $0x168] sm:$0xf0]  ;;  %v975_v58 = vld [vmem:[%s1949_s2] sm:$0xff]  ;;  %v1533_v61 = vmov 0   ;;  %v1163_v8 = vor.u32 %v1370_v50, %v1160_v56 }
  0x63   : > { %761 = vmatpush.bf16.msrb.mxu3 %v1299_v28  ;;  %723 = vmatpush.bf16.msrb.mxu1 %v1291_v37  ;;  %v1311_v60 = vor.u32 %v1413_v52, %v1310_v51  ;;  %v1302_v62 = vld [vmem:[%s1717_s11 + $0x120] sm:$0xf]  ;;  %v1404_v0 = vld [vmem:[%s1717_s11 + $0x124] sm:$0xf]  ;;  %v1315_v1 = vor.u32 %v1405_v53, %v1312_v57  ;;  %v1246_v3 = vld [vmem:[%s1717_s11 + $0xa8] sm:$0xf] }
  0x64   : > { %1476 = vset.pattern.permute.xlu0 %v1533_v61  ;;  %v1412_v63 = vld [vmem:[%s1717_s11 + $0x15c] sm:$0xf0]  ;;  %v1304_v2 = vld [vmem:[%s1717_s11 + $0x160] sm:$0xf0]  ;;  %v1397_v4 = vld [vmem:[%s1717_s11 + $0xe4] sm:$0xf0] }
  0x65   : > { %978 = vperm.xlu0 %1476, %v975_v58   ;;  %705 = vmatpush.bf16.msrb.mxu0 %v1223_v49  ;;  %v1389_v6 = vld [vmem:[%s1717_s11 + $0xac] sm:$0xf]  ;;  %v1303_v9 = vor.u32 %v1412_v63, %v1302_v62  ;;  %v1307_v10 = vor.u32 %v1404_v0, %v1304_v2  ;;  %v1247_v11 = vor.u32 %v1397_v4, %v1246_v3  ;;  %v1238_v14 = vld [vmem:[%s1717_s11 + $0xa0] sm:$0xf]  ;;  %v1388_v16 = vld [vmem:[%s1717_s11 + $0xa4] sm:$0xf] }
  0x66   : > { %743 = vmatpush.bf16.msrb.mxu2 %v1231_v38  ;;  %v1248_v7 = vld [vmem:[%s1717_s11 + $0xe8] sm:$0xf0]  ;;  %v1396_v15 = vld [vmem:[%s1717_s11 + $0xdc] sm:$0xf0]  ;;  %v1240_v18 = vld [vmem:[%s1717_s11 + $0xe0] sm:$0xf0] }
  0x67   : > { %762 = vmatpush.bf16.msrb.mxu3 %v1235_v42  ;;  %724 = vmatpush.bf16.msrb.mxu1 %v1227_v54  ;;  %v1251_v12 = vor.u32 %v1389_v6, %v1248_v7  ;;  %v1798_v13 = vld [vmem:[%s1948_s1 + $0x8] sm:$0xff]  ;;  %v1239_v17 = vor.u32 %v1396_v15, %v1238_v14  ;;  %v1243_v22 = vor.u32 %v1388_v16, %v1240_v18  ;;  %v1174_v26 = vld [vmem:[%s1717_s11 + $0x20] sm:$0xf]  ;;  %v1372_v29 = vld [vmem:[%s1717_s11 + $0x24] sm:$0xf]  ;;  %s1964_s15 = smov (!%p304_p10, %s1519_s15), 1 }
  0x68   : > { %v1182_v20 = vld [vmem:[%s1717_s11 + $0x28] sm:$0xf]  ;;  %v1373_v24 = vld [vmem:[%s1717_s11 + $0x2c] sm:$0xf]  ;;  %v1380_v28 = vld [vmem:[%s1717_s11 + $0x5c] sm:$0xf0] }
  0x69   : > { %706 = vmatpush.bf16.msrb.mxu0 %v1159_v5  ;;  %v1381_v21 = vld [vmem:[%s1717_s11 + $0x64] sm:$0xf0]  ;;  %v1184_v25 = vld [vmem:[%s1717_s11 + $0x68] sm:$0xf0]  ;;  %v1176_v30 = vld [vmem:[%s1717_s11 + $0x60] sm:$0xf0]  ;;  %v1175_v31 = vor.u32 %v1380_v28, %v1174_v26 }
  0x6a   : > { %744 = vmatpush.bf16.msrb.mxu2 %v1167_v55  ;;  %v1183_v23 = vor.u32 %v1381_v21, %v1182_v20  ;;  %v1187_v27 = vor.u32 %v1373_v24, %v1184_v25  ;;  %v1179_v32 = vor.u32 %v1372_v29, %v1176_v30  ;;  %v1326_v33 = vld [vmem:[%s1717_s11 + $0x138] sm:$0xf]  ;;  %v1407_v35 = vld [vmem:[%s1717_s11 + $0x13c] sm:$0xf]  ;;  %v1318_v38 = vld [vmem:[%s1717_s11 + $0x130] sm:$0xf] }
  0x6b   : > { %763 = vmatpush.bf16.msrb.mxu3 %v1171_v59  ;;  %725 = vmatpush.bf16.msrb.mxu1 %v1163_v8  ;;  %v1415_v34 = vld [vmem:[%s1717_s11 + $0x174] sm:$0xf0]  ;;  %v1328_v37 = vld [vmem:[%s1717_s11 + $0x178] sm:$0xf0]  ;;  %v1414_v39 = vld [vmem:[%s1717_s11 + $0x16c] sm:$0xf0] }
  0x6c   : > { %v1327_v36 = vor.u32 %v1415_v34, %v1326_v33  ;;  %v1331_v40 = vor.u32 %v1407_v35, %v1328_v37  ;;  %v1319_v41 = vor.u32 %v1414_v39, %v1318_v38  ;;  %v1406_v42 = vld [vmem:[%s1717_s11 + $0x134] sm:$0xf]  ;;  %v1262_v44 = vld [vmem:[%s1717_s11 + $0xb8] sm:$0xf]  ;;  %v1391_v47 = vld [vmem:[%s1717_s11 + $0xbc] sm:$0xf] }
  0x6d   : > { %780 = vmatpush.bf16.msra.mxu0 %v1303_v9  ;;  %v1320_v43 = vld [vmem:[%s1717_s11 + $0x170] sm:$0xf0]  ;;  %v1399_v46 = vld [vmem:[%s1717_s11 + $0xf4] sm:$0xf0]  ;;  %v1264_v48 = vld [vmem:[%s1717_s11 + $0xf8] sm:$0xf0] }
  0x6e   : > { %818 = vmatpush.bf16.msra.mxu2 %v1311_v60  ;;  %v1323_v45 = vor.u32 %v1406_v42, %v1320_v43  ;;  %v1263_v49 = vor.u32 %v1399_v46, %v1262_v44  ;;  %v1267_v50 = vor.u32 %v1391_v47, %v1264_v48  ;;  %v1254_v51 = vld [vmem:[%s1717_s11 + $0xb0] sm:$0xf]  ;;  %v1390_v53 = vld [vmem:[%s1717_s11 + $0xb4] sm:$0xf]  ;;  %v1198_v56 = vld [vmem:[%s1717_s11 + $0x38] sm:$0xf] }
  0x6f   : > { %837 = vmatpush.bf16.msra.mxu3 %v1315_v1  ;;  %799 = vmatpush.bf16.msra.mxu1 %v1307_v10  ;;  %v1398_v52 = vld [vmem:[%s1717_s11 + $0xec] sm:$0xf0]  ;;  %v1256_v55 = vld [vmem:[%s1717_s11 + $0xf0] sm:$0xf0]  ;;  %v1383_v57 = vld [vmem:[%s1717_s11 + $0x74] sm:$0xf0] }
  0x70   : > { %1333 = vmatmul.msk.bf16.gmra.mxu0 %vm616_vm0, %v1798_v13  ;;  %1335 = vmatmul.msk.bf16.gmra.mxu1 %vm616_vm0, %v1798_v13  ;;  %v1255_v54 = vor.u32 %v1398_v52, %v1254_v51  ;;  %v1259_v58 = vor.u32 %v1390_v53, %v1256_v55  ;;  %v1199_v59 = vor.u32 %v1383_v57, %v1198_v56  ;;  %v1375_v60 = vld [vmem:[%s1717_s11 + $0x3c] sm:$0xf]  ;;  %v1190_v62 = vld [vmem:[%s1717_s11 + $0x30] sm:$0xf]  ;;  %v1374_v1 = vld [vmem:[%s1717_s11 + $0x34] sm:$0xf] }
  0x71   : > { %1337 = vmatmul.msk.bf16.gmra.mxu2 %vm616_vm0, %v1798_v13  ;;  %781 = vmatpush.bf16.msra.mxu0 %v1239_v17  ;;  %v1200_v61 = vld [vmem:[%s1717_s11 + $0x78] sm:$0xf0]  ;;  %v1382_v0 = vld [vmem:[%s1717_s11 + $0x6c] sm:$0xf0]  ;;  %v1192_v2 = vld [vmem:[%s1717_s11 + $0x70] sm:$0xf0] }
  0x72   : > { %819 = vmatpush.bf16.msra.mxu2 %v1247_v11  ;;  %1339 = vmatmul.msk.bf16.gmra.mxu3 %vm616_vm0, %v1798_v13  ;;  %v1203_v63 = vor.u32 %v1375_v60, %v1200_v61  ;;  %v1191_v3 = vor.u32 %v1382_v0, %v1190_v62  ;;  %v1195_v4 = vor.u32 %v1374_v1, %v1192_v2  ;;  %s1966_s27 = smov (!%p306_p11, %s1129_s27), 31  ;;  %s1130_s28 = sshll.u32 %s1964_s15, 5 }
  0x73   : > { %838 = vmatpush.bf16.msra.mxu3 %v1251_v12  ;;  %800 = vmatpush.bf16.msra.mxu1 %v1243_v22  ;;  %s309_s14 = sadd.s32 %s1130_s28, %s1966_s27 }
  0x74   : > { %s1131_s29 = sshll.u32 %s309_s14, 2 }
  0x75   : > { %782 = vmatpush.bf16.msra.mxu0 %v1175_v31  ;;  %s1902_s4 = scalar_lea.vmem %s1950_s3, %s1131_s29 }
  0x76   : > { %820 = vmatpush.bf16.msra.mxu2 %v1183_v23 }
  0x77   : > { %839 = vmatpush.bf16.msra.mxu3 %v1187_v27  ;;  %801 = vmatpush.bf16.msra.mxu1 %v1179_v32 }
  0x80   : > { %1340 = vmatmul.msk.bf16.vlgmr.msrb.gmra.mxu0 %vm616_vm0, %v1746_v19  ;;  %1342 = vmatmul.msk.bf16.vlgmr.msrb.gmra.mxu1 %vm616_vm0, %v1746_v19 }
  0x81   : > { %1344 = vmatmul.msk.bf16.vlgmr.msrb.gmra.mxu2 %vm616_vm0, %v1746_v19  ;;  %856 = vmatpush.bf16.msrb.mxu0 %v1319_v41 }
  0x82   : > { %1346 = vmatmul.msk.bf16.vlgmr.msrb.gmra.mxu3 %vm616_vm0, %v1746_v19  ;;  %894 = vmatpush.bf16.msrb.mxu2 %v1327_v36 }
  0x83   : > { %913 = vmatpush.bf16.msrb.mxu3 %v1331_v40  ;;  %875 = vmatpush.bf16.msrb.mxu1 %v1323_v45 }
  0x85   : > { %857 = vmatpush.bf16.msrb.mxu0 %v1255_v54 }
  0x86   : > { %895 = vmatpush.bf16.msrb.mxu2 %v1263_v49 }
  0x87   : > { %914 = vmatpush.bf16.msrb.mxu3 %v1267_v50  ;;  %876 = vmatpush.bf16.msrb.mxu1 %v1259_v58 }
  0x89   : > { %858 = vmatpush.bf16.msrb.mxu0 %v1191_v3 }
  0x8a   : > { %896 = vmatpush.bf16.msrb.mxu2 %v1199_v59 }
  0x8b   : > { %915 = vmatpush.bf16.msrb.mxu3 %v1203_v63  ;;  %877 = vmatpush.bf16.msrb.mxu1 %v1195_v4 }
  0x90   : > { %1341 = vmatmul.msk.bf16.gmra.mxu0 %vm616_vm0, %v1798_v13  ;;  %1343 = vmatmul.msk.bf16.gmra.mxu1 %vm616_vm0, %v1798_v13 }
  0x91   : > { %1345 = vmatmul.msk.bf16.gmra.mxu2 %vm616_vm0, %v1798_v13 }
  0x92   : > { %1347 = vmatmul.msk.bf16.gmra.mxu3 %vm616_vm0, %v1798_v13 }
  0xa0   : > { %1348 = vmatmul.msk.bf16.vlgmr.msra.gmra.mxu0 %vm616_vm0, %v1746_v19  ;;  %1350 = vmatmul.msk.bf16.vlgmr.msra.gmra.mxu1 %vm616_vm0, %v1746_v19 }
  0xa1   : > { %1352 = vmatmul.msk.bf16.vlgmr.msra.gmra.mxu2 %vm616_vm0, %v1746_v19 }
  0xa2   : > { %1354 = vmatmul.msk.bf16.vlgmr.msra.gmra.mxu3 %vm616_vm0, %v1746_v19 }
  0xb0   : > { %1349 = vmatmul.msk.bf16.gmra.mxu0 %vm616_vm0, %v1798_v13  ;;  %1351 = vmatmul.msk.bf16.gmra.mxu1 %vm616_vm0, %v1798_v13 }
  0xb1   : > { %1353 = vmatmul.msk.bf16.gmra.mxu2 %vm616_vm0, %v1798_v13 }
  0xb2   : > { %1355 = vmatmul.msk.bf16.gmra.mxu3 %vm616_vm0, %v1798_v13 }
  0xc0   : > { %1356 = vmatmul.msk.bf16.vlgmr.msrb.gmra.mxu0 %vm616_vm0, %v1746_v19  ;;  %1358 = vmatmul.msk.bf16.vlgmr.msrb.gmra.mxu1 %vm616_vm0, %v1746_v19 }
  0xc1   : > { %1360 = vmatmul.msk.bf16.vlgmr.msrb.gmra.mxu2 %vm616_vm0, %v1746_v19 }
  0xc2   : > { %1362 = vmatmul.msk.bf16.vlgmr.msrb.gmra.mxu3 %vm616_vm0, %v1746_v19 }
  0xd0   : > { %1357 = vmatmul.msk.bf16.gmra.mxu0 %vm616_vm0, %v1798_v13  ;;  %1359 = vmatmul.msk.bf16.gmra.mxu1 %vm616_vm0, %v1798_v13 }
  0xd1   : > { %1361 = vmatmul.msk.bf16.gmra.mxu2 %vm616_vm0, %v1798_v13 }
  0xd2   : > { %1363 = vmatmul.msk.bf16.gmra.mxu3 %vm616_vm0, %v1798_v13 }
  0xd7   : > { %v1895_v18 = vpop.permute.xlu0 %978 }
  0xdd   : > { %v632_v5 = vpop.f32.mrf.mxu0  ;;  %v651_v6 = vpop.f32.mrf.mxu1 }
  0xe4   : > { %v670_v7 = vpop.f32.mrf.mxu2 }
  0xe5   : > { %v689_v8 = vpop.f32.mrf.mxu3  ;;  %v634_v9 = vpop.f32.mrf.mxu0 }
  0xe6   : > { %v653_v10 = vpop.f32.mrf.mxu1  ;;  %v927_v15 = vmax.f32 %v632_v5, %v634_v9 }
  0xe7   : > { %v928_v16 = vmax.f32 %v651_v6, %v653_v10 }
  0xec   : > { %v672_v19 = vpop.f32.mrf.mxu2 }
  0xed   : > { %v691_v11 = vpop.f32.mrf.mxu3  ;;  %v637_v12 = vpop.f32.mrf.mxu0  ;;  %v929_v27 = vmax.f32 %v670_v7, %v672_v19 }
  0xee   : > { %v656_v14 = vpop.f32.mrf.mxu1  ;;  %v943_v17 = vmax.f32 %v927_v15, %v637_v12  ;;  %v930_v29 = vmax.f32 %v689_v8, %v691_v11 }
  0xef   : > { %v944_v20 = vmax.f32 %v928_v16, %v656_v14 }
  0xf4   : > { %v675_v13 = vpop.f32.mrf.mxu2 }
  0xf5   : > { %v694_v21 = vpop.f32.mrf.mxu3  ;;  %v639_v22 = vpop.f32.mrf.mxu0  ;;  %v945_v31 = vmax.f32 %v929_v27, %v675_v13 }
  0xf6   : > { %v959_v23 = vmax.f32 %v943_v17, %v639_v22  ;;  %v658_v24 = vpop.f32.mrf.mxu1  ;;  %v946_v33 = vmax.f32 %v930_v29, %v694_v21 }
  0xf7   : > { %v960_v25 = vmax.f32 %v944_v20, %v658_v24 }
  0xf8   : > { %v981_v26 = vadd.f32 %v1895_v18, %v959_v23 }
  0xf9   : > { %v982_v28 = vadd.f32 %v1895_v18, %v960_v25 }
  0xfa   : > { %v997_v30 = vmax.f32 %v981_v26, 0.0 }
  0xfb   : > { %v998_v32 = vmax.f32 %v982_v28, 0.0 }
  0xfc   : > { %v677_v34 = vpop.f32.mrf.mxu2 }
  0xfd   : > { %v961_v35 = vmax.f32 %v945_v31, %v677_v34  ;;  %v696_v36 = vpop.f32.mrf.mxu3  ;;  %v1013_v37 = vpack.c.bf16 %v998_v32, %v997_v30  ;;  %v708_v38 = vpop.f32.mrf.mxu0 }
  0xfe   : > { %v962_v39 = vmax.f32 %v946_v33, %v696_v36  ;;  %v727_v40 = vpop.f32.mrf.mxu1 }
  0xff   : > { %v983_v41 = vadd.f32 %v1895_v18, %v961_v35  ;;  %1021 = vst [vmem:[%s1902_s4] sm:$0x77] %v1013_v37 }
 0x100   : > { %v984_v42 = vadd.f32 %v1895_v18, %v962_v39 }
 0x101   : > { %v999_v43 = vmax.f32 %v983_v41, 0.0 }
 0x102   : > { %v1000_v44 = vmax.f32 %v984_v42, 0.0 }
 0x104   : > { %v1014_v45 = vpack.c.bf16 %v1000_v44, %v999_v43  ;;  %v746_v46 = vpop.f32.mrf.mxu2 }
 0x105   : > { %v765_v47 = vpop.f32.mrf.mxu3  ;;  %v710_v48 = vpop.f32.mrf.mxu0 }
 0x106   : > { %1022 = vst [vmem:[%s1902_s4 + $0x8] sm:$0x77] %v1014_v45  ;;  %v729_v49 = vpop.f32.mrf.mxu1  ;;  %v931_v54 = vmax.f32 %v708_v38, %v710_v48 }
 0x107   : > { %v932_v55 = vmax.f32 %v727_v40, %v729_v49 }
 0x10c   : > { %v748_v50 = vpop.f32.mrf.mxu2 }
 0x10d   : > { %v767_v51 = vpop.f32.mrf.mxu3  ;;  %v713_v52 = vpop.f32.mrf.mxu0  ;;  %v933_v1 = vmax.f32 %v746_v46, %v748_v50 }
 0x10e   : > { %v732_v53 = vpop.f32.mrf.mxu1  ;;  %v947_v56 = vmax.f32 %v931_v54, %v713_v52  ;;  %v934_v3 = vmax.f32 %v765_v47, %v767_v51 }
 0x10f   : > { %v948_v58 = vmax.f32 %v932_v55, %v732_v53 }
 0x114   : > { %v751_v57 = vpop.f32.mrf.mxu2 }
 0x115   : > { %v770_v59 = vpop.f32.mrf.mxu3  ;;  %v715_v60 = vpop.f32.mrf.mxu0  ;;  %v949_v5 = vmax.f32 %v933_v1, %v751_v57 }
 0x116   : > { %v963_v61 = vmax.f32 %v947_v56, %v715_v60  ;;  %v734_v62 = vpop.f32.mrf.mxu1  ;;  %v950_v7 = vmax.f32 %v934_v3, %v770_v59 }
 0x117   : > { %v964_v63 = vmax.f32 %v948_v58, %v734_v62 }
 0x118   : > { %v985_v0 = vadd.f32 %v1895_v18, %v963_v61 }
 0x119   : > { %v986_v2 = vadd.f32 %v1895_v18, %v964_v63 }
 0x11a   : > { %v1001_v4 = vmax.f32 %v985_v0, 0.0 }
 0x11b   : > { %v1002_v6 = vmax.f32 %v986_v2, 0.0 }
 0x11c   : > { %v753_v8 = vpop.f32.mrf.mxu2 }
 0x11d   : > { %v1015_v9 = vpack.c.bf16 %v1002_v6, %v1001_v4  ;;  %v965_v10 = vmax.f32 %v949_v5, %v753_v8  ;;  %v772_v19 = vpop.f32.mrf.mxu3  ;;  %v784_v11 = vpop.f32.mrf.mxu0 }
 0x11e   : > { %v966_v12 = vmax.f32 %v950_v7, %v772_v19  ;;  %v803_v14 = vpop.f32.mrf.mxu1 }
 0x11f   : > { %1023 = vst [vmem:[%s1902_s4 + $0x10] sm:$0x77] %v1015_v9  ;;  %v987_v15 = vadd.f32 %v1895_v18, %v965_v10 }
 0x120   : > { %v988_v16 = vadd.f32 %v1895_v18, %v966_v12 }
 0x121   : > { %v1003_v17 = vmax.f32 %v987_v15, 0.0 }
 0x122   : > { %v1004_v13 = vmax.f32 %v988_v16, 0.0 }
 0x124   : > { %v1016_v20 = vpack.c.bf16 %v1004_v13, %v1003_v17  ;;  %v822_v21 = vpop.f32.mrf.mxu2 }
 0x125   : > { %v841_v22 = vpop.f32.mrf.mxu3  ;;  %v786_v23 = vpop.f32.mrf.mxu0 }
 0x126   : > { %1024 = vst [vmem:[%s1902_s4 + $0x18] sm:$0x77] %v1016_v20  ;;  %v805_v24 = vpop.f32.mrf.mxu1  ;;  %v935_v29 = vmax.f32 %v784_v11, %v786_v23 }
 0x127   : > { %v936_v30 = vmax.f32 %v803_v14, %v805_v24 }
 0x12c   : > { %v824_v25 = vpop.f32.mrf.mxu2 }
 0x12d   : > { %v843_v26 = vpop.f32.mrf.mxu3  ;;  %v789_v27 = vpop.f32.mrf.mxu0  ;;  %v937_v40 = vmax.f32 %v822_v21, %v824_v25 }
 0x12e   : > { %v808_v28 = vpop.f32.mrf.mxu1  ;;  %v951_v31 = vmax.f32 %v935_v29, %v789_v27  ;;  %v938_v42 = vmax.f32 %v841_v22, %v843_v26 }
 0x12f   : > { %v952_v33 = vmax.f32 %v936_v30, %v808_v28 }
 0x134   : > { %v827_v32 = vpop.f32.mrf.mxu2 }
 0x135   : > { %v846_v34 = vpop.f32.mrf.mxu3  ;;  %v791_v35 = vpop.f32.mrf.mxu0  ;;  %v953_v44 = vmax.f32 %v937_v40, %v827_v32 }
 0x136   : > { %v967_v36 = vmax.f32 %v951_v31, %v791_v35  ;;  %v810_v37 = vpop.f32.mrf.mxu1  ;;  %v954_v46 = vmax.f32 %v938_v42, %v846_v34 }
 0x137   : > { %v968_v38 = vmax.f32 %v952_v33, %v810_v37 }
 0x138   : > { %v989_v39 = vadd.f32 %v1895_v18, %v967_v36 }
 0x139   : > { %v990_v41 = vadd.f32 %v1895_v18, %v968_v38 }
 0x13a   : > { %v1005_v43 = vmax.f32 %v989_v39, 0.0 }
 0x13b   : > { %v1006_v45 = vmax.f32 %v990_v41, 0.0 }
 0x13c   : > { %v829_v47 = vpop.f32.mrf.mxu2 }
 0x13d   : > { %v1017_v48 = vpack.c.bf16 %v1006_v45, %v1005_v43  ;;  %v969_v49 = vmax.f32 %v953_v44, %v829_v47  ;;  %v848_v50 = vpop.f32.mrf.mxu3  ;;  %v860_v51 = vpop.f32.mrf.mxu0 }
 0x13e   : > { %v970_v52 = vmax.f32 %v954_v46, %v848_v50  ;;  %v879_v53 = vpop.f32.mrf.mxu1 }
 0x13f   : > { %1025 = vst [vmem:[%s1902_s4 + $0x20] sm:$0x77] %v1017_v48  ;;  %v991_v54 = vadd.f32 %v1895_v18, %v969_v49 }
 0x140   : > { %v992_v55 = vadd.f32 %v1895_v18, %v970_v52 }
 0x141   : > { %v1007_v56 = vmax.f32 %v991_v54, 0.0 }
 0x142   : > { %v1008_v57 = vmax.f32 %v992_v55, 0.0 }
 0x144   : > { %v1018_v58 = vpack.c.bf16 %v1008_v57, %v1007_v56  ;;  %v898_v59 = vpop.f32.mrf.mxu2 }
 0x145   : > { %v917_v60 = vpop.f32.mrf.mxu3  ;;  %v862_v61 = vpop.f32.mrf.mxu0 }
 0x146   : > { %1026 = vst [vmem:[%s1902_s4 + $0x28] sm:$0x77] %v1018_v58  ;;  %v881_v62 = vpop.f32.mrf.mxu1  ;;  %v939_v3 = vmax.f32 %v860_v51, %v862_v61 }
 0x147   : > { %v940_v4 = vmax.f32 %v879_v53, %v881_v62 }
 0x14c   : > { %v900_v63 = vpop.f32.mrf.mxu2 }
 0x14d   : > { %v919_v0 = vpop.f32.mrf.mxu3  ;;  %v865_v1 = vpop.f32.mrf.mxu0  ;;  %v941_v14 = vmax.f32 %v898_v59, %v900_v63 }
 0x14e   : > { %v884_v2 = vpop.f32.mrf.mxu1  ;;  %v955_v5 = vmax.f32 %v939_v3, %v865_v1  ;;  %v942_v16 = vmax.f32 %v917_v60, %v919_v0 }
 0x14f   : > { %v956_v7 = vmax.f32 %v940_v4, %v884_v2 }
 0x154   : > { %v903_v6 = vpop.f32.mrf.mxu2 }
 0x155   : > { %v922_v8 = vpop.f32.mrf.mxu3  ;;  %v867_v9 = vpop.f32.mrf.mxu0  ;;  %v957_v13 = vmax.f32 %v941_v14, %v903_v6 }
 0x156   : > { %v971_v10 = vmax.f32 %v955_v5, %v867_v9  ;;  %v886_v19 = vpop.f32.mrf.mxu1  ;;  %v958_v21 = vmax.f32 %v942_v16, %v922_v8 }
 0x157   : > { %v972_v11 = vmax.f32 %v956_v7, %v886_v19 }
 0x158   : > { %v993_v12 = vadd.f32 %v1895_v18, %v971_v10 }
 0x159   : > { %v994_v15 = vadd.f32 %v1895_v18, %v972_v11 }
 0x15a   : > { %v1009_v17 = vmax.f32 %v993_v12, 0.0 }
 0x15b   : > { %v1010_v20 = vmax.f32 %v994_v15, 0.0 }
 0x15c   : > { %v905_v22 = vpop.f32.mrf.mxu2 }
 0x15d   : > { %v1019_v23 = vpack.c.bf16 %v1010_v20, %v1009_v17  ;;  %v973_v24 = vmax.f32 %v957_v13, %v905_v22  ;;  %v924_v25 = vpop.f32.mrf.mxu3 }
 0x15e   : > { %v974_v26 = vmax.f32 %v958_v21, %v924_v25 }
 0x15f   : > { %1027 = vst [vmem:[%s1902_s4 + $0x30] sm:$0x77] %v1019_v23  ;;  %v995_v27 = vadd.f32 %v1895_v18, %v973_v24 }
 0x160   : > { %v996_v28 = vadd.f32 %v1895_v18, %v974_v26 }
 0x161   : > { %v1011_v29 = vmax.f32 %v995_v27, 0.0 }
 0x162   : > { %v1012_v30 = vmax.f32 %v996_v28, 0.0 }
 0x164   : > { %v1020_v31 = vpack.c.bf16 %v1012_v30, %v1011_v29 }
 0x166   : > { %1028 = vst [vmem:[%s1902_s4 + $0x38] sm:$0x77] %v1020_v31 }
 0x167 PF: > { %s13_s18 = sadd.s32 1, %s1531_s18   ;;  %s1951_s12 = smov %s1511_s13 }
 0x168   : > { %p10_p12 = scmp.ge.s32.totalorder %s13_s18, 6   ;;  %s1952_s13 = smov %s1605_s25 }
 0x169   : > { %s1953_s14 = smov %s1523_s16  ;;  %s1954_s15 = smov %s1527_s17 }
 0x16a   : > { %s1955_s16 = smov %s1958_s19  ;;  %s1956_s17 = smov %s1962_s20 }
 0x16b   :  { %12 = sbr.rel (!%p10_p12) target bundleno = 4 (0x4), region = 90 }

// kernel: hybrid_forward.5
= control target key start
LH: loop header
LB: loop body
LE: loop exit
PB: predicated region body
PF: predicated region fallthrough
CT: control target
= control target key end

     0   :  { %s1342_s12 = smov 0   ;;  %s1344_s13 = smov 0   ;;  %s1570_s0 = inlined_call_operand.vmem [shape: bf16[2,96,1024], index: 0, kind: input, shape index: {}]   ;;  %s1571_s1 = inlined_call_operand.vmem [shape: bf16[64,96], index: 1, kind: input, shape index: {}]   ;;  %s1572_s2 = inlined_call_operand.vmem [shape: f32[16,1], index: 2, kind: input, shape index: {}]   ;;  %s1573_s3 = inlined_call_operand.vmem [shape: bf16[2,12,1024], index: 3, kind: output, shape index: {}]  }
   0x1   :  { %s1346_s14 = smov 0  }
   0x2 LB: > { %s25_s15 = sadd.s32 1, %s1315_s13  ;;  %p971_p0 = scmp.ge.s32.totalorder %s1319_s14, 1  ;;  %s1319_s14 = sphi %s1346_s14, %s13_s14   ;;  %s1315_s13 = sphi %s1344_s13, %s1575_s13   ;;  %s1311_s12 = sphi %s1342_s12, %s1574_s12  }
   0x3   : > { %p27_p1 = scmp.ge.s32.totalorder %s25_s15, 2  ;;  %p158_p2 = scmp.lt.s32.totalorder %s1319_s14, 3 }
   0x5   : > { %s1577_s15 = smov (%p27_p1, %s25_s15), 0  ;;  %p159_p3 = pnand %p971_p0, %p158_p2 }
   0x6   : > { %p191_p4 = scmp.lt.s32.totalorder (!%p159_p3), %s1311_s12, 1 }
   0x7   : > { %162 = sbr.rel (%p159_p3) target bundleno = 306 (0x132), region = 32 }
   0xc   : > { %s1579_s12 = smov (!%p191_p4, %s1311_s12), 1  ;;  %vm527_vm0 = vcmask 785408  }
   0xd   : > { %s1270_s16 = smul.u32 384, %s1579_s12  ;;  %s1217_s5 = sshll.u32 %s1579_s12, 6 }
   0xe   : > { %s1534_s8 = scalar_lea.vmem %s1573_s3, %s1217_s5 }
   0xf   : > { %s1366_s19 = scalar_lea.vmem %s1570_s0, %s1270_s16 }
  0x10   : > { %v1153_v0 = vld [vmem:[%s1366_s19 + $0x140] sm:$0xf]  ;;  %v1262_v2 = vld [vmem:[%s1366_s19 + $0x144] sm:$0xf]  ;;  %v1161_v5 = vld [vmem:[%s1366_s19 + $0x148] sm:$0xf] }
  0x11   : > { %v1266_v1 = vld [vmem:[%s1366_s19 + $0x15c] sm:$0xf0]  ;;  %v1155_v4 = vld [vmem:[%s1366_s19 + $0x160] sm:$0xf0]  ;;  %v1267_v6 = vld [vmem:[%s1366_s19 + $0x164] sm:$0xf0] }
  0x12   : > { %v1154_v3 = vor.u32 %v1266_v1, %v1153_v0  ;;  %v1158_v7 = vor.u32 %v1262_v2, %v1155_v4  ;;  %v1162_v8 = vor.u32 %v1267_v6, %v1161_v5  ;;  %v1263_v9 = vld [vmem:[%s1366_s19 + $0x14c] sm:$0xf]  ;;  %v1121_v11 = vld [vmem:[%s1366_s19 + $0x100] sm:$0xf]  ;;  %v1254_v14 = vld [vmem:[%s1366_s19 + $0x104] sm:$0xf] }
  0x13   : > { %v1163_v10 = vld [vmem:[%s1366_s19 + $0x168] sm:$0xf0]  ;;  %v1258_v13 = vld [vmem:[%s1366_s19 + $0x11c] sm:$0xf0]  ;;  %v1123_v15 = vld [vmem:[%s1366_s19 + $0x120] sm:$0xf0] }
  0x14   : > { %542 = vmatpush.bf16.msra.mxu0 %v1154_v3  ;;  %v1166_v12 = vor.u32 %v1263_v9, %v1163_v10  ;;  %571 = vmatpush.bf16.msra.mxu1 %v1158_v7  ;;  %v1122_v16 = vor.u32 %v1258_v13, %v1121_v11  ;;  %v1126_v17 = vor.u32 %v1254_v14, %v1123_v15  ;;  %v1129_v18 = vld [vmem:[%s1366_s19 + $0x108] sm:$0xf]  ;;  %v1255_v20 = vld [vmem:[%s1366_s19 + $0x10c] sm:$0xf]  ;;  %v1089_v23 = vld [vmem:[%s1366_s19 + $0xc0] sm:$0xf] }
  0x15   : > { %600 = vmatpush.bf16.msra.mxu2 %v1162_v8  ;;  %v1259_v19 = vld [vmem:[%s1366_s19 + $0x124] sm:$0xf0]  ;;  %v1131_v22 = vld [vmem:[%s1366_s19 + $0x128] sm:$0xf0]  ;;  %v1250_v24 = vld [vmem:[%s1366_s19 + $0xdc] sm:$0xf0] }
  0x16   : > { %629 = vmatpush.bf16.msra.mxu3 %v1166_v12  ;;  %v1130_v21 = vor.u32 %v1259_v19, %v1129_v18  ;;  %v1134_v25 = vor.u32 %v1255_v20, %v1131_v22  ;;  %v1246_v26 = vld [vmem:[%s1366_s19 + $0xc4] sm:$0xf]  ;;  %v1097_v28 = vld [vmem:[%s1366_s19 + $0xc8] sm:$0xf]  ;;  %v1090_v29 = vor.u32 %v1250_v24, %v1089_v23  ;;  %v1247_v31 = vld [vmem:[%s1366_s19 + $0xcc] sm:$0xf] }
  0x17   : > { %v1091_v27 = vld [vmem:[%s1366_s19 + $0xe0] sm:$0xf0]  ;;  %v1251_v30 = vld [vmem:[%s1366_s19 + $0xe4] sm:$0xf0]  ;;  %v1099_v32 = vld [vmem:[%s1366_s19 + $0xe8] sm:$0xf0] }
  0x18   : > { %543 = vmatpush.bf16.msra.mxu0 %v1122_v16  ;;  %572 = vmatpush.bf16.msra.mxu1 %v1126_v17  ;;  %v1094_v33 = vor.u32 %v1246_v26, %v1091_v27  ;;  %v1098_v34 = vor.u32 %v1251_v30, %v1097_v28  ;;  %v1057_v35 = vld [vmem:[%s1366_s19 + $0x80] sm:$0xf]  ;;  %v1238_v37 = vld [vmem:[%s1366_s19 + $0x84] sm:$0xf]  ;;  %v1102_v38 = vor.u32 %v1247_v31, %v1099_v32  ;;  %v1065_v40 = vld [vmem:[%s1366_s19 + $0x88] sm:$0xf] }
  0x19   : > { %601 = vmatpush.bf16.msra.mxu2 %v1130_v21  ;;  %v1242_v36 = vld [vmem:[%s1366_s19 + $0x9c] sm:$0xf0]  ;;  %v1059_v39 = vld [vmem:[%s1366_s19 + $0xa0] sm:$0xf0]  ;;  %v1243_v41 = vld [vmem:[%s1366_s19 + $0xa4] sm:$0xf0] }
  0x1a   : > { %630 = vmatpush.bf16.msra.mxu3 %v1134_v25  ;;  %v1239_v42 = vld [vmem:[%s1366_s19 + $0x8c] sm:$0xf]  ;;  %v1058_v44 = vor.u32 %v1242_v36, %v1057_v35  ;;  %v1062_v45 = vor.u32 %v1238_v37, %v1059_v39  ;;  %v1066_v46 = vor.u32 %v1243_v41, %v1065_v40  ;;  %v1025_v47 = vld [vmem:[%s1366_s19 + $0x40] sm:$0xf]  ;;  %v1230_v49 = vld [vmem:[%s1366_s19 + $0x44] sm:$0xf] }
  0x1b   : > { %v1067_v43 = vld [vmem:[%s1366_s19 + $0xa8] sm:$0xf0]  ;;  %v1234_v48 = vld [vmem:[%s1366_s19 + $0x5c] sm:$0xf0]  ;;  %v1027_v51 = vld [vmem:[%s1366_s19 + $0x60] sm:$0xf0] }
  0x1c   : > { %544 = vmatpush.bf16.msra.mxu0 %v1090_v29  ;;  %573 = vmatpush.bf16.msra.mxu1 %v1094_v33  ;;  %v1070_v50 = vor.u32 %v1239_v42, %v1067_v43  ;;  %v1033_v52 = vld [vmem:[%s1366_s19 + $0x48] sm:$0xf]  ;;  %v1231_v54 = vld [vmem:[%s1366_s19 + $0x4c] sm:$0xf]  ;;  %v1026_v56 = vor.u32 %v1234_v48, %v1025_v47  ;;  %v993_v57 = vld [vmem:[%s1366_s19] sm:$0xf]  ;;  %v1030_v58 = vor.u32 %v1230_v49, %v1027_v51 }
  0x1d   : > { %602 = vmatpush.bf16.msra.mxu2 %v1098_v34  ;;  %v1235_v53 = vld [vmem:[%s1366_s19 + $0x64] sm:$0xf0]  ;;  %v1035_v55 = vld [vmem:[%s1366_s19 + $0x68] sm:$0xf0]  ;;  %v1226_v60 = vld [vmem:[%s1366_s19 + $0x1c] sm:$0xf0] }
  0x1e   : > { %631 = vmatpush.bf16.msra.mxu3 %v1102_v38  ;;  %v1034_v59 = vor.u32 %v1235_v53, %v1033_v52  ;;  %v1222_v61 = vld [vmem:[%s1366_s19 + $0x4] sm:$0xf]  ;;  %v1038_v63 = vor.u32 %v1231_v54, %v1035_v55  ;;  %v1001_v0 = vld [vmem:[%s1366_s19 + $0x8] sm:$0xf]  ;;  %v1223_v2 = vld [vmem:[%s1366_s19 + $0xc] sm:$0xf]  ;;  %v994_v6 = vor.u32 %v1226_v60, %v993_v57 }
  0x1f   : > { %v995_v62 = vld [vmem:[%s1366_s19 + $0x20] sm:$0xf0]  ;;  %v1227_v1 = vld [vmem:[%s1366_s19 + $0x24] sm:$0xf0]  ;;  %v1003_v3 = vld [vmem:[%s1366_s19 + $0x28] sm:$0xf0] }
  0x20   : > { %545 = vmatpush.bf16.msra.mxu0 %v1058_v44  ;;  %574 = vmatpush.bf16.msra.mxu1 %v1062_v45  ;;  %v1177_v4 = vld [vmem:[%s1366_s19 + $0x158] sm:$0xf]  ;;  %v1265_v7 = vld [vmem:[%s1366_s19 + $0x15c] sm:$0xf]  ;;  %v998_v9 = vor.u32 %v1222_v61, %v995_v62  ;;  %v1002_v10 = vor.u32 %v1227_v1, %v1001_v0  ;;  %v1423_v11 = vld [vmem:[%s1571_s1] sm:$0xff]  ;;  %v1006_v12 = vor.u32 %v1223_v2, %v1003_v3 }
  0x21   : > { %603 = vmatpush.bf16.msra.mxu2 %v1066_v46  ;;  %v1269_v5 = vld [vmem:[%s1366_s19 + $0x174] sm:$0xf0]  ;;  %v1179_v8 = vld [vmem:[%s1366_s19 + $0x178] sm:$0xf0]  ;;  %v1169_v14 = vld [vmem:[%s1366_s19 + $0x150] sm:$0xf] }
  0x22   : > { %632 = vmatpush.bf16.msra.mxu3 %v1070_v50  ;;  %v1178_v13 = vor.u32 %v1269_v5, %v1177_v4  ;;  %v1268_v15 = vld [vmem:[%s1366_s19 + $0x16c] sm:$0xf0]  ;;  %v1264_v16 = vld [vmem:[%s1366_s19 + $0x154] sm:$0xf]  ;;  %v1182_v17 = vor.u32 %v1265_v7, %v1179_v8  ;;  %v1145_v19 = vld [vmem:[%s1366_s19 + $0x118] sm:$0xf] }
  0x23   : > { %v1171_v18 = vld [vmem:[%s1366_s19 + $0x170] sm:$0xf0]  ;;  %v1261_v20 = vld [vmem:[%s1366_s19 + $0x134] sm:$0xf0]  ;;  %v1257_v21 = vld [vmem:[%s1366_s19 + $0x11c] sm:$0xf]  ;;  %v1170_v23 = vor.u32 %v1268_v15, %v1169_v14 }
  0x24   : > { %546 = vmatpush.bf16.msra.mxu0 %v1026_v56  ;;  %575 = vmatpush.bf16.msra.mxu1 %v1030_v58  ;;  %v1147_v22 = vld [vmem:[%s1366_s19 + $0x138] sm:$0xf0]  ;;  %v1174_v24 = vor.u32 %v1264_v16, %v1171_v18  ;;  %v1146_v25 = vor.u32 %v1261_v20, %v1145_v19  ;;  %v1137_v26 = vld [vmem:[%s1366_s19 + $0x110] sm:$0xf]  ;;  %v1256_v28 = vld [vmem:[%s1366_s19 + $0x114] sm:$0xf] }
  0x25   : > { %604 = vmatpush.bf16.msra.mxu2 %v1034_v59  ;;  %v1260_v27 = vld [vmem:[%s1366_s19 + $0x12c] sm:$0xf0]  ;;  %v1150_v29 = vor.u32 %v1257_v21, %v1147_v22  ;;  %v1139_v30 = vld [vmem:[%s1366_s19 + $0x130] sm:$0xf0]  ;;  %v1113_v31 = vld [vmem:[%s1366_s19 + $0xd8] sm:$0xf] }
  0x26   : > { %633 = vmatpush.bf16.msra.mxu3 %v1038_v63  ;;  %v1253_v32 = vld [vmem:[%s1366_s19 + $0xf4] sm:$0xf0]  ;;  %v1249_v33 = vld [vmem:[%s1366_s19 + $0xdc] sm:$0xf]  ;;  %v1138_v35 = vor.u32 %v1260_v27, %v1137_v26  ;;  %v1142_v36 = vor.u32 %v1256_v28, %v1139_v30  ;;  %v1105_v38 = vld [vmem:[%s1366_s19 + $0xd0] sm:$0xf] }
  0x27   : > { %v1115_v34 = vld [vmem:[%s1366_s19 + $0xf8] sm:$0xf0]  ;;  %v1114_v37 = vor.u32 %v1253_v32, %v1113_v31  ;;  %v1252_v39 = vld [vmem:[%s1366_s19 + $0xec] sm:$0xf0]  ;;  %v1248_v40 = vld [vmem:[%s1366_s19 + $0xd4] sm:$0xf] }
  0x28   : > { %547 = vmatpush.bf16.msra.mxu0 %v994_v6  ;;  %576 = vmatpush.bf16.msra.mxu1 %v998_v9  ;;  %v1118_v41 = vor.u32 %v1249_v33, %v1115_v34  ;;  %v1107_v42 = vld [vmem:[%s1366_s19 + $0xf0] sm:$0xf0]  ;;  %v1081_v43 = vld [vmem:[%s1366_s19 + $0x98] sm:$0xf]  ;;  %v1241_v45 = vld [vmem:[%s1366_s19 + $0x9c] sm:$0xf]  ;;  %v1106_v47 = vor.u32 %v1252_v39, %v1105_v38 }
  0x29   : > { %605 = vmatpush.bf16.msra.mxu2 %v1002_v10  ;;  %v1245_v44 = vld [vmem:[%s1366_s19 + $0xb4] sm:$0xf0]  ;;  %v1083_v46 = vld [vmem:[%s1366_s19 + $0xb8] sm:$0xf0]  ;;  %v1110_v48 = vor.u32 %v1248_v40, %v1107_v42  ;;  %v1073_v50 = vld [vmem:[%s1366_s19 + $0x90] sm:$0xf] }
  0x2a   : > { %634 = vmatpush.bf16.msra.mxu3 %v1006_v12  ;;  %v1082_v49 = vor.u32 %v1245_v44, %v1081_v43  ;;  %v1244_v51 = vld [vmem:[%s1366_s19 + $0xac] sm:$0xf0]  ;;  %v1240_v52 = vld [vmem:[%s1366_s19 + $0x94] sm:$0xf]  ;;  %v1086_v53 = vor.u32 %v1241_v45, %v1083_v46  ;;  %v1049_v55 = vld [vmem:[%s1366_s19 + $0x58] sm:$0xf] }
  0x2b   : > { %1183 = vmatmul.msk.bf16.vlgmr.msra.gmra.mxu0 %vm527_vm0, %v1423_v11  ;;  %1187 = vmatmul.msk.bf16.vlgmr.msra.gmra.mxu1 %vm527_vm0, %v1423_v11  ;;  %v1075_v54 = vld [vmem:[%s1366_s19 + $0xb0] sm:$0xf0]  ;;  %v1237_v56 = vld [vmem:[%s1366_s19 + $0x74] sm:$0xf0]  ;;  %v1233_v57 = vld [vmem:[%s1366_s19 + $0x5c] sm:$0xf]  ;;  %v1074_v59 = vor.u32 %v1244_v51, %v1073_v50 }
  0x2c   : > { %1191 = vmatmul.msk.bf16.vlgmr.msra.gmra.mxu2 %vm527_vm0, %v1423_v11  ;;  %658 = vmatpush.bf16.msrb.mxu0 %v1170_v23  ;;  %v1051_v58 = vld [vmem:[%s1366_s19 + $0x78] sm:$0xf0]  ;;  %v1078_v60 = vor.u32 %v1240_v52, %v1075_v54  ;;  %v1050_v61 = vor.u32 %v1237_v56, %v1049_v55  ;;  %v1219_v62 = vld [vmem:[%s1571_s1 + $0x8] sm:$0xff]  ;;  %v1041_v0 = vld [vmem:[%s1366_s19 + $0x50] sm:$0xf]  ;;  %v1321_v14 = vmov 0  }
  0x2d   : > { %716 = vmatpush.bf16.msrb.mxu2 %v1178_v13  ;;  %1195 = vmatmul.msk.bf16.vlgmr.msra.gmra.mxu3 %vm527_vm0, %v1423_v11  ;;  %v1054_v63 = vor.u32 %v1233_v57, %v1051_v58  ;;  %v1236_v1 = vld [vmem:[%s1366_s19 + $0x6c] sm:$0xf0]  ;;  %v1232_v2 = vld [vmem:[%s1366_s19 + $0x54] sm:$0xf]  ;;  %v1017_v5 = vld [vmem:[%s1366_s19 + $0x18] sm:$0xf] }
  0x2e   : > { %745 = vmatpush.bf16.msrb.mxu3 %v1182_v17  ;;  %687 = vmatpush.bf16.msrb.mxu1 %v1174_v24  ;;  %v1042_v3 = vor.u32 %v1236_v1, %v1041_v0  ;;  %v1043_v4 = vld [vmem:[%s1366_s19 + $0x70] sm:$0xf0]  ;;  %v1229_v6 = vld [vmem:[%s1366_s19 + $0x34] sm:$0xf0]  ;;  %v1225_v9 = vld [vmem:[%s1366_s19 + $0x1c] sm:$0xf] }
  0x2f   : > { %v1046_v7 = vor.u32 %v1232_v2, %v1043_v4  ;;  %v1018_v8 = vor.u32 %v1229_v6, %v1017_v5  ;;  %v1019_v10 = vld [vmem:[%s1366_s19 + $0x38] sm:$0xf0]  ;;  %v820_v12 = vld [vmem:[%s1572_s2] sm:$0xff]  ;;  %1296 = vset.pattern.permute.xlu0 %v1321_v14  ;;  %v1009_v15 = vld [vmem:[%s1366_s19 + $0x10] sm:$0xf] }
  0x30   : > { %659 = vmatpush.bf16.msrb.mxu0 %v1138_v35  ;;  %v1022_v13 = vor.u32 %v1225_v9, %v1019_v10  ;;  %v1228_v16 = vld [vmem:[%s1366_s19 + $0x2c] sm:$0xf0]  ;;  %v1224_v17 = vld [vmem:[%s1366_s19 + $0x14] sm:$0xf]  ;;  %824 = vperm.xlu0 %1296, %v820_v12   ;;  %v821_v22 = vld [vmem:[%s1572_s2 + $0x8] sm:$0xff] }
  0x31   : > { %717 = vmatpush.bf16.msrb.mxu2 %v1146_v25  ;;  %v1010_v18 = vor.u32 %v1228_v16, %v1009_v15  ;;  %v1011_v19 = vld [vmem:[%s1366_s19 + $0x30] sm:$0xf0]  ;;  %v1221_v23 = vld [vmem:[%s1571_s1 + $0x18] sm:$0xff] }
  0x32   : > { %746 = vmatpush.bf16.msrb.mxu3 %v1150_v29  ;;  %688 = vmatpush.bf16.msrb.mxu1 %v1142_v36  ;;  %v1014_v20 = vor.u32 %v1224_v17, %v1011_v19  ;;  %v1220_v21 = vld [vmem:[%s1571_s1 + $0x10] sm:$0xff] }
  0x34   : > { %660 = vmatpush.bf16.msrb.mxu0 %v1106_v47 }
  0x35   : > { %718 = vmatpush.bf16.msrb.mxu2 %v1114_v37 }
  0x36   : > { %747 = vmatpush.bf16.msrb.mxu3 %v1118_v41  ;;  %689 = vmatpush.bf16.msrb.mxu1 %v1110_v48 }
  0x38   : > { %661 = vmatpush.bf16.msrb.mxu0 %v1074_v59  ;;  %829 = vperm.xlu0 %1296, %v821_v22  }
  0x39   : > { %719 = vmatpush.bf16.msrb.mxu2 %v1082_v49 }
  0x3a   : > { %748 = vmatpush.bf16.msrb.mxu3 %v1086_v53  ;;  %690 = vmatpush.bf16.msrb.mxu1 %v1078_v60 }
  0x3b   : > { %1184 = vmatmul.msk.bf16.gmra.mxu0 %vm527_vm0, %v1219_v62  ;;  %1188 = vmatmul.msk.bf16.gmra.mxu1 %vm527_vm0, %v1219_v62 }
  0x3c   : > { %1192 = vmatmul.msk.bf16.gmra.mxu2 %vm527_vm0, %v1219_v62  ;;  %662 = vmatpush.bf16.msrb.mxu0 %v1042_v3 }
  0x3d   : > { %720 = vmatpush.bf16.msrb.mxu2 %v1050_v61  ;;  %1196 = vmatmul.msk.bf16.gmra.mxu3 %vm527_vm0, %v1219_v62 }
  0x3e   : > { %749 = vmatpush.bf16.msrb.mxu3 %v1054_v63  ;;  %691 = vmatpush.bf16.msrb.mxu1 %v1046_v7 }
  0x40   : > { %663 = vmatpush.bf16.msrb.mxu0 %v1010_v18 }
  0x41   : > { %721 = vmatpush.bf16.msrb.mxu2 %v1018_v8 }
  0x42   : > { %750 = vmatpush.bf16.msrb.mxu3 %v1022_v13  ;;  %692 = vmatpush.bf16.msrb.mxu1 %v1014_v20 }
  0x4b   : > { %1185 = vmatmul.msk.bf16.gmra.mxu0 %vm527_vm0, %v1220_v21  ;;  %1189 = vmatmul.msk.bf16.gmra.mxu1 %vm527_vm0, %v1220_v21 }
  0x4c   : > { %1193 = vmatmul.msk.bf16.gmra.mxu2 %vm527_vm0, %v1220_v21 }
  0x4d   : > { %1197 = vmatmul.msk.bf16.gmra.mxu3 %vm527_vm0, %v1220_v21 }
  0x5b   : > { %1186 = vmatmul.msk.bf16.gmra.mxu0 %vm527_vm0, %v1221_v23  ;;  %1190 = vmatmul.msk.bf16.gmra.mxu1 %vm527_vm0, %v1221_v23 }
  0x5c   : > { %1194 = vmatmul.msk.bf16.gmra.mxu2 %vm527_vm0, %v1221_v23 }
  0x5d   : > { %1198 = vmatmul.msk.bf16.gmra.mxu3 %vm527_vm0, %v1221_v23 }
  0x6b   : > { %1199 = vmatmul.msk.bf16.vlgmr.msrb.gmra.mxu0 %vm527_vm0, %v1423_v11  ;;  %1203 = vmatmul.msk.bf16.vlgmr.msrb.gmra.mxu1 %vm527_vm0, %v1423_v11 }
  0x6c   : > { %1207 = vmatmul.msk.bf16.vlgmr.msrb.gmra.mxu2 %vm527_vm0, %v1423_v11 }
  0x6d   : > { %1211 = vmatmul.msk.bf16.vlgmr.msrb.gmra.mxu3 %vm527_vm0, %v1423_v11 }
  0x7b   : > { %1200 = vmatmul.msk.bf16.gmra.mxu0 %vm527_vm0, %v1219_v62  ;;  %1204 = vmatmul.msk.bf16.gmra.mxu1 %vm527_vm0, %v1219_v62 }
  0x7c   : > { %1208 = vmatmul.msk.bf16.gmra.mxu2 %vm527_vm0, %v1219_v62 }
  0x7d   : > { %1212 = vmatmul.msk.bf16.gmra.mxu3 %vm527_vm0, %v1219_v62 }
  0x8b   : > { %1201 = vmatmul.msk.bf16.gmra.mxu0 %vm527_vm0, %v1220_v21  ;;  %1205 = vmatmul.msk.bf16.gmra.mxu1 %vm527_vm0, %v1220_v21 }
  0x8c   : > { %1209 = vmatmul.msk.bf16.gmra.mxu2 %vm527_vm0, %v1220_v21 }
  0x8d   : > { %1213 = vmatmul.msk.bf16.gmra.mxu3 %vm527_vm0, %v1220_v21 }
  0x9b   : > { %1202 = vmatmul.msk.bf16.gmra.mxu0 %vm527_vm0, %v1221_v23  ;;  %1206 = vmatmul.msk.bf16.gmra.mxu1 %vm527_vm0, %v1221_v23 }
  0x9c   : > { %1210 = vmatmul.msk.bf16.gmra.mxu2 %vm527_vm0, %v1221_v23 }
  0x9d   : > { %1214 = vmatmul.msk.bf16.gmra.mxu3 %vm527_vm0, %v1221_v23 }
  0xa2   : > { %v1526_v46 = vpop.permute.xlu0 %824 }
  0xa8   : > { %v549_v11 = vpop.f32.mrf.mxu0  ;;  %v578_v24 = vpop.f32.mrf.mxu1 }
  0xaa   : > { %v1536_v4 = vpop.permute.xlu0 %829 }
  0xaf   : > { %v607_v25 = vpop.f32.mrf.mxu2 }
  0xb0   : > { %v636_v26 = vpop.f32.mrf.mxu3  ;;  %v551_v27 = vpop.f32.mrf.mxu0 }
  0xb1   : > { %v580_v28 = vpop.f32.mrf.mxu1 }
  0xb7   : > { %v609_v29 = vpop.f32.mrf.mxu2 }
  0xb8   : > { %v1524_v30 = vpop.f32.mrf.mxu3  ;;  %v554_v31 = vpop.f32.mrf.mxu0 }
  0xb9   : > { %v583_v32 = vpop.f32.mrf.mxu1  ;;  %v772_v45 = vmax.f32 %v549_v11, %v554_v31 }
  0xba   : > { %v773_v47 = vmax.f32 %v578_v24, %v583_v32 }
  0xbf   : > { %v612_v33 = vpop.f32.mrf.mxu2 }
  0xc0   : > { %v641_v34 = vpop.f32.mrf.mxu3  ;;  %v556_v35 = vpop.f32.mrf.mxu0  ;;  %v774_v57 = vmax.f32 %v607_v25, %v612_v33 }
  0xc1   : > { %v585_v36 = vpop.f32.mrf.mxu1  ;;  %v775_v59 = vmax.f32 %v636_v26, %v641_v34  ;;  %v780_v60 = vmax.f32 %v551_v27, %v556_v35 }
  0xc2   : > { %v781_v62 = vmax.f32 %v580_v28, %v585_v36 }
  0xc7   : > { %v614_v37 = vpop.f32.mrf.mxu2 }
  0xc8   : > { %v643_v38 = vpop.f32.mrf.mxu3  ;;  %v559_v39 = vpop.f32.mrf.mxu0  ;;  %v782_v18 = vmax.f32 %v609_v29, %v614_v37 }
  0xc9   : > { %v588_v40 = vpop.f32.mrf.mxu1  ;;  %v788_v48 = vmax.f32 %v772_v45, %v559_v39  ;;  %v783_v21 = vmax.f32 %v1524_v30, %v643_v38 }
  0xca   : > { %v789_v50 = vmax.f32 %v773_v47, %v588_v40 }
  0xcf   : > { %v617_v41 = vpop.f32.mrf.mxu2 }
  0xd0   : > { %v646_v42 = vpop.f32.mrf.mxu3  ;;  %v561_v43 = vpop.f32.mrf.mxu0  ;;  %v790_v63 = vmax.f32 %v774_v57, %v617_v41 }
  0xd1   : > { %v590_v44 = vpop.f32.mrf.mxu1  ;;  %v791_v1 = vmax.f32 %v775_v59, %v646_v42  ;;  %v796_v2 = vmax.f32 %v780_v60, %v561_v43 }
  0xd2   : > { %v797_v5 = vmax.f32 %v781_v62, %v590_v44 }
  0xd7   : > { %v619_v49 = vpop.f32.mrf.mxu2 }
  0xd8   : > { %v648_v51 = vpop.f32.mrf.mxu3  ;;  %v564_v52 = vpop.f32.mrf.mxu0  ;;  %v798_v11 = vmax.f32 %v782_v18, %v619_v49 }
  0xd9   : > { %v804_v53 = vmax.f32 %v788_v48, %v564_v52  ;;  %v593_v54 = vpop.f32.mrf.mxu1  ;;  %v799_v25 = vmax.f32 %v783_v21, %v648_v51 }
  0xda   : > { %v805_v55 = vmax.f32 %v789_v50, %v593_v54 }
  0xdb   : > { %v832_v56 = vadd.f32 %v1526_v46, %v804_v53 }
  0xdc   : > { %v833_v58 = vadd.f32 %v1526_v46, %v805_v55 }
  0xdd   : > { %v848_v61 = vmax.f32 %v832_v56, 0.0 }
  0xde   : > { %v849_v0 = vmax.f32 %v833_v58, 0.0 }
  0xdf   : > { %v622_v3 = vpop.f32.mrf.mxu2 }
  0xe0   : > { %v864_v6 = vpack.c.bf16 %v849_v0, %v848_v61  ;;  %v806_v7 = vmax.f32 %v790_v63, %v622_v3  ;;  %v651_v8 = vpop.f32.mrf.mxu3  ;;  %v566_v9 = vpop.f32.mrf.mxu0 }
  0xe1   : > { %v807_v10 = vmax.f32 %v791_v1, %v651_v8  ;;  %v812_v12 = vmax.f32 %v796_v2, %v566_v9  ;;  %v595_v13 = vpop.f32.mrf.mxu1 }
  0xe2   : > { %v834_v14 = vadd.f32 %v1526_v46, %v806_v7  ;;  %872 = vst [vmem:[%s1534_s8] sm:$0xff] %v864_v6  ;;  %v813_v15 = vmax.f32 %v797_v5, %v595_v13 }
  0xe3   : > { %v835_v16 = vadd.f32 %v1526_v46, %v807_v10  ;;  %v840_v17 = vadd.f32 %v1536_v4, %v812_v12 }
  0xe4   : > { %v850_v19 = vmax.f32 %v834_v14, 0.0  ;;  %v841_v20 = vadd.f32 %v1536_v4, %v813_v15 }
  0xe5   : > { %v851_v22 = vmax.f32 %v835_v16, 0.0  ;;  %v856_v23 = vmax.f32 %v840_v17, 0.0 }
  0xe6   : > { %v857_v24 = vmax.f32 %v841_v20, 0.0 }
  0xe7   : > { %v865_v26 = vpack.c.bf16 %v851_v22, %v850_v19  ;;  %v624_v27 = vpop.f32.mrf.mxu2 }
  0xe8   : > { %v868_v28 = vpack.c.bf16 %v857_v24, %v856_v23  ;;  %v814_v31 = vmax.f32 %v798_v11, %v624_v27  ;;  %v653_v32 = vpop.f32.mrf.mxu3  ;;  %v665_v33 = vpop.f32.mrf.mxu0 }
  0xe9   : > { %873 = vst [vmem:[%s1534_s8 + $0x8] sm:$0xff] %v865_v26  ;;  %v815_v29 = vmax.f32 %v799_v25, %v653_v32  ;;  %v694_v34 = vpop.f32.mrf.mxu1 }
  0xea   : > { %876 = vst [vmem:[%s1534_s8 + $0x20] sm:$0x33] %v868_v28  ;;  %v842_v35 = vadd.f32 %v1536_v4, %v814_v31 }
  0xeb   : > { %v843_v30 = vadd.f32 %v1536_v4, %v815_v29 }
  0xec   : > { %v858_v36 = vmax.f32 %v842_v35, 0.0 }
  0xed   : > { %v859_v37 = vmax.f32 %v843_v30, 0.0 }
  0xef   : > { %v869_v38 = vpack.c.bf16 %v859_v37, %v858_v36  ;;  %v723_v39 = vpop.f32.mrf.mxu2 }
  0xf0   : > { %v752_v40 = vpop.f32.mrf.mxu3  ;;  %v667_v41 = vpop.f32.mrf.mxu0 }
  0xf1   : > { %877 = vst [vmem:[%s1534_s8 + $0x28] sm:$0x33] %v869_v38  ;;  %v696_v42 = vpop.f32.mrf.mxu1 }
  0xf7   : > { %v725_v43 = vpop.f32.mrf.mxu2 }
  0xf8   : > { %v754_v44 = vpop.f32.mrf.mxu3  ;;  %v670_v45 = vpop.f32.mrf.mxu0 }
  0xf9   : > { %v699_v47 = vpop.f32.mrf.mxu1  ;;  %v776_v60 = vmax.f32 %v665_v33, %v670_v45 }
  0xfa   : > { %v777_v61 = vmax.f32 %v694_v34, %v699_v47 }
  0xff   : > { %v728_v48 = vpop.f32.mrf.mxu2 }
 0x100   : > { %v757_v49 = vpop.f32.mrf.mxu3  ;;  %v672_v50 = vpop.f32.mrf.mxu0  ;;  %v778_v8 = vmax.f32 %v723_v39, %v728_v48 }
 0x101   : > { %v701_v51 = vpop.f32.mrf.mxu1  ;;  %v779_v10 = vmax.f32 %v752_v40, %v757_v49  ;;  %v784_v12 = vmax.f32 %v667_v41, %v672_v50 }
 0x102   : > { %v785_v14 = vmax.f32 %v696_v42, %v701_v51 }
 0x107   : > { %v730_v52 = vpop.f32.mrf.mxu2 }
 0x108   : > { %v759_v53 = vpop.f32.mrf.mxu3  ;;  %v675_v54 = vpop.f32.mrf.mxu0  ;;  %v786_v33 = vmax.f32 %v725_v43, %v730_v52 }
 0x109   : > { %v704_v55 = vpop.f32.mrf.mxu1  ;;  %v792_v62 = vmax.f32 %v776_v60, %v675_v54  ;;  %v787_v35 = vmax.f32 %v754_v44, %v759_v53 }
 0x10a   : > { %v793_v0 = vmax.f32 %v777_v61, %v704_v55 }
 0x10f   : > { %v733_v56 = vpop.f32.mrf.mxu2 }
 0x110   : > { %v762_v57 = vpop.f32.mrf.mxu3  ;;  %v677_v58 = vpop.f32.mrf.mxu0  ;;  %v794_v15 = vmax.f32 %v778_v8, %v733_v56 }
 0x111   : > { %v706_v59 = vpop.f32.mrf.mxu1  ;;  %v795_v17 = vmax.f32 %v779_v10, %v762_v57  ;;  %v800_v18 = vmax.f32 %v784_v12, %v677_v58 }
 0x112   : > { %v801_v20 = vmax.f32 %v785_v14, %v706_v59 }
 0x117   : > { %v735_v63 = vpop.f32.mrf.mxu2 }
 0x118   : > { %v764_v1 = vpop.f32.mrf.mxu3  ;;  %v680_v2 = vpop.f32.mrf.mxu0  ;;  %v802_v37 = vmax.f32 %v786_v33, %v735_v63 }
 0x119   : > { %v808_v3 = vmax.f32 %v792_v62, %v680_v2  ;;  %v709_v5 = vpop.f32.mrf.mxu1  ;;  %v803_v39 = vmax.f32 %v787_v35, %v764_v1 }
 0x11a   : > { %v809_v6 = vmax.f32 %v793_v0, %v709_v5 }
 0x11b   : > { %v836_v7 = vadd.f32 %v1526_v46, %v808_v3 }
 0x11c   : > { %v837_v9 = vadd.f32 %v1526_v46, %v809_v6 }
 0x11d   : > { %v852_v13 = vmax.f32 %v836_v7, 0.0 }
 0x11e   : > { %v853_v16 = vmax.f32 %v837_v9, 0.0 }
 0x11f   : > { %v738_v19 = vpop.f32.mrf.mxu2 }
 0x120   : > { %v866_v21 = vpack.c.bf16 %v853_v16, %v852_v13  ;;  %v810_v22 = vmax.f32 %v794_v15, %v738_v19  ;;  %v767_v23 = vpop.f32.mrf.mxu3  ;;  %v682_v11 = vpop.f32.mrf.mxu0 }
 0x121   : > { %v811_v24 = vmax.f32 %v795_v17, %v767_v23  ;;  %v816_v25 = vmax.f32 %v800_v18, %v682_v11  ;;  %v711_v26 = vpop.f32.mrf.mxu1 }
 0x122   : > { %874 = vst [vmem:[%s1534_s8 + $0x10] sm:$0xff] %v866_v21  ;;  %v838_v27 = vadd.f32 %v1526_v46, %v810_v22  ;;  %v817_v28 = vmax.f32 %v801_v20, %v711_v26 }
 0x123   : > { %v839_v31 = vadd.f32 %v1526_v46, %v811_v24  ;;  %v844_v32 = vadd.f32 %v1536_v4, %v816_v25 }
 0x124   : > { %v854_v29 = vmax.f32 %v838_v27, 0.0  ;;  %v845_v34 = vadd.f32 %v1536_v4, %v817_v28 }
 0x125   : > { %v855_v30 = vmax.f32 %v839_v31, 0.0  ;;  %v860_v36 = vmax.f32 %v844_v32, 0.0 }
 0x126   : > { %v861_v38 = vmax.f32 %v845_v34, 0.0 }
 0x127   : > { %v867_v40 = vpack.c.bf16 %v855_v30, %v854_v29  ;;  %v740_v41 = vpop.f32.mrf.mxu2 }
 0x128   : > { %v870_v42 = vpack.c.bf16 %v861_v38, %v860_v36  ;;  %v818_v45 = vmax.f32 %v802_v37, %v740_v41  ;;  %v769_v46 = vpop.f32.mrf.mxu3 }
 0x129   : > { %875 = vst [vmem:[%s1534_s8 + $0x18] sm:$0xff] %v867_v40  ;;  %v819_v47 = vmax.f32 %v803_v39, %v769_v46 }
 0x12a   : > { %878 = vst [vmem:[%s1534_s8 + $0x30] sm:$0x33] %v870_v42  ;;  %v846_v43 = vadd.f32 %v1536_v4, %v818_v45 }
 0x12b   : > { %v847_v48 = vadd.f32 %v1536_v4, %v819_v47 }
 0x12c   : > { %v862_v49 = vmax.f32 %v846_v43, 0.0 }
 0x12d   : > { %v863_v44 = vmax.f32 %v847_v48, 0.0 }
 0x12f   : > { %v871_v50 = vpack.c.bf16 %v863_v44, %v862_v49 }
 0x131   : > { %879 = vst [vmem:[%s1534_s8 + $0x38] sm:$0x33] %v871_v50 }
 0x132 PF: > { %s13_s14 = sadd.s32 1, %s1319_s14   ;;  %s1574_s12 = smov %s1315_s13 }
 0x133   : > { %p10_p5 = scmp.ge.s32.totalorder %s13_s14, 4   ;;  %s1575_s13 = smov %s1577_s15 }
 0x135   :  { %12 = sbr.rel (!%p10_p5) target bundleno = 2 (0x2), region = 62 }

// kernel: hybrid_forward.6
= control target key start
LH: loop header
LB: loop body
LE: loop exit
PB: predicated region body
PF: predicated region fallthrough
CT: control target
= control target key end

     0   :  { %s1012_s12 = smov 0   ;;  %s1014_s13 = smov 0   ;;  %s1206_s0 = inlined_call_operand.vmem [shape: bf16[2,192,256], index: 0, kind: input, shape index: {}]   ;;  %s1207_s1 = inlined_call_operand.vmem [shape: bf16[96,192], index: 1, kind: input, shape index: {}]   ;;  %s1208_s2 = inlined_call_operand.vmem [shape: f32[24,1], index: 2, kind: input, shape index: {}]   ;;  %s1209_s3 = inlined_call_operand.vmem [shape: bf16[2,24,256], index: 3, kind: output, shape index: {}]  }
   0x1   :  { %s1016_s14 = smov 0  }
   0x2 LB: > { %s25_s15 = sadd.s32 1, %s985_s13  ;;  %p741_p0 = scmp.ge.s32.totalorder %s989_s14, 1  ;;  %s989_s14 = sphi %s1016_s14, %s13_s14   ;;  %s985_s13 = sphi %s1014_s13, %s1211_s13   ;;  %s981_s12 = sphi %s1012_s12, %s1210_s12  }
   0x3   : > { %p27_p1 = scmp.ge.s32.totalorder %s25_s15, 2  ;;  %p158_p2 = scmp.lt.s32.totalorder %s989_s14, 3 }
   0x5   : > { %s1213_s15 = smov (%p27_p1, %s25_s15), 0  ;;  %p159_p3 = pnand %p741_p0, %p158_p2 }
   0x6   : > { %p191_p4 = scmp.lt.s32.totalorder (!%p159_p3), %s981_s12, 1 }
   0x7   : > { %162 = sbr.rel (%p159_p3) target bundleno = 282 (0x11a), region = 32 }
   0xc   : > { %s1215_s12 = smov (!%p191_p4, %s981_s12), 1  ;;  %v902_v48 = vld [vmem:[%s1207_s1 + $0x4] sm:$0xf]  ;;  %v748_v51 = vld [vmem:[%s1207_s1 + $0x8] sm:$0xf0]  ;;  %vm421_vm0 = vcmask 523264  }
   0xd   : > { %s938_s16 = smul.u32 192, %s1215_s12  ;;  %v751_v59 = vor.u32 %v902_v48, %v748_v51 }
   0xe   : > { %s939_s28 = smul.u32 24, %s1215_s12 }
   0xf   : > { %s1036_s19 = scalar_lea.vmem %s1206_s0, %s938_s16 }
  0x10   : > { %v850_v0 = vld [vmem:[%s1036_s19 + $0x70] sm:$0xf]  ;;  %v929_v1 = vld [vmem:[%s1036_s19 + $0x74] sm:$0xf0]  ;;  %v928_v2 = vld [vmem:[%s1036_s19 + $0x74] sm:$0xf]  ;;  %s1190_s4 = scalar_lea.vmem %s1209_s3, %s939_s28 }
  0x11   : > { %v851_v3 = vor.u32 %v929_v1, %v850_v0  ;;  %v852_v4 = vld [vmem:[%s1036_s19 + $0x78] sm:$0xf0]  ;;  %v842_v5 = vld [vmem:[%s1036_s19 + $0x60] sm:$0xf]  ;;  %v927_v6 = vld [vmem:[%s1036_s19 + $0x64] sm:$0xf0] }
  0x12   : > { %v855_v7 = vor.u32 %v928_v2, %v852_v4  ;;  %v926_v8 = vld [vmem:[%s1036_s19 + $0x64] sm:$0xf]  ;;  %v844_v9 = vld [vmem:[%s1036_s19 + $0x68] sm:$0xf0]  ;;  %v843_v10 = vor.u32 %v927_v6, %v842_v5  ;;  %v834_v11 = vld [vmem:[%s1036_s19 + $0x50] sm:$0xf] }
  0x13   : > { %440 = vmatpush.bf16.msra.mxu0 %v851_v3  ;;  %v847_v12 = vor.u32 %v926_v8, %v844_v9  ;;  %v925_v13 = vld [vmem:[%s1036_s19 + $0x54] sm:$0xf0]  ;;  %v936_v14 = vld [vmem:[%s1036_s19 + $0xb4] sm:$0xf]  ;;  %v884_v15 = vld [vmem:[%s1036_s19 + $0xb8] sm:$0xf0] }
  0x14   : > { %518 = vmatpush.bf16.msra.mxu2 %v855_v7  ;;  %v924_v16 = vld [vmem:[%s1036_s19 + $0x54] sm:$0xf]  ;;  %v836_v17 = vld [vmem:[%s1036_s19 + $0x58] sm:$0xf0]  ;;  %v887_v18 = vor.u32 %v936_v14, %v884_v15  ;;  %v934_v19 = vld [vmem:[%s1036_s19 + $0xa4] sm:$0xf]  ;;  %v835_v22 = vor.u32 %v925_v13, %v834_v11 }
  0x15   : > { %v876_v20 = vld [vmem:[%s1036_s19 + $0xa8] sm:$0xf0]  ;;  %v882_v21 = vld [vmem:[%s1036_s19 + $0xb0] sm:$0xf]  ;;  %v826_v23 = vld [vmem:[%s1036_s19 + $0x40] sm:$0xf]  ;;  %v839_v27 = vor.u32 %v924_v16, %v836_v17 }
  0x16   : > { %561 = vmatpush.bf16.msra.mxu3 %v887_v18  ;;  %v923_v24 = vld [vmem:[%s1036_s19 + $0x44] sm:$0xf0]  ;;  %v879_v25 = vor.u32 %v934_v19, %v876_v20  ;;  %v937_v26 = vld [vmem:[%s1036_s19 + $0xb4] sm:$0xf0]  ;;  %v922_v28 = vld [vmem:[%s1036_s19 + $0x44] sm:$0xf] }
  0x17   : > { %441 = vmatpush.bf16.msra.mxu0 %v843_v10  ;;  %v828_v29 = vld [vmem:[%s1036_s19 + $0x48] sm:$0xf0]  ;;  %v883_v30 = vor.u32 %v937_v26, %v882_v21  ;;  %v932_v31 = vld [vmem:[%s1036_s19 + $0x94] sm:$0xf]  ;;  %v868_v32 = vld [vmem:[%s1036_s19 + $0x98] sm:$0xf0]  ;;  %v827_v36 = vor.u32 %v923_v24, %v826_v23 }
  0x18   : > { %519 = vmatpush.bf16.msra.mxu2 %v847_v12  ;;  %v874_v33 = vld [vmem:[%s1036_s19 + $0xa0] sm:$0xf]  ;;  %v935_v34 = vld [vmem:[%s1036_s19 + $0xa4] sm:$0xf0]  ;;  %v818_v37 = vld [vmem:[%s1036_s19 + $0x30] sm:$0xf]  ;;  %v871_v39 = vor.u32 %v932_v31, %v868_v32  ;;  %v831_v41 = vor.u32 %v922_v28, %v828_v29 }
  0x19   : > { %483 = vmatpush.bf16.msra.mxu1 %v883_v30  ;;  %v875_v35 = vor.u32 %v935_v34, %v874_v33  ;;  %v921_v38 = vld [vmem:[%s1036_s19 + $0x34] sm:$0xf0]  ;;  %v930_v40 = vld [vmem:[%s1036_s19 + $0x84] sm:$0xf]  ;;  %v860_v42 = vld [vmem:[%s1036_s19 + $0x88] sm:$0xf0] }
  0x1a   : > { %562 = vmatpush.bf16.msra.mxu3 %v879_v25  ;;  %v866_v43 = vld [vmem:[%s1036_s19 + $0x90] sm:$0xf]  ;;  %v933_v44 = vld [vmem:[%s1036_s19 + $0x94] sm:$0xf0]  ;;  %v920_v45 = vld [vmem:[%s1036_s19 + $0x34] sm:$0xf]  ;;  %v819_v49 = vor.u32 %v921_v38, %v818_v37  ;;  %v863_v50 = vor.u32 %v930_v40, %v860_v42 }
  0x1b   : > { %442 = vmatpush.bf16.msra.mxu0 %v835_v22  ;;  %v820_v46 = vld [vmem:[%s1036_s19 + $0x38] sm:$0xf0]  ;;  %v867_v47 = vor.u32 %v933_v44, %v866_v43  ;;  %v858_v52 = vld [vmem:[%s1036_s19 + $0x80] sm:$0xf]  ;;  %v931_v53 = vld [vmem:[%s1036_s19 + $0x84] sm:$0xf0] }
  0x1c   : > { %520 = vmatpush.bf16.msra.mxu2 %v839_v27  ;;  %v823_v54 = vor.u32 %v920_v45, %v820_v46  ;;  %v810_v55 = vld [vmem:[%s1036_s19 + $0x20] sm:$0xf]  ;;  %v919_v56 = vld [vmem:[%s1036_s19 + $0x24] sm:$0xf0]  ;;  %v918_v57 = vld [vmem:[%s1036_s19 + $0x24] sm:$0xf]  ;;  %v859_v60 = vor.u32 %v931_v53, %v858_v52 }
  0x1d   : > { %484 = vmatpush.bf16.msra.mxu1 %v875_v35  ;;  %v812_v58 = vld [vmem:[%s1036_s19 + $0x28] sm:$0xf0]  ;;  %v811_v61 = vor.u32 %v919_v56, %v810_v55  ;;  %v802_v63 = vld [vmem:[%s1036_s19 + $0x10] sm:$0xf]  ;;  %v917_v0 = vld [vmem:[%s1036_s19 + $0x14] sm:$0xf0] }
  0x1e   : > { %563 = vmatpush.bf16.msra.mxu3 %v871_v39  ;;  %v815_v62 = vor.u32 %v918_v57, %v812_v58  ;;  %v916_v1 = vld [vmem:[%s1036_s19 + $0x14] sm:$0xf]  ;;  %v804_v2 = vld [vmem:[%s1036_s19 + $0x18] sm:$0xf0]  ;;  %v803_v3 = vor.u32 %v917_v0, %v802_v63  ;;  %v794_v5 = vld [vmem:[%s1036_s19] sm:$0xf] }
  0x1f   : > { %443 = vmatpush.bf16.msra.mxu0 %v827_v36  ;;  %v807_v4 = vor.u32 %v916_v1, %v804_v2  ;;  %v915_v6 = vld [vmem:[%s1036_s19 + $0x4] sm:$0xf0]  ;;  %v914_v7 = vld [vmem:[%s1036_s19 + $0x4] sm:$0xf]  ;;  %v796_v8 = vld [vmem:[%s1036_s19 + $0x8] sm:$0xf0] }
  0x20   : > { %521 = vmatpush.bf16.msra.mxu2 %v831_v41  ;;  %v795_v9 = vor.u32 %v915_v6, %v794_v5  ;;  %v746_v10 = vld [vmem:[%s1207_s1] sm:$0xf]  ;;  %v903_v11 = vld [vmem:[%s1207_s1 + $0x4] sm:$0xf0]  ;;  %v799_v12 = vor.u32 %v914_v7, %v796_v8  ;;  %v904_v14 = vld [vmem:[%s1207_s1 + $0x14] sm:$0xf] }
  0x21   : > { %485 = vmatpush.bf16.msra.mxu1 %v867_v47  ;;  %v747_v13 = vor.u32 %v903_v11, %v746_v10  ;;  %v756_v15 = vld [vmem:[%s1207_s1 + $0x18] sm:$0xf0]  ;;  %v754_v17 = vld [vmem:[%s1207_s1 + $0x10] sm:$0xf]  ;;  %v905_v18 = vld [vmem:[%s1207_s1 + $0x14] sm:$0xf0] }
  0x22   : > { %564 = vmatpush.bf16.msra.mxu3 %v863_v50  ;;  %v759_v16 = vor.u32 %v904_v14, %v756_v15  ;;  %v755_v19 = vor.u32 %v905_v18, %v754_v17  ;;  %v906_v20 = vld [vmem:[%s1207_s1 + $0x24] sm:$0xf]  ;;  %v764_v21 = vld [vmem:[%s1207_s1 + $0x28] sm:$0xf0]  ;;  %v762_v23 = vld [vmem:[%s1207_s1 + $0x20] sm:$0xf] }
  0x23   : > { %444 = vmatpush.bf16.msra.mxu0 %v819_v49  ;;  %v767_v22 = vor.u32 %v906_v20, %v764_v21  ;;  %v907_v24 = vld [vmem:[%s1207_s1 + $0x24] sm:$0xf0]  ;;  %v908_v26 = vld [vmem:[%s1207_s1 + $0x34] sm:$0xf]  ;;  %v772_v27 = vld [vmem:[%s1207_s1 + $0x38] sm:$0xf0] }
  0x24   : > { %522 = vmatpush.bf16.msra.mxu2 %v823_v54  ;;  %v763_v25 = vor.u32 %v907_v24, %v762_v23  ;;  %v775_v28 = vor.u32 %v908_v26, %v772_v27  ;;  %v770_v29 = vld [vmem:[%s1207_s1 + $0x30] sm:$0xf]  ;;  %v909_v30 = vld [vmem:[%s1207_s1 + $0x34] sm:$0xf0]  ;;  %v910_v32 = vld [vmem:[%s1207_s1 + $0x44] sm:$0xf] }
  0x25   : > { %894 = vmatmul.msk.bf16.vlgmr.msra.gmra.mxu3 %vm421_vm0, %v751_v59  ;;  %486 = vmatpush.bf16.msra.mxu1 %v859_v60  ;;  %v771_v31 = vor.u32 %v909_v30, %v770_v29  ;;  %v780_v33 = vld [vmem:[%s1207_s1 + $0x48] sm:$0xf0]  ;;  %v614_v35 = vld [vmem:[%s1208_s2] sm:$0xff]  ;;  %v616_v36 = vld [vmem:[%s1208_s2 + $0x10] sm:$0xff]  ;;  %v991_v37 = vmov 0  }
  0x26   : > { %v783_v34 = vor.u32 %v910_v32, %v780_v33  ;;  %965 = vset.pattern.permute.xlu0 %v991_v37  ;;  %966 = vset.pattern.permute.xlu1 %v991_v37  ;;  %v615_v38 = vld [vmem:[%s1208_s2 + $0x8] sm:$0xff]  ;;  %v778_v39 = vld [vmem:[%s1207_s1 + $0x40] sm:$0xf]  ;;  %v912_v42 = vld [vmem:[%s1207_s1 + $0x54] sm:$0xf] }
  0x27   : > { %445 = vmatpush.bf16.msra.mxu0 %v811_v61  ;;  %619 = vperm.xlu0 %965, %v614_v35   ;;  %v911_v40 = vld [vmem:[%s1207_s1 + $0x44] sm:$0xf0]  ;;  %v788_v43 = vld [vmem:[%s1207_s1 + $0x58] sm:$0xf0]  ;;  %v786_v45 = vld [vmem:[%s1207_s1 + $0x50] sm:$0xf] }
  0x28   : > { %523 = vmatpush.bf16.msra.mxu2 %v815_v62  ;;  %888 = vmatmul.msk.bf16.vlgmr.msra.gmra.mxu1 %vm421_vm0, %v751_v59  ;;  %v779_v41 = vor.u32 %v911_v40, %v778_v39  ;;  %v791_v44 = vor.u32 %v912_v42, %v788_v43  ;;  %v913_v46 = vld [vmem:[%s1207_s1 + $0x54] sm:$0xf0] }
  0x29   : > { %629 = vperm.xlu1 %966, %v616_v36   ;;  %v787_v47 = vor.u32 %v913_v46, %v786_v45 }
  0x2b   : > { %446 = vmatpush.bf16.msra.mxu0 %v803_v3 }
  0x2c   : > { %524 = vmatpush.bf16.msra.mxu2 %v807_v4 }
  0x2f   : > { %447 = vmatpush.bf16.msra.mxu0 %v795_v9  ;;  %624 = vperm.xlu0 %965, %v615_v38  }
  0x30   : > { %525 = vmatpush.bf16.msra.mxu2 %v799_v12 }
  0x32   : > { %448 = vmatmul.bf16.vlgmr.msra.gmra.mxu0 %v747_v13 }
  0x33   : > { %526 = vmatmul.bf16.vlgmr.msra.gmra.mxu2 %v747_v13 }
  0x35   : > { %895 = vmatmul.msk.bf16.gmra.mxu3 %vm421_vm0, %v759_v16 }
  0x38   : > { %889 = vmatmul.msk.bf16.gmra.mxu1 %vm421_vm0, %v759_v16 }
  0x42   : > { %453 = vmatmul.bf16.gmra.mxu0 %v755_v19 }
  0x43   : > { %531 = vmatmul.bf16.gmra.mxu2 %v755_v19 }
  0x45   : > { %896 = vmatmul.msk.bf16.gmra.mxu3 %vm421_vm0, %v767_v22 }
  0x48   : > { %890 = vmatmul.msk.bf16.gmra.mxu1 %vm421_vm0, %v767_v22 }
  0x52   : > { %458 = vmatmul.bf16.gmra.mxu0 %v763_v25 }
  0x53   : > { %536 = vmatmul.bf16.gmra.mxu2 %v763_v25 }
  0x55   : > { %897 = vmatmul.msk.bf16.gmra.mxu3 %vm421_vm0, %v775_v28 }
  0x58   : > { %891 = vmatmul.msk.bf16.gmra.mxu1 %vm421_vm0, %v775_v28 }
  0x62   : > { %463 = vmatmul.bf16.gmra.mxu0 %v771_v31 }
  0x63   : > { %541 = vmatmul.bf16.gmra.mxu2 %v771_v31 }
  0x65   : > { %898 = vmatmul.msk.bf16.gmra.mxu3 %vm421_vm0, %v783_v34 }
  0x68   : > { %892 = vmatmul.msk.bf16.gmra.mxu1 %vm421_vm0, %v783_v34 }
  0x72   : > { %468 = vmatmul.bf16.gmra.mxu0 %v779_v41 }
  0x73   : > { %546 = vmatmul.bf16.gmra.mxu2 %v779_v41 }
  0x75   : > { %899 = vmatmul.msk.bf16.gmra.mxu3 %vm421_vm0, %v791_v44 }
  0x78   : > { %893 = vmatmul.msk.bf16.gmra.mxu1 %vm421_vm0, %v791_v44 }
  0x82   : > { %473 = vmatmul.bf16.gmra.mxu0 %v787_v47 }
  0x83   : > { %551 = vmatmul.bf16.gmra.mxu2 %v787_v47 }
  0x99   : > { %v620_v37 = vpop.permute.xlu0 %619 }
  0xa5   : > { %v488_v48 = vpop.f32.mrf.mxu1 }
  0xa8   : > { %v566_v49 = vpop.f32.mrf.mxu3 }
  0xad   : > { %v490_v50 = vpop.f32.mrf.mxu1 }
  0xaf   : > { %v449_v51 = vpop.f32.mrf.mxu0 }
  0xb0   : > { %v489_v52 = vadd.f32 %v488_v48, %v449_v51  ;;  %v568_v53 = vpop.f32.mrf.mxu3 }
  0xb5   : > { %v493_v55 = vpop.f32.mrf.mxu1 }
  0xb6   : > { %v527_v54 = vpop.f32.mrf.mxu2 }
  0xb7   : > { %v567_v56 = vadd.f32 %v566_v49, %v527_v54  ;;  %v451_v57 = vpop.f32.mrf.mxu0 }
  0xb8   : > { %v491_v58 = vadd.f32 %v490_v50, %v451_v57  ;;  %v571_v59 = vpop.f32.mrf.mxu3 }
  0xbd   : > { %v495_v61 = vpop.f32.mrf.mxu1 }
  0xbe   : > { %v529_v60 = vpop.f32.mrf.mxu2 }
  0xbf   : > { %v1179_v62 = vadd.f32 %v568_v53, %v529_v60  ;;  %v454_v63 = vpop.f32.mrf.mxu0 }
  0xc0   : > { %v1181_v0 = vadd.f32 %v493_v55, %v454_v63  ;;  %v573_v1 = vpop.f32.mrf.mxu3 }
  0xc5   : > { %v498_v3 = vpop.f32.mrf.mxu1 }
  0xc6   : > { %v532_v2 = vpop.f32.mrf.mxu2 }
  0xc7   : > { %v1183_v4 = vadd.f32 %v571_v59, %v532_v2  ;;  %v456_v5 = vpop.f32.mrf.mxu0 }
  0xc8   : > { %v576_v6 = vpop.f32.mrf.mxu3  ;;  %v496_v26 = vadd.f32 %v495_v61, %v456_v5 }
  0xca   : > { %v596_v30 = vmax.f32 %v489_v52, %v496_v26 }
  0xcd   : > { %v500_v8 = vpop.f32.mrf.mxu1 }
  0xce   : > { %v534_v7 = vpop.f32.mrf.mxu2 }
  0xcf   : > { %v459_v9 = vpop.f32.mrf.mxu0  ;;  %v574_v31 = vadd.f32 %v573_v1, %v534_v7 }
  0xd0   : > { %v578_v10 = vpop.f32.mrf.mxu3  ;;  %v499_v36 = vadd.f32 %v498_v3, %v459_v9 }
  0xd1   : > { %v597_v38 = vmax.f32 %v567_v56, %v574_v31 }
  0xd2   : > { %v598_v46 = vmax.f32 %v491_v58, %v499_v36  ;;  %v625_v58 = vpop.permute.xlu0 %624 }
  0xd5   : > { %v503_v12 = vpop.f32.mrf.mxu1 }
  0xd6   : > { %v537_v11 = vpop.f32.mrf.mxu2 }
  0xd7   : > { %v461_v13 = vpop.f32.mrf.mxu0  ;;  %v577_v47 = vadd.f32 %v576_v6, %v537_v11 }
  0xd8   : > { %v581_v14 = vpop.f32.mrf.mxu3  ;;  %v501_v54 = vadd.f32 %v500_v8, %v461_v13 }
  0xd9   : > { %v599_v56 = vmax.f32 %v1179_v62, %v577_v47 }
  0xda   : > { %v600_v6 = vmax.f32 %v1181_v0, %v501_v54 }
  0xdd   : > { %v505_v17 = vpop.f32.mrf.mxu1 }
  0xde   : > { %v539_v15 = vpop.f32.mrf.mxu2 }
  0xdf   : > { %v464_v16 = vpop.f32.mrf.mxu0  ;;  %v579_v62 = vadd.f32 %v578_v10, %v539_v15 }
  0xe0   : > { %v583_v19 = vpop.f32.mrf.mxu3  ;;  %v504_v28 = vadd.f32 %v503_v12, %v464_v16 }
  0xe1   : > { %v601_v16 = vmax.f32 %v1183_v4, %v579_v62 }
  0xe2   : > { %v602_v34 = vmax.f32 %v596_v30, %v504_v28 }
  0xe5   : > { %v508_v21 = vpop.f32.mrf.mxu1 }
  0xe6   : > { %v542_v18 = vpop.f32.mrf.mxu2 }
  0xe7   : > { %v466_v20 = vpop.f32.mrf.mxu0  ;;  %v582_v35 = vadd.f32 %v581_v14, %v542_v18 }
  0xe8   : > { %v586_v24 = vpop.f32.mrf.mxu3  ;;  %v506_v43 = vadd.f32 %v505_v17, %v466_v20 }
  0xe9   : > { %v603_v42 = vmax.f32 %v597_v38, %v582_v35 }
  0xea   : > { %v604_v51 = vmax.f32 %v598_v46, %v506_v43 }
  0xed   : > { %v510_v25 = vpop.f32.mrf.mxu1 }
  0xee   : > { %v544_v22 = vpop.f32.mrf.mxu2 }
  0xef   : > { %v469_v23 = vpop.f32.mrf.mxu0  ;;  %v584_v52 = vadd.f32 %v583_v19, %v544_v22  ;;  %v630_v19 = vpop.permute.xlu1 %629 }
  0xf0   : > { %v588_v33 = vpop.f32.mrf.mxu3  ;;  %v509_v1 = vadd.f32 %v508_v21, %v469_v23 }
  0xf1   : > { %v605_v63 = vmax.f32 %v599_v56, %v584_v52 }
  0xf2   : > { %v606_v12 = vmax.f32 %v600_v6, %v509_v1 }
  0xf5   : > { %v513_v40 = vpop.f32.mrf.mxu1 }
  0xf6   : > { %v547_v27 = vpop.f32.mrf.mxu2 }
  0xf7   : > { %v471_v29 = vpop.f32.mrf.mxu0  ;;  %v587_v13 = vadd.f32 %v586_v24, %v547_v27 }
  0xf8   : > { %v511_v32 = vadd.f32 %v510_v25, %v471_v29  ;;  %v591_v55 = vpop.f32.mrf.mxu3 }
  0xf9   : > { %v607_v0 = vmax.f32 %v601_v16, %v587_v13 }
  0xfa   : > { %v608_v39 = vmax.f32 %v602_v34, %v511_v32 }
  0xfc   : > { %v632_v48 = vadd.f32 %v620_v37, %v608_v39 }
  0xfd   : > { %v515_v7 = vpop.f32.mrf.mxu1 }
  0xfe   : > { %v549_v41 = vpop.f32.mrf.mxu2  ;;  %v638_v57 = vmax.f32 %v632_v48, 0.0 }
  0xff   : > { %v589_v44 = vadd.f32 %v588_v33, %v549_v41  ;;  %v474_v45 = vpop.f32.mrf.mxu0 }
 0x100   : > { %v514_v50 = vadd.f32 %v513_v40, %v474_v45  ;;  %v593_v21 = vpop.f32.mrf.mxu3 }
 0x101   : > { %v609_v49 = vmax.f32 %v603_v42, %v589_v44 }
 0x102   : > { %v610_v60 = vmax.f32 %v604_v51, %v514_v50 }
 0x103   : > { %v633_v53 = vadd.f32 %v620_v37, %v609_v49 }
 0x104   : > { %v634_v8 = vadd.f32 %v625_v58, %v610_v60 }
 0x105   : > { %v639_v59 = vmax.f32 %v633_v53, 0.0 }
 0x106   : > { %v552_v61 = vpop.f32.mrf.mxu2  ;;  %v640_v17 = vmax.f32 %v634_v8, 0.0 }
 0x107   : > { %v644_v2 = vpack.c.bf16 %v639_v59, %v638_v57  ;;  %v592_v3 = vadd.f32 %v591_v55, %v552_v61  ;;  %v476_v5 = vpop.f32.mrf.mxu0 }
 0x108   : > { %v516_v11 = vadd.f32 %v515_v7, %v476_v5 }
 0x109   : > { %647 = vst [vmem:[%s1190_s4] sm:$0xff] %v644_v2  ;;  %v611_v9 = vmax.f32 %v605_v63, %v592_v3 }
 0x10a   : > { %v612_v20 = vmax.f32 %v606_v12, %v516_v11 }
 0x10b   : > { %v635_v14 = vadd.f32 %v625_v58, %v611_v9 }
 0x10c   : > { %v636_v15 = vadd.f32 %v630_v19, %v612_v20 }
 0x10d   : > { %v641_v18 = vmax.f32 %v635_v14, 0.0 }
 0x10e   : > { %v554_v22 = vpop.f32.mrf.mxu2  ;;  %v642_v28 = vmax.f32 %v636_v15, 0.0 }
 0x10f   : > { %v645_v23 = vpack.c.bf16 %v641_v18, %v640_v17  ;;  %v594_v10 = vadd.f32 %v593_v21, %v554_v22 }
 0x111   : > { %648 = vst [vmem:[%s1190_s4 + $0x8] sm:$0xff] %v645_v23  ;;  %v613_v25 = vmax.f32 %v607_v0, %v594_v10 }
 0x113   : > { %v637_v26 = vadd.f32 %v630_v19, %v613_v25 }
 0x115   : > { %v643_v29 = vmax.f32 %v637_v26, 0.0 }
 0x117   : > { %v646_v24 = vpack.c.bf16 %v643_v29, %v642_v28 }
 0x119   : > { %649 = vst [vmem:[%s1190_s4 + $0x10] sm:$0xff] %v646_v24 }
 0x11a PF: > { %s13_s14 = sadd.s32 1, %s989_s14   ;;  %s1210_s12 = smov %s985_s13 }
 0x11b   : > { %p10_p5 = scmp.ge.s32.totalorder %s13_s14, 4   ;;  %s1211_s13 = smov %s1213_s15 }
 0x11d   :  { %12 = sbr.rel (!%p10_p5) target bundleno = 2 (0x2), region = 62 }

// kernel: hybrid_forward.7
= control target key start
LH: loop header
LB: loop body
LE: loop exit
PB: predicated region body
PF: predicated region fallthrough
CT: control target
= control target key end

     0   :  { %vm4055_vm1 = vcmask 97280   ;;  %vm4047_vm9 = vcmask 195584   ;;  %vm4051_vm10 = vcmask 191488   ;;  %vm4202_vm14 = vcmask 1043456   ;;  %s8830_s1 = inlined_call_operand.vmem [shape: bf16[6144,128], index: 1, kind: input, shape index: {}]   ;;  %s8831_s0 = inlined_call_operand.vmem [shape: bf16[2,6144], index: 0, kind: input, shape index: {}]   ;;  %s8832_s2 = inlined_call_operand.vmem [shape: f32[1,128], index: 2, kind: input, shape index: {}]   ;;  %s8833_s7 = inlined_call_operand.vmem [shape: s32[24,1], index: 7, kind: input, shape index: {}]   ;;  %s8834_s8 = inlined_call_operand.vmem [shape: s32[24,1], index: 8, kind: input, shape index: {}]   ;;  %s8835_s9 = inlined_call_operand.vmem [shape: s32[1,24], index: 9, kind: input, shape index: {}]   ;;  %s8836_s15 = inlined_call_operand.vmem [shape: f32[4,256], index: 15, kind: input, shape index: {}]   ;;  %s8837_s6 = inlined_call_operand.vmem [shape: f32[24,3], index: 6, kind: input, shape index: {}]   ;;  %s8838_s5 = inlined_call_operand.vmem [shape: f32[12,4], index: 5, kind: input, shape index: {}]   ;;  %s8839_s3 = inlined_call_operand.vmem [shape: bf16[128,64], index: 3, kind: input, shape index: {}]   ;;  %s8840_s12 = inlined_call_operand.vmem [shape: f32[3,4], index: 12, kind: input, shape index: {}]   ;;  %s8841_s4 = inlined_call_operand.vmem [shape: f32[1,64], index: 4, kind: input, shape index: {}]   ;;  %s8842_s11 = inlined_call_operand.vmem [shape: f32[4,4], index: 11, kind: input, shape index: {}]   ;;  %s8843_s13 = inlined_call_operand.vmem [shape: f32[1,4], index: 13, kind: input, shape index: {}]   ;;  %s8844_s14 = inlined_call_operand.vmem [shape: f32[4,256], index: 14, kind: input, shape index: {}]   ;;  %s8845_s10 = inlined_call_operand.vmem [shape: s32[1,12], index: 10, kind: input, shape index: {}]   ;;  %s8846_s16 = inlined_call_operand.vmem [shape: f32[1,256], index: 16, kind: input, shape index: {}]   ;;  %s8847_s22 = inlined_call_operand.vmem [shape: f32[64,32], index: 22, kind: input, shape index: {}]   ;;  %s8848_s19 = inlined_call_operand.vmem [shape: f32[256,128], index: 19, kind: input, shape index: {}]   ;;  %s8849_s21 = inlined_call_operand.vmem [shape: f32[128,32], index: 21, kind: input, shape index: {}]   ;;  %s8850_s17 = inlined_call_operand.vmem [shape: f32[1,256], index: 17, kind: input, shape index: {}]   ;;  %s8851_s18 = inlined_call_operand.vmem [shape: f32[1,256], index: 18, kind: input, shape index: {}]   ;;  %s8852_s20 = inlined_call_operand.vmem [shape: f32[1,128], index: 20, kind: input, shape index: {}]   ;;  %s8853_s23 = inlined_call_operand.vmem [shape: f32[1,32], index: 23, kind: input, shape index: {}]   ;;  %s8854_s25 = inlined_call_operand.vmem [shape: f32[1,32], index: 25, kind: input, shape index: {}]   ;;  %s8855_s24 = inlined_call_operand.vmem [shape: f32[32,32], index: 24, kind: input, shape index: {}]   ;;  %s8856_s26 = inlined_call_operand.vmem [shape: f32[32,128], index: 26, kind: input, shape index: {}]   ;;  %s8857_s27 = inlined_call_operand.vmem [shape: f32[1,128], index: 27, kind: input, shape index: {}]   ;;  %s8858_s28 = inlined_call_operand.vmem [shape: f32[2,128], index: 28, kind: output, shape index: {}]  }
   0x1   :  { %8866 = sst [smem:[#allocation2_spill]] %s8830_s1  ;;  %vm4242_vm15 = vcmask 1042432  }
   0x2   :  { %8867 = sst [smem:[#allocation3_spill]] %s8831_s0 }
   0x3   :  { %8868 = sst [smem:[#allocation4_spill]] %s8832_s2 }
   0x4   :  { %8869 = sst [smem:[#allocation5_spill]] %s8833_s7 }
   0x5   :  { %8870 = sst [smem:[#allocation6_spill]] %s8834_s8 }
   0x6   :  { %8871 = sst [smem:[#allocation7_spill]] %s8835_s9 }
   0x7   :  { %8872 = sst [smem:[#allocation8_spill]] %s8836_s15 }
   0x8   :  { %8873 = sst [smem:[#allocation9_spill]] %s8837_s6 }
   0x9   :  { %8874 = sst [smem:[#allocation10_spill]] %s8838_s5 }
   0xa   :  { %8875 = sst [smem:[#allocation11_spill]] %s8839_s3 }
   0xb   :  { %8876 = sst [smem:[#allocation12_spill]] %s8840_s12 }
   0xc   :  { %8877 = sst [smem:[#allocation13_spill]] %s8841_s4 }
   0xd   :  { %8878 = sst [smem:[#allocation14_spill]] %s8842_s11 }
   0xe   :  { %s8879_s9 = sld [smem:[#allocation2_spill]] }
   0xf   :  { %s8880_s3 = sld [smem:[#allocation3_spill]] }
  0x10   :  { %s8881_s2 = sld [smem:[#allocation5_spill]] }
  0x11   :  { %s8882_s12 = sld [smem:[#allocation6_spill]] }
  0x12   :  { %s8883_s11 = sld [smem:[#allocation4_spill]] }
  0x13   :  { %s8884_s0 = sld [smem:[#allocation8_spill]] }
  0x14   :  { %v6512_v0 = vld [vmem:[%s8879_s9 + $0x38] sm:$0xff]  ;;  %v6511_v4 = vld [vmem:[%s8879_s9 + $0x30] sm:$0xff]  ;;  %v6510_v8 = vld [vmem:[%s8879_s9 + $0x28] sm:$0xff]  ;;  %s8886_s1 = sld [smem:[#allocation9_spill]] }
  0x15   :  { %v6520_v1 = vld [vmem:[%s8879_s9 + $0x78] sm:$0xff]  ;;  %3279 = vmatpush.bf16.msra.mxu0 %v6512_v0  ;;  %v6519_v5 = vld [vmem:[%s8879_s9 + $0x70] sm:$0xff]  ;;  %v6518_v9 = vld [vmem:[%s8879_s9 + $0x68] sm:$0xff]  ;;  %s8887_s7 = sld [smem:[#allocation10_spill]] }
  0x16   :  { %v6528_v2 = vld [vmem:[%s8879_s9 + $0xb8] sm:$0xff]  ;;  %3292 = vmatpush.bf16.msra.mxu1 %v6520_v1  ;;  %v6527_v6 = vld [vmem:[%s8879_s9 + $0xb0] sm:$0xff]  ;;  %v6526_v10 = vld [vmem:[%s8879_s9 + $0xa8] sm:$0xff]  ;;  %s8889_s30 = sld [smem:[#allocation12_spill]] }
  0x17   :  { %v6536_v3 = vld [vmem:[%s8879_s9 + $0xf8] sm:$0xff]  ;;  %3305 = vmatpush.bf16.msra.mxu2 %v6528_v2  ;;  %v6535_v7 = vld [vmem:[%s8879_s9 + $0xf0] sm:$0xff]  ;;  %v6534_v11 = vld [vmem:[%s8879_s9 + $0xe8] sm:$0xff] }
  0x18   :  { %3318 = vmatpush.bf16.msra.mxu3 %v6536_v3  ;;  %v6509_v12 = vld [vmem:[%s8879_s9 + $0x20] sm:$0xff]  ;;  %v6508_v16 = vld [vmem:[%s8879_s9 + $0x18] sm:$0xff]  ;;  %v6507_v21 = vld [vmem:[%s8879_s9 + $0x10] sm:$0xff] }
  0x19   :  { %3280 = vmatpush.bf16.msra.mxu0 %v6511_v4  ;;  %v6517_v13 = vld [vmem:[%s8879_s9 + $0x60] sm:$0xff]  ;;  %v6516_v17 = vld [vmem:[%s8879_s9 + $0x58] sm:$0xff]  ;;  %v6515_v22 = vld [vmem:[%s8879_s9 + $0x50] sm:$0xff] }
  0x1a   :  { %3293 = vmatpush.bf16.msra.mxu1 %v6519_v5  ;;  %v6525_v14 = vld [vmem:[%s8879_s9 + $0xa0] sm:$0xff]  ;;  %v6524_v18 = vld [vmem:[%s8879_s9 + $0x98] sm:$0xff]  ;;  %v6523_v23 = vld [vmem:[%s8879_s9 + $0x90] sm:$0xff] }
  0x1b   :  { %3306 = vmatpush.bf16.msra.mxu2 %v6527_v6  ;;  %v6533_v15 = vld [vmem:[%s8879_s9 + $0xe0] sm:$0xff]  ;;  %v6532_v19 = vld [vmem:[%s8879_s9 + $0xd8] sm:$0xff]  ;;  %v6531_v24 = vld [vmem:[%s8879_s9 + $0xd0] sm:$0xff] }
  0x1c   :  { %3319 = vmatpush.bf16.msra.mxu3 %v6535_v7  ;;  %v89_v20 = vld [vmem:[%s8880_s3] sm:$0xff]  ;;  %v6506_v25 = vld [vmem:[%s8879_s9 + $0x8] sm:$0xff]  ;;  %v6544_v32 = vld [vmem:[%s8879_s9 + $0x138] sm:$0xff] }
  0x1d   :  { %3281 = vmatpush.bf16.msra.mxu0 %v6510_v8  ;;  %868 = vst [vmem:[#allocation1] ss:$9 sm:$0xff] %v89_v20  ;;  %v6514_v26 = vld [vmem:[%s8879_s9 + $0x48] sm:$0xff]  ;;  %v6505_v29 = vld [vmem:[%s8879_s9] sm:$0xff]  ;;  %v6552_v33 = vld [vmem:[%s8879_s9 + $0x178] sm:$0xff] }
  0x1e   :  { %3294 = vmatpush.bf16.msra.mxu1 %v6518_v9  ;;  %v6522_v27 = vld [vmem:[%s8879_s9 + $0x88] sm:$0xff]  ;;  %v6513_v30 = vld [vmem:[%s8879_s9 + $0x40] sm:$0xff]  ;;  %v6560_v34 = vld [vmem:[%s8879_s9 + $0x1b8] sm:$0xff] }
  0x1f   :  { %3307 = vmatpush.bf16.msra.mxu2 %v6526_v10  ;;  %v6530_v28 = vld [vmem:[%s8879_s9 + $0xc8] sm:$0xff]  ;;  %v6521_v31 = vld [vmem:[%s8879_s9 + $0x80] sm:$0xff]  ;;  %v6568_v36 = vld [vmem:[%s8879_s9 + $0x1f8] sm:$0xff] }
  0x20   :  { %3320 = vmatpush.bf16.msra.mxu3 %v6534_v11  ;;  %v6529_v35 = vld [vmem:[%s8879_s9 + $0xc0] sm:$0xff]  ;;  %v6543_v38 = vld [vmem:[%s8879_s9 + $0x130] sm:$0xff]  ;;  %v6542_v45 = vld [vmem:[%s8879_s9 + $0x128] sm:$0xff] }
  0x21   :  { %3282 = vmatpush.bf16.msra.mxu0 %v6509_v12  ;;  %v6551_v40 = vld [vmem:[%s8879_s9 + $0x170] sm:$0xff]  ;;  %v6550_v46 = vld [vmem:[%s8879_s9 + $0x168] sm:$0xff]  ;;  %v6541_v49 = vld [vmem:[%s8879_s9 + $0x120] sm:$0xff] }
  0x22   :  { %3295 = vmatpush.bf16.msra.mxu1 %v6517_v13  ;;  %v6559_v41 = vld [vmem:[%s8879_s9 + $0x1b0] sm:$0xff]  ;;  %v6558_v47 = vld [vmem:[%s8879_s9 + $0x1a8] sm:$0xff]  ;;  %v6549_v55 = vld [vmem:[%s8879_s9 + $0x160] sm:$0xff] }
  0x23   :  { %3308 = vmatpush.bf16.msra.mxu2 %v6525_v14  ;;  %v6567_v43 = vld [vmem:[%s8879_s9 + $0x1f0] sm:$0xff]  ;;  %v6566_v48 = vld [vmem:[%s8879_s9 + $0x1e8] sm:$0xff]  ;;  %v6557_v56 = vld [vmem:[%s8879_s9 + $0x1a0] sm:$0xff] }
  0x24   :  { %3321 = vmatpush.bf16.msra.mxu3 %v6533_v15  ;;  %v869_v37 = vld [vmem:[#allocation1] sm:$0xff]  ;;  %v871_v39 = vld [vmem:[#allocation1 + $0x12] sm:$0xff]  ;;  %v870_v42 = vld [vmem:[#allocation1 + $0x9] sm:$0xff] }
  0x25   :  { %3283 = vmatpush.bf16.msra.mxu0 %v6508_v16  ;;  %v872_v44 = vld [vmem:[#allocation1 + $0x1b] sm:$0xff]  ;;  %v873_v51 = vld [vmem:[#allocation1 + $0x24] sm:$0xff]  ;;  %v874_v54 = vld [vmem:[#allocation1 + $0x2d] sm:$0xff] }
  0x26   :  { %3296 = vmatpush.bf16.msra.mxu1 %v6516_v17  ;;  %v875_v50 = vld [vmem:[#allocation1 + $0x36] sm:$0xff]  ;;  %v7214_v52 = vld [vmem:[#allocation1 + $0x3f] sm:$0xff]  ;;  %v90_v53 = vld [vmem:[%s8880_s3 + $0x8] sm:$0xff] }
  0x27   :  { %3309 = vmatpush.bf16.msra.mxu2 %v6524_v18  ;;  %878 = vst [vmem:[#allocation1] ss:$9 sm:$0xff] %v90_v53  ;;  %v6565_v57 = vld [vmem:[%s8879_s9 + $0x1e0] sm:$0xff]  ;;  %v6540_v58 = vld [vmem:[%s8879_s9 + $0x118] sm:$0xff]  ;;  %v6539_v62 = vld [vmem:[%s8879_s9 + $0x110] sm:$0xff] }
  0x28   :  { %3322 = vmatpush.bf16.msra.mxu3 %v6532_v19  ;;  %v6548_v59 = vld [vmem:[%s8879_s9 + $0x158] sm:$0xff]  ;;  %v6547_v63 = vld [vmem:[%s8879_s9 + $0x150] sm:$0xff]  ;;  %v6538_v2 = vld [vmem:[%s8879_s9 + $0x108] sm:$0xff] }
  0x29   :  { %3284 = vmatpush.bf16.msra.mxu0 %v6507_v21  ;;  %v6556_v60 = vld [vmem:[%s8879_s9 + $0x198] sm:$0xff]  ;;  %v6555_v0 = vld [vmem:[%s8879_s9 + $0x190] sm:$0xff]  ;;  %v6546_v3 = vld [vmem:[%s8879_s9 + $0x148] sm:$0xff] }
  0x2a   :  { %3297 = vmatpush.bf16.msra.mxu1 %v6515_v22  ;;  %v6564_v61 = vld [vmem:[%s8879_s9 + $0x1d8] sm:$0xff]  ;;  %v6563_v1 = vld [vmem:[%s8879_s9 + $0x1d0] sm:$0xff]  ;;  %v6554_v4 = vld [vmem:[%s8879_s9 + $0x188] sm:$0xff] }
  0x2b   :  { %3310 = vmatpush.bf16.msra.mxu2 %v6523_v23  ;;  %v6562_v5 = vld [vmem:[%s8879_s9 + $0x1c8] sm:$0xff]  ;;  %v6537_v6 = vld [vmem:[%s8879_s9 + $0x100] sm:$0xff]  ;;  %v6576_v9 = vld [vmem:[%s8879_s9 + $0x238] sm:$0xff] }
  0x2c   :  { %3323 = vmatpush.bf16.msra.mxu3 %v6531_v24  ;;  %v6545_v7 = vld [vmem:[%s8879_s9 + $0x140] sm:$0xff]  ;;  %v6584_v10 = vld [vmem:[%s8879_s9 + $0x278] sm:$0xff]  ;;  %v6575_v14 = vld [vmem:[%s8879_s9 + $0x230] sm:$0xff] }
  0x2d   :  { %3285 = vmatpush.bf16.msra.mxu0 %v6506_v25  ;;  %v6553_v8 = vld [vmem:[%s8879_s9 + $0x180] sm:$0xff]  ;;  %v6592_v11 = vld [vmem:[%s8879_s9 + $0x2b8] sm:$0xff]  ;;  %v6583_v15 = vld [vmem:[%s8879_s9 + $0x270] sm:$0xff] }
  0x2e   :  { %3298 = vmatpush.bf16.msra.mxu1 %v6514_v26  ;;  %v6561_v12 = vld [vmem:[%s8879_s9 + $0x1c0] sm:$0xff]  ;;  %v6600_v13 = vld [vmem:[%s8879_s9 + $0x2f8] sm:$0xff]  ;;  %v6591_v16 = vld [vmem:[%s8879_s9 + $0x2b0] sm:$0xff] }
  0x2f   :  { %3311 = vmatpush.bf16.msra.mxu2 %v6522_v27  ;;  %v6599_v17 = vld [vmem:[%s8879_s9 + $0x2f0] sm:$0xff]  ;;  %v6574_v18 = vld [vmem:[%s8879_s9 + $0x228] sm:$0xff]  ;;  %v6573_v22 = vld [vmem:[%s8879_s9 + $0x220] sm:$0xff] }
  0x30   :  { %3324 = vmatpush.bf16.msra.mxu3 %v6530_v28  ;;  %v6582_v19 = vld [vmem:[%s8879_s9 + $0x268] sm:$0xff]  ;;  %v6581_v23 = vld [vmem:[%s8879_s9 + $0x260] sm:$0xff]  ;;  %v6572_v26 = vld [vmem:[%s8879_s9 + $0x218] sm:$0xff] }
  0x31   :  { %3286 = vmatpush.bf16.msra.mxu0 %v6505_v29  ;;  %v6590_v20 = vld [vmem:[%s8879_s9 + $0x2a8] sm:$0xff]  ;;  %v6589_v24 = vld [vmem:[%s8879_s9 + $0x2a0] sm:$0xff]  ;;  %v6580_v27 = vld [vmem:[%s8879_s9 + $0x258] sm:$0xff] }
  0x32   :  { %3299 = vmatpush.bf16.msra.mxu1 %v6513_v30  ;;  %v6598_v21 = vld [vmem:[%s8879_s9 + $0x2e8] sm:$0xff]  ;;  %v6597_v25 = vld [vmem:[%s8879_s9 + $0x2e0] sm:$0xff]  ;;  %v6588_v28 = vld [vmem:[%s8879_s9 + $0x298] sm:$0xff] }
  0x33   :  { %3312 = vmatpush.bf16.msra.mxu2 %v6521_v31  ;;  %v6596_v29 = vld [vmem:[%s8879_s9 + $0x2d8] sm:$0xff]  ;;  %v6571_v30 = vld [vmem:[%s8879_s9 + $0x210] sm:$0xff]  ;;  %v7394_v53 = vld [vmem:[#allocation1 + $0x24] sm:$0xff] }
  0x34   :  { %3325 = vmatpush.bf16.msra.mxu3 %v6529_v35  ;;  %3287 = vmatmul.bf16.vlgmr.msra.gmra.mxu0 %v869_v37  ;;  %v6579_v31 = vld [vmem:[%s8879_s9 + $0x250] sm:$0xff]  ;;  %v6578_v35 = vld [vmem:[%s8879_s9 + $0x248] sm:$0xff] }
  0x35   :  { %3331 = vmatpush.bf16.msrb.mxu0 %v6544_v32  ;;  %3300 = vmatmul.bf16.vlgmr.msra.gmra.mxu1 %v870_v42  ;;  %v6587_v32 = vld [vmem:[%s8879_s9 + $0x290] sm:$0xff]  ;;  %v6594_v37 = vld [vmem:[%s8879_s9 + $0x2c8] sm:$0xff] }
  0x36   :  { %3344 = vmatpush.bf16.msrb.mxu1 %v6552_v33  ;;  %3313 = vmatmul.bf16.vlgmr.msra.gmra.mxu2 %v871_v39  ;;  %v6595_v33 = vld [vmem:[%s8879_s9 + $0x2d0] sm:$0xff]  ;;  %v6577_v39 = vld [vmem:[%s8879_s9 + $0x240] sm:$0xff] }
  0x37   :  { %3357 = vmatpush.bf16.msrb.mxu2 %v6560_v34  ;;  %3326 = vmatmul.bf16.vlgmr.msra.gmra.mxu3 %v872_v44  ;;  %v6570_v34 = vld [vmem:[%s8879_s9 + $0x208] sm:$0xff]  ;;  %v91_v42 = vld [vmem:[%s8880_s3 + $0x10] sm:$0xff]  ;;  %v6624_v44 = vld [vmem:[%s8879_s9 + $0x3b8] sm:$0xff] }
  0x38   :  { %3370 = vmatpush.bf16.msrb.mxu3 %v6568_v36  ;;  %v6586_v36 = vld [vmem:[%s8879_s9 + $0x288] sm:$0xff] }
  0x39   :  { %3332 = vmatpush.bf16.msrb.mxu0 %v6543_v38  ;;  %v6569_v38 = vld [vmem:[%s8879_s9 + $0x200] sm:$0xff] }
  0x3a   :  { %3345 = vmatpush.bf16.msrb.mxu1 %v6551_v40  ;;  %v6585_v40 = vld [vmem:[%s8879_s9 + $0x280] sm:$0xff] }
  0x3b   :  { %3358 = vmatpush.bf16.msrb.mxu2 %v6559_v41  ;;  %v6608_v41 = vld [vmem:[%s8879_s9 + $0x338] sm:$0xff] }
  0x3c   :  { %3371 = vmatpush.bf16.msrb.mxu3 %v6567_v43  ;;  %v6616_v43 = vld [vmem:[%s8879_s9 + $0x378] sm:$0xff] }
  0x3d   :  { %3333 = vmatpush.bf16.msrb.mxu0 %v6542_v45  ;;  %v6593_v45 = vld [vmem:[%s8879_s9 + $0x2c0] sm:$0xff] }
  0x3e   :  { %3346 = vmatpush.bf16.msrb.mxu1 %v6550_v46  ;;  %v879_v46 = vld [vmem:[#allocation1] sm:$0xff] }
  0x3f   :  { %3359 = vmatpush.bf16.msrb.mxu2 %v6558_v47  ;;  %v6632_v47 = vld [vmem:[%s8879_s9 + $0x3f8] sm:$0xff] }
  0x40   :  { %3372 = vmatpush.bf16.msrb.mxu3 %v6566_v48  ;;  %v881_v48 = vld [vmem:[#allocation1 + $0x12] sm:$0xff] }
  0x41   :  { %3334 = vmatpush.bf16.msrb.mxu0 %v6541_v49  ;;  %v880_v49 = vld [vmem:[#allocation1 + $0x9] sm:$0xff] }
  0x42   :  { %3347 = vmatpush.bf16.msrb.mxu1 %v6549_v55  ;;  %v7398_v55 = vld [vmem:[#allocation1 + $0x2d] sm:$0xff] }
  0x43   :  { %3360 = vmatpush.bf16.msrb.mxu2 %v6557_v56  ;;  %v7400_v56 = vld [vmem:[#allocation1 + $0x3f] sm:$0xff] }
  0x44   :  { %3373 = vmatpush.bf16.msrb.mxu3 %v6565_v57  ;;  %v6623_v57 = vld [vmem:[%s8879_s9 + $0x3b0] sm:$0xff] }
  0x45   :  { %3335 = vmatpush.bf16.msrb.mxu0 %v6540_v58  ;;  %v6631_v58 = vld [vmem:[%s8879_s9 + $0x3f0] sm:$0xff] }
  0x46   :  { %3348 = vmatpush.bf16.msrb.mxu1 %v6548_v59  ;;  %v6606_v59 = vld [vmem:[%s8879_s9 + $0x328] sm:$0xff] }
  0x47   :  { %3361 = vmatpush.bf16.msrb.mxu2 %v6556_v60  ;;  %v6614_v60 = vld [vmem:[%s8879_s9 + $0x368] sm:$0xff] }
  0x48   :  { %3374 = vmatpush.bf16.msrb.mxu3 %v6564_v61  ;;  %v6622_v61 = vld [vmem:[%s8879_s9 + $0x3a8] sm:$0xff] }
  0x49   :  { %3336 = vmatpush.bf16.msrb.mxu0 %v6539_v62  ;;  %v6630_v62 = vld [vmem:[%s8879_s9 + $0x3e8] sm:$0xff] }
  0x4a   :  { %3349 = vmatpush.bf16.msrb.mxu1 %v6547_v63  ;;  %v6605_v63 = vld [vmem:[%s8879_s9 + $0x320] sm:$0xff] }
  0x4b   :  { %3362 = vmatpush.bf16.msrb.mxu2 %v6555_v0  ;;  %v6613_v0 = vld [vmem:[%s8879_s9 + $0x360] sm:$0xff] }
  0x4c   :  { %3375 = vmatpush.bf16.msrb.mxu3 %v6563_v1  ;;  %v6621_v1 = vld [vmem:[%s8879_s9 + $0x3a0] sm:$0xff] }
  0x4d   :  { %3337 = vmatpush.bf16.msrb.mxu0 %v6538_v2  ;;  %v6629_v2 = vld [vmem:[%s8879_s9 + $0x3e0] sm:$0xff] }
  0x4e   :  { %3350 = vmatpush.bf16.msrb.mxu1 %v6546_v3  ;;  %v6604_v3 = vld [vmem:[%s8879_s9 + $0x318] sm:$0xff] }
  0x4f   :  { %3363 = vmatpush.bf16.msrb.mxu2 %v6554_v4  ;;  %v6612_v4 = vld [vmem:[%s8879_s9 + $0x358] sm:$0xff] }
  0x50   :  { %3376 = vmatpush.bf16.msrb.mxu3 %v6562_v5  ;;  %v6620_v5 = vld [vmem:[%s8879_s9 + $0x398] sm:$0xff] }
  0x51   :  { %3338 = vmatpush.bf16.msrb.mxu0 %v6537_v6  ;;  %v6628_v6 = vld [vmem:[%s8879_s9 + $0x3d8] sm:$0xff] }
  0x52   :  { %3351 = vmatpush.bf16.msrb.mxu1 %v6545_v7  ;;  %v6603_v7 = vld [vmem:[%s8879_s9 + $0x310] sm:$0xff] }
  0x53   :  { %3364 = vmatpush.bf16.msrb.mxu2 %v6553_v8  ;;  %v6611_v8 = vld [vmem:[%s8879_s9 + $0x350] sm:$0xff] }
  0x54   :  { %3377 = vmatpush.bf16.msrb.mxu3 %v6561_v12  ;;  %3339 = vmatmul.bf16.vlgmr.msrb.gmra.mxu0 %v873_v51  ;;  %v882_v51 = vld [vmem:[#allocation1 + $0x1b] sm:$0xff]  ;;  %v6610_v12 = vld [vmem:[%s8879_s9 + $0x348] sm:$0xff] }
  0x55   :  { %3383 = vmatpush.bf16.msra.mxu0 %v6576_v9  ;;  %3352 = vmatmul.bf16.vlgmr.msrb.gmra.mxu1 %v874_v54  ;;  %v7396_v54 = vld [vmem:[#allocation1 + $0x36] sm:$0xff] }
  0x56   :  { %3396 = vmatpush.bf16.msra.mxu1 %v6584_v10  ;;  %3365 = vmatmul.bf16.vlgmr.msrb.gmra.mxu2 %v875_v50  ;;  %v6607_v50 = vld [vmem:[%s8879_s9 + $0x330] sm:$0xff]  ;;  %888 = vst [vmem:[#allocation1] ss:$9 sm:$0xff] %v91_v42 }
  0x57   :  { %3409 = vmatpush.bf16.msra.mxu2 %v6592_v11  ;;  %3378 = vmatmul.bf16.vlgmr.msrb.gmra.mxu3 %v7214_v52  ;;  %v6615_v52 = vld [vmem:[%s8879_s9 + $0x370] sm:$0xff]  ;;  %v6602_v11 = vld [vmem:[%s8879_s9 + $0x308] sm:$0xff] }
  0x58   :  { %3422 = vmatpush.bf16.msra.mxu3 %v6600_v13  ;;  %v6619_v9 = vld [vmem:[%s8879_s9 + $0x390] sm:$0xff]  ;;  %v6618_v13 = vld [vmem:[%s8879_s9 + $0x388] sm:$0xff] }
  0x59   :  { %3384 = vmatpush.bf16.msra.mxu0 %v6575_v14  ;;  %v6627_v10 = vld [vmem:[%s8879_s9 + $0x3d0] sm:$0xff]  ;;  %v6626_v14 = vld [vmem:[%s8879_s9 + $0x3c8] sm:$0xff] }
  0x5a   :  { %3397 = vmatpush.bf16.msra.mxu1 %v6583_v15  ;;  %v6601_v15 = vld [vmem:[%s8879_s9 + $0x300] sm:$0xff]  ;;  %v6659_v42 = vld [vmem:[%s8879_s9 + $0x4d0] sm:$0xff] }
  0x5b   :  { %3410 = vmatpush.bf16.msra.mxu2 %v6591_v16  ;;  %v6609_v16 = vld [vmem:[%s8879_s9 + $0x340] sm:$0xff] }
  0x5c   :  { %3423 = vmatpush.bf16.msra.mxu3 %v6599_v17  ;;  %v6640_v17 = vld [vmem:[%s8879_s9 + $0x438] sm:$0xff] }
  0x5d   :  { %3385 = vmatpush.bf16.msra.mxu0 %v6574_v18  ;;  %v6617_v18 = vld [vmem:[%s8879_s9 + $0x380] sm:$0xff] }
  0x5e   :  { %3398 = vmatpush.bf16.msra.mxu1 %v6582_v19  ;;  %v6648_v19 = vld [vmem:[%s8879_s9 + $0x478] sm:$0xff] }
  0x5f   :  { %3411 = vmatpush.bf16.msra.mxu2 %v6590_v20  ;;  %v6656_v20 = vld [vmem:[%s8879_s9 + $0x4b8] sm:$0xff] }
  0x60   :  { %3424 = vmatpush.bf16.msra.mxu3 %v6598_v21  ;;  %v6625_v21 = vld [vmem:[%s8879_s9 + $0x3c0] sm:$0xff] }
  0x61   :  { %3386 = vmatpush.bf16.msra.mxu0 %v6573_v22  ;;  %v6664_v22 = vld [vmem:[%s8879_s9 + $0x4f8] sm:$0xff] }
  0x62   :  { %3399 = vmatpush.bf16.msra.mxu1 %v6581_v23  ;;  %v6639_v23 = vld [vmem:[%s8879_s9 + $0x430] sm:$0xff] }
  0x63   :  { %3412 = vmatpush.bf16.msra.mxu2 %v6589_v24  ;;  %v6647_v24 = vld [vmem:[%s8879_s9 + $0x470] sm:$0xff] }
  0x64   :  { %3425 = vmatpush.bf16.msra.mxu3 %v6597_v25  ;;  %v6655_v25 = vld [vmem:[%s8879_s9 + $0x4b0] sm:$0xff] }
  0x65   :  { %3387 = vmatpush.bf16.msra.mxu0 %v6572_v26  ;;  %v6663_v26 = vld [vmem:[%s8879_s9 + $0x4f0] sm:$0xff] }
  0x66   :  { %3400 = vmatpush.bf16.msra.mxu1 %v6580_v27  ;;  %v6638_v27 = vld [vmem:[%s8879_s9 + $0x428] sm:$0xff] }
  0x67   :  { %3413 = vmatpush.bf16.msra.mxu2 %v6588_v28  ;;  %v6646_v28 = vld [vmem:[%s8879_s9 + $0x468] sm:$0xff] }
  0x68   :  { %3426 = vmatpush.bf16.msra.mxu3 %v6596_v29  ;;  %v6654_v29 = vld [vmem:[%s8879_s9 + $0x4a8] sm:$0xff] }
  0x69   :  { %3388 = vmatpush.bf16.msra.mxu0 %v6571_v30  ;;  %v6662_v30 = vld [vmem:[%s8879_s9 + $0x4e8] sm:$0xff] }
  0x6a   :  { %3401 = vmatpush.bf16.msra.mxu1 %v6579_v31  ;;  %v6637_v31 = vld [vmem:[%s8879_s9 + $0x420] sm:$0xff] }
  0x6b   :  { %3414 = vmatpush.bf16.msra.mxu2 %v6587_v32  ;;  %v6645_v32 = vld [vmem:[%s8879_s9 + $0x460] sm:$0xff] }
  0x6c   :  { %3427 = vmatpush.bf16.msra.mxu3 %v6595_v33  ;;  %v6653_v33 = vld [vmem:[%s8879_s9 + $0x4a0] sm:$0xff] }
  0x6d   :  { %3389 = vmatpush.bf16.msra.mxu0 %v6570_v34  ;;  %v6661_v34 = vld [vmem:[%s8879_s9 + $0x4e0] sm:$0xff] }
  0x6e   :  { %3402 = vmatpush.bf16.msra.mxu1 %v6578_v35  ;;  %v6636_v35 = vld [vmem:[%s8879_s9 + $0x418] sm:$0xff] }
  0x6f   :  { %3415 = vmatpush.bf16.msra.mxu2 %v6586_v36  ;;  %v6644_v36 = vld [vmem:[%s8879_s9 + $0x458] sm:$0xff] }
  0x70   :  { %3428 = vmatpush.bf16.msra.mxu3 %v6594_v37  ;;  %v6652_v37 = vld [vmem:[%s8879_s9 + $0x498] sm:$0xff] }
  0x71   :  { %3390 = vmatpush.bf16.msra.mxu0 %v6569_v38  ;;  %v6660_v38 = vld [vmem:[%s8879_s9 + $0x4d8] sm:$0xff] }
  0x72   :  { %3403 = vmatpush.bf16.msra.mxu1 %v6577_v39  ;;  %v6635_v39 = vld [vmem:[%s8879_s9 + $0x410] sm:$0xff] }
  0x73   :  { %3416 = vmatpush.bf16.msra.mxu2 %v6585_v40  ;;  %v6643_v40 = vld [vmem:[%s8879_s9 + $0x450] sm:$0xff] }
  0x74   :  { %3429 = vmatpush.bf16.msra.mxu3 %v6593_v45  ;;  %3391 = vmatmul.bf16.vlgmr.msra.gmra.mxu0 %v879_v46  ;;  %v6650_v45 = vld [vmem:[%s8879_s9 + $0x488] sm:$0xff] }
  0x75   :  { %3435 = vmatpush.bf16.msrb.mxu0 %v6608_v41  ;;  %3404 = vmatmul.bf16.vlgmr.msra.gmra.mxu1 %v880_v49  ;;  %v6651_v41 = vld [vmem:[%s8879_s9 + $0x490] sm:$0xff]  ;;  %v6658_v46 = vld [vmem:[%s8879_s9 + $0x4c8] sm:$0xff]  ;;  %v6649_v49 = vld [vmem:[%s8879_s9 + $0x480] sm:$0xff] }
  0x76   :  { %3448 = vmatpush.bf16.msrb.mxu1 %v6616_v43  ;;  %3417 = vmatmul.bf16.vlgmr.msra.gmra.mxu2 %v881_v48  ;;  %v6634_v43 = vld [vmem:[%s8879_s9 + $0x408] sm:$0xff]  ;;  %v6641_v48 = vld [vmem:[%s8879_s9 + $0x440] sm:$0xff] }
  0x77   :  { %3461 = vmatpush.bf16.msrb.mxu2 %v6624_v44  ;;  %3430 = vmatmul.bf16.vlgmr.msra.gmra.mxu3 %v882_v51  ;;  %v6642_v44 = vld [vmem:[%s8879_s9 + $0x448] sm:$0xff]  ;;  %v6680_v51 = vld [vmem:[%s8879_s9 + $0x578] sm:$0xff] }
  0x78   :  { %3474 = vmatpush.bf16.msrb.mxu3 %v6632_v47  ;;  %v6633_v47 = vld [vmem:[%s8879_s9 + $0x400] sm:$0xff] }
  0x79   :  { %3436 = vmatpush.bf16.msrb.mxu0 %v6607_v50  ;;  %v6672_v50 = vld [vmem:[%s8879_s9 + $0x538] sm:$0xff] }
  0x7a   :  { %3449 = vmatpush.bf16.msrb.mxu1 %v6615_v52  ;;  %v92_v52 = vld [vmem:[%s8880_s3 + $0x18] sm:$0xff] }
  0x7b   :  { %3462 = vmatpush.bf16.msrb.mxu2 %v6623_v57  ;;  %v6696_v57 = vld [vmem:[%s8879_s9 + $0x5f8] sm:$0xff] }
  0x7c   :  { %3475 = vmatpush.bf16.msrb.mxu3 %v6631_v58  ;;  %v890_v58 = vld [vmem:[#allocation1 + $0x9] sm:$0xff] }
  0x7d   :  { %3437 = vmatpush.bf16.msrb.mxu0 %v6606_v59  ;;  %v892_v59 = vld [vmem:[#allocation1 + $0x1b] sm:$0xff] }
  0x7e   :  { %3450 = vmatpush.bf16.msrb.mxu1 %v6614_v60  ;;  %v6671_v60 = vld [vmem:[%s8879_s9 + $0x530] sm:$0xff] }
  0x7f   :  { %3463 = vmatpush.bf16.msrb.mxu2 %v6622_v61  ;;  %v6679_v61 = vld [vmem:[%s8879_s9 + $0x570] sm:$0xff] }
  0x80   :  { %3476 = vmatpush.bf16.msrb.mxu3 %v6630_v62  ;;  %v6687_v62 = vld [vmem:[%s8879_s9 + $0x5b0] sm:$0xff] }
  0x81   :  { %3438 = vmatpush.bf16.msrb.mxu0 %v6605_v63  ;;  %v7604_v63 = vld [vmem:[#allocation1 + $0x24] sm:$0xff] }
  0x82   :  { %3451 = vmatpush.bf16.msrb.mxu1 %v6613_v0  ;;  %v7606_v0 = vld [vmem:[#allocation1 + $0x36] sm:$0xff] }
  0x83   :  { %3464 = vmatpush.bf16.msrb.mxu2 %v6621_v1  ;;  %v7608_v1 = vld [vmem:[#allocation1 + $0x2d] sm:$0xff] }
  0x84   :  { %3477 = vmatpush.bf16.msrb.mxu3 %v6629_v2  ;;  %v7610_v2 = vld [vmem:[#allocation1 + $0x3f] sm:$0xff] }
  0x85   :  { %3439 = vmatpush.bf16.msrb.mxu0 %v6604_v3  ;;  %v6695_v3 = vld [vmem:[%s8879_s9 + $0x5f0] sm:$0xff] }
  0x86   :  { %3452 = vmatpush.bf16.msrb.mxu1 %v6612_v4  ;;  %v6670_v4 = vld [vmem:[%s8879_s9 + $0x528] sm:$0xff] }
  0x87   :  { %3465 = vmatpush.bf16.msrb.mxu2 %v6620_v5  ;;  %v6678_v5 = vld [vmem:[%s8879_s9 + $0x568] sm:$0xff] }
  0x88   :  { %3478 = vmatpush.bf16.msrb.mxu3 %v6628_v6  ;;  %v6686_v6 = vld [vmem:[%s8879_s9 + $0x5a8] sm:$0xff] }
  0x89   :  { %3440 = vmatpush.bf16.msrb.mxu0 %v6603_v7  ;;  %v6694_v7 = vld [vmem:[%s8879_s9 + $0x5e8] sm:$0xff] }
  0x8a   :  { %3453 = vmatpush.bf16.msrb.mxu1 %v6611_v8  ;;  %v6669_v8 = vld [vmem:[%s8879_s9 + $0x520] sm:$0xff] }
  0x8b   :  { %3466 = vmatpush.bf16.msrb.mxu2 %v6619_v9 }
  0x8c   :  { %3479 = vmatpush.bf16.msrb.mxu3 %v6627_v10  ;;  %v6677_v10 = vld [vmem:[%s8879_s9 + $0x560] sm:$0xff] }
  0x8d   :  { %3441 = vmatpush.bf16.msrb.mxu0 %v6602_v11  ;;  %v6685_v11 = vld [vmem:[%s8879_s9 + $0x5a0] sm:$0xff] }
  0x8e   :  { %3454 = vmatpush.bf16.msrb.mxu1 %v6610_v12 }
  0x8f   :  { %3467 = vmatpush.bf16.msrb.mxu2 %v6618_v13  ;;  %v6693_v13 = vld [vmem:[%s8879_s9 + $0x5e0] sm:$0xff] }
  0x90   :  { %3480 = vmatpush.bf16.msrb.mxu3 %v6626_v14  ;;  %v3996_v14 = vld [vmem:[%s8881_s2 + $0x10] sm:$0xff] }
  0x91   :  { %3442 = vmatpush.bf16.msrb.mxu0 %v6601_v15  ;;  %v6668_v15 = vld [vmem:[%s8879_s9 + $0x518] sm:$0xff] }
  0x92   :  { %3455 = vmatpush.bf16.msrb.mxu1 %v6609_v16  ;;  %v6928_v16 = vmov 0  }
  0x93   :  { %3468 = vmatpush.bf16.msrb.mxu2 %v6617_v18  ;;  %6901 = vset.pattern.permute.xlu1 %v6928_v16  ;;  %v6684_v18 = vld [vmem:[%s8879_s9 + $0x598] sm:$0xff] }
  0x94   :  { %3481 = vmatpush.bf16.msrb.mxu3 %v6625_v21  ;;  %3443 = vmatmul.bf16.vlgmr.msrb.gmra.mxu0 %v7394_v53  ;;  %v6688_v53 = vld [vmem:[%s8879_s9 + $0x5b8] sm:$0xff]  ;;  %v6667_v21 = vld [vmem:[%s8879_s9 + $0x510] sm:$0xff] }
  0x95   :  { %3487 = vmatpush.bf16.msra.mxu0 %v6640_v17  ;;  %3456 = vmatmul.bf16.vlgmr.msrb.gmra.mxu1 %v7398_v55  ;;  %v889_v55 = vld [vmem:[#allocation1] sm:$0xff]  ;;  %v6676_v17 = vld [vmem:[%s8879_s9 + $0x558] sm:$0xff] }
  0x96   :  { %3500 = vmatpush.bf16.msra.mxu1 %v6648_v19  ;;  %3469 = vmatmul.bf16.vlgmr.msrb.gmra.mxu2 %v7396_v54  ;;  %v6657_v54 = vld [vmem:[%s8879_s9 + $0x4c0] sm:$0xff]  ;;  %v6692_v19 = vld [vmem:[%s8879_s9 + $0x5d8] sm:$0xff] }
  0x97   :  { %3513 = vmatpush.bf16.msra.mxu2 %v6656_v20  ;;  %3482 = vmatmul.bf16.vlgmr.msrb.gmra.mxu3 %v7400_v56  ;;  %v891_v56 = vld [vmem:[#allocation1 + $0x12] sm:$0xff] }
  0x98   :  { %3526 = vmatpush.bf16.msra.mxu3 %v6664_v22  ;;  %898 = vst [vmem:[#allocation1] ss:$9 sm:$0xff] %v92_v52  ;;  %4004 = vperm.xlu1 %6901, %v3996_v14   ;;  %v6709_v52 = vld [vmem:[%s8879_s9 + $0x660] sm:$0xff] }
  0x99   :  { %3488 = vmatpush.bf16.msra.mxu0 %v6639_v23  ;;  %6902 = vset.pattern.permute.xlu2 %v6928_v16  ;;  %v6675_v23 = vld [vmem:[%s8879_s9 + $0x550] sm:$0xff]  ;;  %v6697_v14 = vld [vmem:[%s8879_s9 + $0x600] sm:$0xff] }
  0x9a   :  { %3501 = vmatpush.bf16.msra.mxu1 %v6647_v24  ;;  %6900 = vset.pattern.permute.xlu0 %v6928_v16  ;;  %v6683_v24 = vld [vmem:[%s8879_s9 + $0x590] sm:$0xff]  ;;  %v6713_v16 = vld [vmem:[%s8879_s9 + $0x680] sm:$0xff] }
  0x9b   :  { %3514 = vmatpush.bf16.msra.mxu2 %v6655_v25 }
  0x9c   :  { %3527 = vmatpush.bf16.msra.mxu3 %v6663_v26 }
  0x9d   :  { %3489 = vmatpush.bf16.msra.mxu0 %v6638_v27  ;;  %v6691_v27 = vld [vmem:[%s8879_s9 + $0x5d0] sm:$0xff] }
  0x9e   :  { %3502 = vmatpush.bf16.msra.mxu1 %v6646_v28  ;;  %v4015_v28 = vld [vmem:[%s8882_s12] sm:$0xff] }
  0x9f   :  { %3515 = vmatpush.bf16.msra.mxu2 %v6654_v29  ;;  %v6666_v29 = vld [vmem:[%s8879_s9 + $0x508] sm:$0xff] }
  0xa0   :  { %3528 = vmatpush.bf16.msra.mxu3 %v6662_v30  ;;  %v6674_v30 = vld [vmem:[%s8879_s9 + $0x548] sm:$0xff]  ;;  %4019 = vperm.xlu1 %6901, %v4015_v28  }
  0xa1   :  { %3490 = vmatpush.bf16.msra.mxu0 %v6637_v31  ;;  %v6682_v31 = vld [vmem:[%s8879_s9 + $0x588] sm:$0xff] }
  0xa2   :  { %3503 = vmatpush.bf16.msra.mxu1 %v6645_v32  ;;  %v6690_v32 = vld [vmem:[%s8879_s9 + $0x5c8] sm:$0xff] }
  0xa3   :  { %3516 = vmatpush.bf16.msra.mxu2 %v6653_v33  ;;  %v900_v28 = vld [vmem:[#allocation1 + $0x9] sm:$0xff] }
  0xa4   :  { %3529 = vmatpush.bf16.msra.mxu3 %v6661_v34  ;;  %v6665_v34 = vld [vmem:[%s8879_s9 + $0x500] sm:$0xff] }
  0xa5   :  { %3491 = vmatpush.bf16.msra.mxu0 %v6636_v35  ;;  %v6673_v35 = vld [vmem:[%s8879_s9 + $0x540] sm:$0xff] }
  0xa6   :  { %3504 = vmatpush.bf16.msra.mxu1 %v6644_v36  ;;  %v6681_v36 = vld [vmem:[%s8879_s9 + $0x580] sm:$0xff] }
  0xa7   :  { %3517 = vmatpush.bf16.msra.mxu2 %v6652_v37  ;;  %v6704_v37 = vld [vmem:[%s8879_s9 + $0x638] sm:$0xff] }
  0xa8   :  { %3530 = vmatpush.bf16.msra.mxu3 %v6660_v38  ;;  %v6712_v38 = vld [vmem:[%s8879_s9 + $0x678] sm:$0xff] }
  0xa9   :  { %3492 = vmatpush.bf16.msra.mxu0 %v6635_v39 }
  0xaa   :  { %3505 = vmatpush.bf16.msra.mxu1 %v6643_v40  ;;  %v6720_v40 = vld [vmem:[%s8879_s9 + $0x6b8] sm:$0xff] }
  0xab   :  { %3518 = vmatpush.bf16.msra.mxu2 %v6651_v41  ;;  %v6689_v41 = vld [vmem:[%s8879_s9 + $0x5c0] sm:$0xff] }
  0xac   :  { %3531 = vmatpush.bf16.msra.mxu3 %v6659_v42  ;;  %v6728_v42 = vld [vmem:[%s8879_s9 + $0x6f8] sm:$0xff] }
  0xad   :  { %3493 = vmatpush.bf16.msra.mxu0 %v6634_v43  ;;  %v6703_v43 = vld [vmem:[%s8879_s9 + $0x630] sm:$0xff] }
  0xae   :  { %3506 = vmatpush.bf16.msra.mxu1 %v6642_v44  ;;  %v6711_v44 = vld [vmem:[%s8879_s9 + $0x670] sm:$0xff] }
  0xaf   :  { %3519 = vmatpush.bf16.msra.mxu2 %v6650_v45  ;;  %v6719_v45 = vld [vmem:[%s8879_s9 + $0x6b0] sm:$0xff] }
  0xb0   :  { %3532 = vmatpush.bf16.msra.mxu3 %v6658_v46  ;;  %v6727_v46 = vld [vmem:[%s8879_s9 + $0x6f0] sm:$0xff] }
  0xb1   :  { %3494 = vmatpush.bf16.msra.mxu0 %v6633_v47  ;;  %v7630_v9 = vpop.f32.mrf.mxu0  ;;  %v6702_v47 = vld [vmem:[%s8879_s9 + $0x628] sm:$0xff] }
  0xb2   :  { %3507 = vmatpush.bf16.msra.mxu1 %v6641_v48  ;;  %v7638_v12 = vpop.f32.mrf.mxu1  ;;  %v6710_v48 = vld [vmem:[%s8879_s9 + $0x668] sm:$0xff] }
  0xb3   :  { %3520 = vmatpush.bf16.msra.mxu2 %v6649_v49  ;;  %v6718_v49 = vld [vmem:[%s8879_s9 + $0x6a8] sm:$0xff] }
  0xb4   :  { %3533 = vmatpush.bf16.msra.mxu3 %v6657_v54  ;;  %3495 = vmatmul.bf16.vlgmr.msra.gmra.mxu0 %v889_v55  ;;  %v4016_v55 = vld [vmem:[%s8882_s12 + $0x8] sm:$0xff] }
  0xb5   :  { %3539 = vmatpush.bf16.msrb.mxu0 %v6672_v50  ;;  %3508 = vmatmul.bf16.vlgmr.msra.gmra.mxu1 %v890_v58  ;;  %v6726_v50 = vld [vmem:[%s8879_s9 + $0x6e8] sm:$0xff]  ;;  %v6700_v58 = vld [vmem:[%s8879_s9 + $0x618] sm:$0xff] }
  0xb6   :  { %3552 = vmatpush.bf16.msrb.mxu1 %v6680_v51  ;;  %3521 = vmatmul.bf16.vlgmr.msra.gmra.mxu2 %v891_v56  ;;  %v6701_v51 = vld [vmem:[%s8879_s9 + $0x620] sm:$0xff] }
  0xb7   :  { %3565 = vmatpush.bf16.msrb.mxu2 %v6688_v53  ;;  %3534 = vmatmul.bf16.vlgmr.msra.gmra.mxu3 %v892_v59  ;;  %v6717_v53 = vld [vmem:[%s8879_s9 + $0x6a0] sm:$0xff]  ;;  %v6708_v59 = vld [vmem:[%s8879_s9 + $0x658] sm:$0xff] }
  0xb8   :  { %3578 = vmatpush.bf16.msrb.mxu3 %v6696_v57  ;;  %4022 = vperm.xlu2 %6902, %v4016_v55   ;;  %v6725_v57 = vld [vmem:[%s8879_s9 + $0x6e0] sm:$0xff] }
  0xb9   :  { %3540 = vmatpush.bf16.msrb.mxu0 %v6671_v60  ;;  %v7658_v20 = vpop.f32.mrf.mxu2  ;;  %v3290_v22 = vpop.f32.mrf.mxu0  ;;  %v6716_v60 = vld [vmem:[%s8879_s9 + $0x698] sm:$0xff] }
  0xba   :  { %3553 = vmatpush.bf16.msrb.mxu1 %v6679_v61  ;;  %v7669_v25 = vpop.f32.mrf.mxu3  ;;  %v3303_v26 = vpop.f32.mrf.mxu1  ;;  %v6752_v22 = vld [vmem:[%s8879_s9 + $0x7b8] sm:$0xff] }
  0xbb   :  { %3566 = vmatpush.bf16.msrb.mxu2 %v6687_v62  ;;  %v6724_v62 = vld [vmem:[%s8879_s9 + $0x6d8] sm:$0xff] }
  0xbc   :  { %3579 = vmatpush.bf16.msrb.mxu3 %v6695_v3  ;;  %v901_v26 = vld [vmem:[#allocation1 + $0x12] sm:$0xff] }
  0xbd   :  { %3541 = vmatpush.bf16.msrb.mxu0 %v6670_v4  ;;  %v4017_v4 = vld [vmem:[%s8882_s12 + $0x10] sm:$0xff] }
  0xbe   :  { %3554 = vmatpush.bf16.msrb.mxu1 %v6678_v5 }
  0xbf   :  { %3567 = vmatpush.bf16.msrb.mxu2 %v6686_v6  ;;  %v6723_v6 = vld [vmem:[%s8879_s9 + $0x6d0] sm:$0xff] }
  0xc0   :  { %3580 = vmatpush.bf16.msrb.mxu3 %v6694_v7  ;;  %4025 = vperm.xlu2 %6902, %v4017_v4   ;;  %v6698_v7 = vld [vmem:[%s8879_s9 + $0x608] sm:$0xff] }
  0xc1   :  { %3542 = vmatpush.bf16.msrb.mxu0 %v6669_v8  ;;  %v3316_v33 = vpop.f32.mrf.mxu2  ;;  %v6706_v8 = vld [vmem:[%s8879_s9 + $0x648] sm:$0xff] }
  0xc2   :  { %3555 = vmatpush.bf16.msrb.mxu1 %v6677_v10  ;;  %v3329_v39 = vpop.f32.mrf.mxu3  ;;  %v6714_v10 = vld [vmem:[%s8879_s9 + $0x688] sm:$0xff] }
  0xc3   :  { %3568 = vmatpush.bf16.msrb.mxu2 %v6685_v11  ;;  %v7839_v33 = vld [vmem:[#allocation1 + $0x24] sm:$0xff] }
  0xc4   :  { %3581 = vmatpush.bf16.msrb.mxu3 %v6693_v13  ;;  %v6722_v13 = vld [vmem:[%s8879_s9 + $0x6c8] sm:$0xff] }
  0xc5   :  { %3543 = vmatpush.bf16.msrb.mxu0 %v6668_v15  ;;  %v6705_v15 = vld [vmem:[%s8879_s9 + $0x640] sm:$0xff]  ;;  %v6734_v39 = vld [vmem:[%s8879_s9 + $0x728] sm:$0xff] }
  0xc6   :  { %3556 = vmatpush.bf16.msrb.mxu1 %v6676_v17  ;;  %v6730_v4 = vld [vmem:[%s8879_s9 + $0x708] sm:$0xff] }
  0xc7   :  { %3569 = vmatpush.bf16.msrb.mxu2 %v6684_v18  ;;  %v6736_v18 = vld [vmem:[%s8879_s9 + $0x738] sm:$0xff] }
  0xc8   :  { %3582 = vmatpush.bf16.msrb.mxu3 %v6692_v19  ;;  %v6744_v19 = vld [vmem:[%s8879_s9 + $0x778] sm:$0xff] }
  0xc9   :  { %3544 = vmatpush.bf16.msrb.mxu0 %v6667_v21  ;;  %v93_v21 = vld [vmem:[%s8880_s3 + $0x20] sm:$0xff] }
  0xca   :  { %3557 = vmatpush.bf16.msrb.mxu1 %v6675_v23  ;;  %v6721_v23 = vld [vmem:[%s8879_s9 + $0x6c0] sm:$0xff] }
  0xcb   :  { %3570 = vmatpush.bf16.msrb.mxu2 %v6683_v24  ;;  %v899_v24 = vld [vmem:[#allocation1] sm:$0xff] }
  0xcc   :  { %3583 = vmatpush.bf16.msrb.mxu3 %v6691_v27  ;;  %v6760_v27 = vld [vmem:[%s8879_s9 + $0x7f8] sm:$0xff] }
  0xcd   :  { %3545 = vmatpush.bf16.msrb.mxu0 %v6666_v29  ;;  %v902_v29 = vld [vmem:[#allocation1 + $0x1b] sm:$0xff] }
  0xce   :  { %3558 = vmatpush.bf16.msrb.mxu1 %v6674_v30  ;;  %v6735_v30 = vld [vmem:[%s8879_s9 + $0x730] sm:$0xff] }
  0xcf   :  { %3571 = vmatpush.bf16.msrb.mxu2 %v6682_v31  ;;  %v6743_v31 = vld [vmem:[%s8879_s9 + $0x770] sm:$0xff] }
  0xd0   :  { %3584 = vmatpush.bf16.msrb.mxu3 %v6690_v32  ;;  %v6751_v32 = vld [vmem:[%s8879_s9 + $0x7b0] sm:$0xff] }
  0xd1   :  { %3546 = vmatpush.bf16.msrb.mxu0 %v6665_v34  ;;  %v7750_v54 = vpop.f32.mrf.mxu0  ;;  %v7841_v34 = vld [vmem:[#allocation1 + $0x36] sm:$0xff] }
  0xd2   :  { %3559 = vmatpush.bf16.msrb.mxu1 %v6673_v35  ;;  %v7755_v56 = vpop.f32.mrf.mxu1  ;;  %v7843_v35 = vld [vmem:[#allocation1 + $0x2d] sm:$0xff] }
  0xd3   :  { %3572 = vmatpush.bf16.msrb.mxu2 %v6681_v36  ;;  %v7845_v36 = vld [vmem:[#allocation1 + $0x3f] sm:$0xff] }
  0xd4   :  { %3585 = vmatpush.bf16.msrb.mxu3 %v6689_v41  ;;  %3547 = vmatmul.bf16.vlgmr.msrb.gmra.mxu0 %v7604_v63  ;;  %v6699_v63 = vld [vmem:[%s8879_s9 + $0x610] sm:$0xff]  ;;  %908 = vst [vmem:[#allocation1] ss:$9 sm:$0xff] %v93_v21  ;;  %v6750_v41 = vld [vmem:[%s8879_s9 + $0x7a8] sm:$0xff] }
  0xd5   :  { %3591 = vmatpush.bf16.msra.mxu0 %v6704_v37  ;;  %3560 = vmatmul.bf16.vlgmr.msrb.gmra.mxu1 %v7608_v1  ;;  %v6715_v1 = vld [vmem:[%s8879_s9 + $0x690] sm:$0xff] }
  0xd6   :  { %3604 = vmatpush.bf16.msra.mxu1 %v6712_v38  ;;  %3573 = vmatmul.bf16.vlgmr.msrb.gmra.mxu2 %v7606_v0  ;;  %v6707_v0 = vld [vmem:[%s8879_s9 + $0x650] sm:$0xff]  ;;  %v3994_v38 = vld [vmem:[%s8881_s2] sm:$0xff] }
  0xd7   :  { %3617 = vmatpush.bf16.msra.mxu2 %v6720_v40  ;;  %3586 = vmatmul.bf16.vlgmr.msrb.gmra.mxu3 %v7610_v2  ;;  %v6759_v37 = vld [vmem:[%s8879_s9 + $0x7f0] sm:$0xff]  ;;  %v6742_v40 = vld [vmem:[%s8879_s9 + $0x768] sm:$0xff] }
  0xd8   :  { %3630 = vmatpush.bf16.msra.mxu3 %v6728_v42  ;;  %3998 = vperm.xlu0 %6900, %v3994_v38   ;;  %v6758_v42 = vld [vmem:[%s8879_s9 + $0x7e8] sm:$0xff]  ;;  %v6767_v21 = vld [vmem:[%s8879_s9 + $0x830] sm:$0xff]  ;;  %v6780_v38 = vld [vmem:[%s8879_s9 + $0x898] sm:$0xff] }
  0xd9   :  { %3592 = vmatpush.bf16.msra.mxu0 %v6703_v43  ;;  %v7769_v61 = vpop.f32.mrf.mxu2  ;;  %v3342_v3 = vpop.f32.mrf.mxu0 }
  0xda   :  { %3605 = vmatpush.bf16.msra.mxu1 %v6711_v44  ;;  %v7783_v2 = vpop.f32.mrf.mxu3  ;;  %v3355_v5 = vpop.f32.mrf.mxu1  ;;  %v6733_v44 = vld [vmem:[%s8879_s9 + $0x720] sm:$0xff]  ;;  %v6755_v3 = vld [vmem:[%s8879_s9 + $0x7d0] sm:$0xff] }
  0xdb   :  { %3618 = vmatpush.bf16.msra.mxu2 %v6719_v45  ;;  %v6741_v45 = vld [vmem:[%s8879_s9 + $0x760] sm:$0xff]  ;;  %v6738_v5 = vld [vmem:[%s8879_s9 + $0x748] sm:$0xff] }
  0xdc   :  { %3631 = vmatpush.bf16.msra.mxu3 %v6727_v46  ;;  %v6749_v46 = vld [vmem:[%s8879_s9 + $0x7a0] sm:$0xff] }
  0xdd   :  { %3593 = vmatpush.bf16.msra.mxu0 %v6702_v47 }
  0xde   :  { %3606 = vmatpush.bf16.msra.mxu1 %v6710_v48  ;;  %v6903_v48 = vld [vmem:[%s8883_s11] ss:$0 sm:$0xff]  ;;  %s8888_s11 = sld [smem:[#allocation11_spill]] }
  0xdf   :  { %3619 = vmatpush.bf16.msra.mxu2 %v6718_v49  ;;  %v6757_v49 = vld [vmem:[%s8879_s9 + $0x7e0] sm:$0xff]  ;;  %v3289_v55 = vadd.f32 %v6903_v48, %v7630_v9  ;;  %v6739_v9 = vld [vmem:[%s8879_s9 + $0x750] sm:$0xff] }
  0xe0   :  { %3632 = vmatpush.bf16.msra.mxu3 %v6726_v50  ;;  %v3995_v50 = vld [vmem:[%s8881_s2 + $0x8] sm:$0xff]  ;;  %s8885_s2 = sld [smem:[#allocation7_spill]] }
  0xe1   :  { %3594 = vmatpush.bf16.msra.mxu0 %v6701_v51  ;;  %v3368_v11 = vpop.f32.mrf.mxu2  ;;  %v6732_v51 = vld [vmem:[%s8879_s9 + $0x718] sm:$0xff]  ;;  %4001 = vperm.xlu0 %6900, %v3995_v50  }
  0xe2   :  { %3607 = vmatpush.bf16.msra.mxu1 %v6709_v52  ;;  %v3381_v17 = vpop.f32.mrf.mxu3  ;;  %v6740_v52 = vld [vmem:[%s8879_s9 + $0x758] sm:$0xff] }
  0xe3   :  { %3620 = vmatpush.bf16.msra.mxu2 %v6717_v53  ;;  %v6748_v53 = vld [vmem:[%s8879_s9 + $0x798] sm:$0xff] }
  0xe4   :  { %3633 = vmatpush.bf16.msra.mxu3 %v6725_v57  ;;  %v6784_v17 = vld [vmem:[%s8879_s9 + $0x8b8] sm:$0xff] }
  0xe5   :  { %3595 = vmatpush.bf16.msra.mxu0 %v6700_v58  ;;  %v6756_v58 = vld [vmem:[%s8879_s9 + $0x7d8] sm:$0xff] }
  0xe6   :  { %3608 = vmatpush.bf16.msra.mxu1 %v6708_v59 }
  0xe7   :  { %3621 = vmatpush.bf16.msra.mxu2 %v6716_v60 }
  0xe8   :  { %3634 = vmatpush.bf16.msra.mxu3 %v6724_v62  ;;  %v6731_v62 = vld [vmem:[%s8879_s9 + $0x710] sm:$0xff] }
  0xe9   :  { %3596 = vmatpush.bf16.msra.mxu0 %v6699_v63  ;;  %v6747_v63 = vld [vmem:[%s8879_s9 + $0x790] sm:$0xff] }
  0xea   :  { %3609 = vmatpush.bf16.msra.mxu1 %v6707_v0 }
  0xeb   :  { %3622 = vmatpush.bf16.msra.mxu2 %v6715_v1  ;;  %v3302_v1 = vadd.f32 %v7638_v12, %v3289_v55  ;;  %v6746_v12 = vld [vmem:[%s8879_s9 + $0x788] sm:$0xff] }
  0xec   :  { %3635 = vmatpush.bf16.msra.mxu3 %v6723_v6  ;;  %v6786_v55 = vld [vmem:[%s8879_s9 + $0x8c8] sm:$0xff] }
  0xed   :  { %3597 = vmatpush.bf16.msra.mxu0 %v6698_v7  ;;  %v3315_v6 = vadd.f32 %v7658_v20, %v3302_v1  ;;  %v6745_v20 = vld [vmem:[%s8879_s9 + $0x780] sm:$0xff]  ;;  %v94_v1 = vld [vmem:[%s8880_s3 + $0x28] sm:$0xff] }
  0xee   :  { %3610 = vmatpush.bf16.msra.mxu1 %v6706_v8  ;;  %v6754_v8 = vld [vmem:[%s8879_s9 + $0x7c8] sm:$0xff] }
  0xef   :  { %3623 = vmatpush.bf16.msra.mxu2 %v6714_v10  ;;  %v6729_v10 = vld [vmem:[%s8879_s9 + $0x700] sm:$0xff] }
  0xf0   :  { %3636 = vmatpush.bf16.msra.mxu3 %v6722_v13  ;;  %v6737_v13 = vld [vmem:[%s8879_s9 + $0x740] sm:$0xff] }
  0xf1   :  { %3598 = vmatpush.bf16.msra.mxu0 %v6697_v14  ;;  %v7865_v43 = vpop.f32.mrf.mxu0  ;;  %v3328_v14 = vadd.f32 %v7669_v25, %v3315_v6  ;;  %v6792_v25 = vld [vmem:[%s8879_s9 + $0x8f8] sm:$0xff] }
  0xf2   :  { %3611 = vmatpush.bf16.msra.mxu1 %v6705_v15  ;;  %v7876_v47 = vpop.f32.mrf.mxu1  ;;  %v6768_v15 = vld [vmem:[%s8879_s9 + $0x838] sm:$0xff] }
  0xf3   :  { %3624 = vmatpush.bf16.msra.mxu2 %v6713_v16  ;;  %v6776_v16 = vld [vmem:[%s8879_s9 + $0x878] sm:$0xff] }
  0xf4   :  { %3637 = vmatpush.bf16.msra.mxu3 %v6721_v23  ;;  %3599 = vmatmul.bf16.vlgmr.msra.gmra.mxu0 %v899_v24  ;;  %v6783_v23 = vld [vmem:[%s8879_s9 + $0x8b0] sm:$0xff]  ;;  %v6824_v6 = vld [vmem:[%s8879_s9 + $0x9f8] sm:$0xff] }
  0xf5   :  { %3643 = vmatpush.bf16.msrb.mxu0 %v6736_v18  ;;  %3612 = vmatmul.bf16.vlgmr.msra.gmra.mxu1 %v900_v28  ;;  %v6753_v18 = vld [vmem:[%s8879_s9 + $0x7c0] sm:$0xff]  ;;  %v6782_v28 = vld [vmem:[%s8879_s9 + $0x8a8] sm:$0xff] }
  0xf6   :  { %3656 = vmatpush.bf16.msrb.mxu1 %v6744_v19  ;;  %3625 = vmatmul.bf16.vlgmr.msra.gmra.mxu2 %v901_v26  ;;  %v3341_v19 = vadd.f32 %v7750_v54, %v3328_v14  ;;  %v6791_v54 = vld [vmem:[%s8879_s9 + $0x8f0] sm:$0xff]  ;;  %v6766_v26 = vld [vmem:[%s8879_s9 + $0x828] sm:$0xff] }
  0xf7   :  { %3669 = vmatpush.bf16.msrb.mxu2 %v6752_v22  ;;  %3638 = vmatmul.bf16.vlgmr.msra.gmra.mxu3 %v902_v29  ;;  %v6775_v22 = vld [vmem:[%s8879_s9 + $0x870] sm:$0xff]  ;;  %v8080_v14 = vld [vmem:[#allocation1 + $0x24] sm:$0xff] }
  0xf8   :  { %3682 = vmatpush.bf16.msrb.mxu3 %v6760_v27  ;;  %v3354_v24 = vadd.f32 %v7755_v56, %v3341_v19  ;;  %v6774_v27 = vld [vmem:[%s8879_s9 + $0x868] sm:$0xff] }
  0xf9   :  { %3644 = vmatpush.bf16.msrb.mxu0 %v6735_v30  ;;  %v7897_v57 = vpop.f32.mrf.mxu2  ;;  %v3394_v59 = vpop.f32.mrf.mxu0  ;;  %v6790_v56 = vld [vmem:[%s8879_s9 + $0x8e8] sm:$0xff] }
  0xfa   :  { %3657 = vmatpush.bf16.msrb.mxu1 %v6743_v31  ;;  %v7902_v60 = vpop.f32.mrf.mxu3  ;;  %v3407_v0 = vpop.f32.mrf.mxu1  ;;  %v3367_v30 = vadd.f32 %v7769_v61, %v3354_v24  ;;  %v6765_v31 = vld [vmem:[%s8879_s9 + $0x820] sm:$0xff]  ;;  %v6798_v19 = vld [vmem:[%s8879_s9 + $0x928] sm:$0xff] }
  0xfb   :  { %3670 = vmatpush.bf16.msrb.mxu2 %v6751_v32  ;;  %v6789_v61 = vld [vmem:[%s8879_s9 + $0x8e0] sm:$0xff]  ;;  %v6808_v0 = vld [vmem:[%s8879_s9 + $0x978] sm:$0xff] }
  0xfc   :  { %3683 = vmatpush.bf16.msrb.mxu3 %v6759_v37  ;;  %v6772_v37 = vld [vmem:[%s8879_s9 + $0x858] sm:$0xff]  ;;  %v6761_v59 = vld [vmem:[%s8879_s9 + $0x800] sm:$0xff] }
  0xfd   :  { %3645 = vmatpush.bf16.msrb.mxu0 %v6734_v39 }
  0xfe   :  { %3658 = vmatpush.bf16.msrb.mxu1 %v6742_v40 }
  0xff   :  { %3671 = vmatpush.bf16.msrb.mxu2 %v6750_v41 }
 0x100   :  { %3684 = vmatpush.bf16.msrb.mxu3 %v6758_v42 }
 0x101   :  { %3646 = vmatpush.bf16.msrb.mxu0 %v6733_v44  ;;  %v3420_v7 = vpop.f32.mrf.mxu2  ;;  %v6763_v44 = vld [vmem:[%s8879_s9 + $0x810] sm:$0xff] }
 0x102   :  { %3659 = vmatpush.bf16.msrb.mxu1 %v6741_v45  ;;  %v3433_v11 = vpop.f32.mrf.mxu3  ;;  %v910_v7 = vld [vmem:[#allocation1 + $0x9] sm:$0xff] }
 0x103   :  { %3672 = vmatpush.bf16.msrb.mxu2 %v6749_v46  ;;  %v6779_v46 = vld [vmem:[%s8879_s9 + $0x890] sm:$0xff] }
 0x104   :  { %3685 = vmatpush.bf16.msrb.mxu3 %v6757_v49  ;;  %v6787_v49 = vld [vmem:[%s8879_s9 + $0x8d0] sm:$0xff] }
 0x105   :  { %3647 = vmatpush.bf16.msrb.mxu0 %v6732_v51  ;;  %v6762_v51 = vld [vmem:[%s8879_s9 + $0x808] sm:$0xff] }
 0x106   :  { %3660 = vmatpush.bf16.msrb.mxu1 %v6740_v52  ;;  %v6770_v52 = vld [vmem:[%s8879_s9 + $0x848] sm:$0xff] }
 0x107   :  { %3673 = vmatpush.bf16.msrb.mxu2 %v6748_v53 }
 0x108   :  { %3686 = vmatpush.bf16.msrb.mxu3 %v6756_v58 }
 0x109   :  { %3648 = vmatpush.bf16.msrb.mxu0 %v6731_v62  ;;  %v6769_v62 = vld [vmem:[%s8879_s9 + $0x840] sm:$0xff] }
 0x10a   :  { %3661 = vmatpush.bf16.msrb.mxu1 %v6739_v9  ;;  %v6777_v9 = vld [vmem:[%s8879_s9 + $0x880] sm:$0xff] }
 0x10b   :  { %3674 = vmatpush.bf16.msrb.mxu2 %v6747_v63 }
 0x10c   :  { %3687 = vmatpush.bf16.msrb.mxu3 %v6755_v3  ;;  %v6816_v3 = vld [vmem:[%s8879_s9 + $0x9b8] sm:$0xff] }
 0x10d   :  { %3649 = vmatpush.bf16.msrb.mxu0 %v6730_v4  ;;  %v6785_v4 = vld [vmem:[%s8879_s9 + $0x8c0] sm:$0xff] }
 0x10e   :  { %3662 = vmatpush.bf16.msrb.mxu1 %v6738_v5  ;;  %v909_v5 = vld [vmem:[#allocation1] sm:$0xff] }
 0x10f   :  { %3675 = vmatpush.bf16.msrb.mxu2 %v6746_v12  ;;  %v911_v12 = vld [vmem:[#allocation1 + $0x12] sm:$0xff] }
 0x110   :  { %3688 = vmatpush.bf16.msrb.mxu3 %v6754_v8  ;;  %v912_v8 = vld [vmem:[#allocation1 + $0x1b] sm:$0xff] }
 0x111   :  { %3650 = vmatpush.bf16.msrb.mxu0 %v6729_v10  ;;  %v3444_v29 = vpop.f32.mrf.mxu0  ;;  %v6799_v10 = vld [vmem:[%s8879_s9 + $0x930] sm:$0xff] }
 0x112   :  { %3663 = vmatpush.bf16.msrb.mxu1 %v6737_v13  ;;  %v7989_v32 = vpop.f32.mrf.mxu1  ;;  %v6807_v13 = vld [vmem:[%s8879_s9 + $0x970] sm:$0xff] }
 0x113   :  { %3676 = vmatpush.bf16.msrb.mxu2 %v6745_v20  ;;  %v6815_v20 = vld [vmem:[%s8879_s9 + $0x9b0] sm:$0xff] }
 0x114   :  { %3689 = vmatpush.bf16.msrb.mxu3 %v6753_v18  ;;  %3651 = vmatmul.bf16.vlgmr.msrb.gmra.mxu0 %v7839_v33  ;;  %v6773_v33 = vld [vmem:[%s8879_s9 + $0x860] sm:$0xff] }
 0x115   :  { %3695 = vmatpush.bf16.msra.mxu0 %v6768_v15  ;;  %3664 = vmatmul.bf16.vlgmr.msrb.gmra.mxu1 %v7843_v35  ;;  %v3380_v35 = vadd.f32 %v7783_v2, %v3367_v30  ;;  %v6788_v2 = vld [vmem:[%s8879_s9 + $0x8d8] sm:$0xff]  ;;  %v3992_v30 = vlaneseq }
 0x116   :  { %3708 = vmatpush.bf16.msra.mxu1 %v6776_v16  ;;  %3677 = vmatmul.bf16.vlgmr.msrb.gmra.mxu2 %v7841_v34  ;;  %v6781_v34 = vld [vmem:[%s8879_s9 + $0x8a0] sm:$0xff]  ;;  %v8082_v15 = vld [vmem:[#allocation1 + $0x36] sm:$0xff]  ;;  %v8084_v16 = vld [vmem:[#allocation1 + $0x2d] sm:$0xff] }
 0x117   :  { %3721 = vmatpush.bf16.msra.mxu2 %v6784_v17  ;;  %3690 = vmatmul.bf16.vlgmr.msrb.gmra.mxu3 %v7845_v36  ;;  %v6764_v36 = vld [vmem:[%s8879_s9 + $0x818] sm:$0xff]  ;;  %v3393_v39 = vadd.f32 %v7865_v43, %v3380_v35  ;;  %v6771_v43 = vld [vmem:[%s8879_s9 + $0x850] sm:$0xff] }
 0x118   :  { %3734 = vmatpush.bf16.msra.mxu3 %v6792_v25  ;;  %v8086_v17 = vld [vmem:[#allocation1 + $0x3f] sm:$0xff]  ;;  %v6823_v25 = vld [vmem:[%s8879_s9 + $0x9f0] sm:$0xff] }
 0x119   :  { %3696 = vmatpush.bf16.msra.mxu0 %v6767_v21  ;;  %v3470_v40 = vpop.f32.mrf.mxu2  ;;  %v3446_v42 = vpop.f32.mrf.mxu0  ;;  %v3406_v48 = vadd.f32 %v7876_v47, %v3393_v39  ;;  %v6778_v47 = vld [vmem:[%s8879_s9 + $0x888] sm:$0xff]  ;;  %918 = vst [vmem:[#allocation1] ss:$9 sm:$0xff] %v94_v1  ;;  %v6804_v35 = vld [vmem:[%s8879_s9 + $0x958] sm:$0xff]  ;;  %v6801_v1 = vld [vmem:[%s8879_s9 + $0x940] sm:$0xff] }
 0x11a   :  { %3709 = vmatpush.bf16.msra.mxu1 %v6775_v22  ;;  %v8014_v41 = vpop.f32.mrf.mxu3  ;;  %v3459_v45 = vpop.f32.mrf.mxu1  ;;  %v6806_v21 = vld [vmem:[%s8879_s9 + $0x968] sm:$0xff]  ;;  %v6795_v42 = vld [vmem:[%s8879_s9 + $0x910] sm:$0xff] }
 0x11b   :  { %3722 = vmatpush.bf16.msra.mxu2 %v6783_v23  ;;  %v3419_v50 = vadd.f32 %v7897_v57, %v3406_v48  ;;  %v6814_v22 = vld [vmem:[%s8879_s9 + $0x9a8] sm:$0xff]  ;;  %v6803_v45 = vld [vmem:[%s8879_s9 + $0x950] sm:$0xff] }
 0x11c   :  { %3735 = vmatpush.bf16.msra.mxu3 %v6791_v54  ;;  %v6822_v54 = vld [vmem:[%s8879_s9 + $0x9e8] sm:$0xff] }
 0x11d   :  { %3697 = vmatpush.bf16.msra.mxu0 %v6766_v26  ;;  %v3432_v58 = vadd.f32 %v7902_v60, %v3419_v50  ;;  %v6800_v60 = vld [vmem:[%s8879_s9 + $0x938] sm:$0xff] }
 0x11e   :  { %3710 = vmatpush.bf16.msra.mxu1 %v6774_v27  ;;  %v6797_v27 = vld [vmem:[%s8879_s9 + $0x920] sm:$0xff] }
 0x11f   :  { %3723 = vmatpush.bf16.msra.mxu2 %v6782_v28  ;;  %v3445_v63 = vadd.f32 %v3444_v29, %v3432_v58  ;;  %v6813_v29 = vld [vmem:[%s8879_s9 + $0x9a0] sm:$0xff] }
 0x120   :  { %3736 = vmatpush.bf16.msra.mxu3 %v6790_v56  ;;  %v6805_v56 = vld [vmem:[%s8879_s9 + $0x960] sm:$0xff] }
 0x121   :  { %3698 = vmatpush.bf16.msra.mxu0 %v6765_v31  ;;  %v3472_v53 = vpop.f32.mrf.mxu2  ;;  %v3458_v11 = vadd.f32 %v7989_v32, %v3445_v63  ;;  %v8117_v31 = vpop.permute.xlu1 %4004  ;;  %v6821_v32 = vld [vmem:[%s8879_s9 + $0x9e0] sm:$0xff] }
 0x122   :  { %3711 = vmatpush.bf16.msra.mxu1 %v6773_v33  ;;  %v3485_v57 = vpop.f32.mrf.mxu3  ;;  %v8123_v33 = vand.u32 127, %v3992_v30  ;;  %v6802_v53 = vld [vmem:[%s8879_s9 + $0x948] sm:$0xff] }
 0x123   :  { %3724 = vmatpush.bf16.msra.mxu2 %v6781_v34  ;;  %v3471_v18 = vadd.f32 %v3470_v40, %v3458_v11  ;;  %v4023_v34 = vpop.permute.xlu2 %4022 }
 0x124   :  { %3737 = vmatpush.bf16.msra.mxu3 %v6789_v61  ;;  %v6796_v61 = vld [vmem:[%s8879_s9 + $0x918] sm:$0xff]  ;;  %vm4028_vm0 = vcmp.eq.s32.totalorder %v8123_v33, %v4023_v34  ;;  %v6829_v34 = vld [vmem:[%s8879_s9 + $0xa20] sm:$0xff]  ;;  %vm4008_vm4 = vcmp.eq.s32.totalorder %v8123_v33, %v8117_v31 }
 0x125   :  { %3699 = vmatpush.bf16.msra.mxu0 %v6764_v36  ;;  %v3484_v23 = vadd.f32 %v8014_v41, %v3471_v18  ;;  %v6812_v36 = vld [vmem:[%s8879_s9 + $0x998] sm:$0xff]  ;;  %v6839_v18 = vld [vmem:[%s8879_s9 + $0xa70] sm:$0xff] }
 0x126   :  { %3712 = vmatpush.bf16.msra.mxu1 %v6772_v37  ;;  %v6864_v31 = vld [vmem:[%s8879_s9 + $0xb38] sm:$0xff] }
 0x127   :  { %3725 = vmatpush.bf16.msra.mxu2 %v6780_v38  ;;  %v6820_v38 = vld [vmem:[%s8879_s9 + $0x9d8] sm:$0xff] }
 0x128   :  { %3738 = vmatpush.bf16.msra.mxu3 %v6788_v2  ;;  %v6929_v2 = vmov 0.0  }
 0x129   :  { %3700 = vmatpush.bf16.msra.mxu0 %v6763_v44  ;;  %v8143_v41 = vsel %vm4028_vm0, 1.0, %v6929_v2  ;;  %vm4232_vm0 = vcmask 23552  }
 0x12a   :  { %3713 = vmatpush.bf16.msra.mxu1 %v6771_v43  ;;  %v6811_v43 = vld [vmem:[%s8879_s9 + $0x990] sm:$0xff]  ;;  %v4057_v48 = vsel %vm4055_vm1, %v8143_v41, 0.0 }
 0x12b   :  { %3726 = vmatpush.bf16.msra.mxu2 %v6779_v46  ;;  %v4020_v46 = vpop.permute.xlu1 %4019 }
 0x12c   :  { %3739 = vmatpush.bf16.msra.mxu3 %v6787_v49  ;;  %vm4027_vm2 = vcmp.eq.s32.totalorder %v8123_v33, %v4020_v46  ;;  %v6819_v49 = vld [vmem:[%s8879_s9 + $0x9d0] sm:$0xff]  ;;  %v6852_v46 = vld [vmem:[%s8879_s9 + $0xad8] sm:$0xff] }
 0x12d   :  { %3701 = vmatpush.bf16.msra.mxu0 %v6762_v51  ;;  %v8161_v50 = vsel %vm4027_vm2, 1.0, %v6929_v2  ;;  %v4026_v51 = vpop.permute.xlu2 %4025  ;;  %vm4272_vm2 = vcmask 31744  }
 0x12e   :  { %3714 = vmatpush.bf16.msra.mxu1 %v6770_v52  ;;  %v6794_v52 = vld [vmem:[%s8879_s9 + $0x908] sm:$0xff]  ;;  %vm4029_vm3 = vcmp.eq.s32.totalorder %v8123_v33, %v4026_v51 }
 0x12f   :  { %3727 = vmatpush.bf16.msra.mxu2 %v6778_v47  ;;  %v4056_v47 = vsel %vm4055_vm1, %v8161_v50, 0.0 }
 0x130   :  { %3740 = vmatpush.bf16.msra.mxu3 %v6786_v55  ;;  %v6810_v55 = vld [vmem:[%s8879_s9 + $0x988] sm:$0xff]  ;;  %v4058_v58 = vadd.f32 %v4057_v48, %v4056_v47 }
 0x131   :  { %3702 = vmatpush.bf16.msra.mxu0 %v6761_v59  ;;  %v3496_v24 = vpop.f32.mrf.mxu0  ;;  %v8176_v59 = vsel %vm4029_vm3, 1.0, %v6929_v2 }
 0x132   :  { %3715 = vmatpush.bf16.msra.mxu1 %v6769_v62  ;;  %v8104_v26 = vadd.f32 %v3496_v24, %v3484_v23  ;;  %v8109_v28 = vpop.f32.mrf.mxu1  ;;  %v4059_v62 = vsel %vm4055_vm1, %v8176_v59, 0.0  ;;  %v4410_v23 = vld [vmem:[%s8884_s0] sm:$0xff]  ;;  %v6855_v24 = vld [vmem:[%s8879_s9 + $0xaf0] sm:$0xff] }
 0x133   :  { %3728 = vmatpush.bf16.msra.mxu2 %v6777_v9  ;;  %v6818_v9 = vld [vmem:[%s8879_s9 + $0x9c8] sm:$0xff] }
 0x134   :  { %3741 = vmatpush.bf16.msra.mxu3 %v6785_v4  ;;  %3703 = vmatmul.bf16.vlgmr.msra.gmra.mxu0 %v909_v5  ;;  %v6832_v5 = vld [vmem:[%s8879_s9 + $0xa38] sm:$0xff] }
 0x135   :  { %3747 = vmatpush.bf16.msrb.mxu0 %v6800_v60  ;;  %3716 = vmatmul.bf16.vlgmr.msra.gmra.mxu1 %v910_v7  ;;  %v4060_v60 = vadd.f32 %v4059_v62, %v4058_v58  ;;  %v6817_v7 = vld [vmem:[%s8879_s9 + $0x9c0] sm:$0xff]  ;;  %v6851_v62 = vld [vmem:[%s8879_s9 + $0xad0] sm:$0xff] }
 0x136   :  { %3760 = vmatpush.bf16.msrb.mxu1 %v6808_v0  ;;  %3729 = vmatmul.bf16.vlgmr.msra.gmra.mxu2 %v911_v12  ;;  %v6793_v0 = vld [vmem:[%s8879_s9 + $0x900] sm:$0xff]  ;;  %v6840_v12 = vld [vmem:[%s8879_s9 + $0xa78] sm:$0xff] }
 0x137   :  { %3773 = vmatpush.bf16.msrb.mxu2 %v6816_v3  ;;  %3742 = vmatmul.bf16.vlgmr.msra.gmra.mxu3 %v912_v8  ;;  %v6809_v3 = vld [vmem:[%s8879_s9 + $0x980] sm:$0xff]  ;;  %v4061_v4 = vrot.slane %v4060_v60, 4 }
 0x138   :  { %3786 = vmatpush.bf16.msrb.mxu3 %v6824_v6  ;;  %v6848_v6 = vld [vmem:[%s8879_s9 + $0xab8] sm:$0xff] }
 0x139   :  { %3748 = vmatpush.bf16.msrb.mxu0 %v6799_v10  ;;  %v8134_v37 = vpop.f32.mrf.mxu2  ;;  %v3498_v40 = vpop.f32.mrf.mxu0  ;;  %v4062_v8 = vadd.f32 %v4061_v4, %v4060_v60  ;;  %v6856_v10 = vld [vmem:[%s8879_s9 + $0xaf8] sm:$0xff]  ;;  %v6834_v60 = vld [vmem:[%s8879_s9 + $0xa48] sm:$0xff] }
 0x13a   :  { %3761 = vmatpush.bf16.msrb.mxu1 %v6807_v13  ;;  %v8140_v39 = vpop.f32.mrf.mxu3  ;;  %v3511_v44 = vpop.f32.mrf.mxu1  ;;  %v3510_v13 = vadd.f32 %v8109_v28, %v8104_v26  ;;  %v6836_v40 = vld [vmem:[%s8879_s9 + $0xa58] sm:$0xff]  ;;  %v6850_v4 = vld [vmem:[%s8879_s9 + $0xac8] sm:$0xff] }
 0x13b   :  { %3774 = vmatpush.bf16.msrb.mxu2 %v6815_v20  ;;  %v4063_v11 = vrot.slane %v4062_v8, 2  ;;  %v6831_v20 = vld [vmem:[%s8879_s9 + $0xa30] sm:$0xff] }
 0x13c   :  { %3787 = vmatpush.bf16.msrb.mxu3 %v6823_v25  ;;  %v6847_v25 = vld [vmem:[%s8879_s9 + $0xab0] sm:$0xff] }
 0x13d   :  { %3749 = vmatpush.bf16.msrb.mxu0 %v6798_v19  ;;  %v4064_v19 = vadd.f32 %v4063_v11, %v4062_v8  ;;  %v6872_v8 = vld [vmem:[%s8879_s9 + $0xb78] sm:$0xff] }
 0x13e   :  { %3762 = vmatpush.bf16.msrb.mxu1 %v6806_v21  ;;  %v8218_v21 = vld [vmem:[#allocation1] sm:$0xff]  ;;  %v6880_v11 = vld [vmem:[%s8879_s9 + $0xbb8] sm:$0xff] }
 0x13f   :  { %3775 = vmatpush.bf16.msrb.mxu2 %v6814_v22  ;;  %v8220_v22 = vld [vmem:[#allocation1 + $0x9] sm:$0xff]  ;;  %v4065_v26 = vrot.slane %v4064_v19, 1 }
 0x140   :  { %3788 = vmatpush.bf16.msrb.mxu3 %v6822_v54  ;;  %v3523_v54 = vadd.f32 %v8134_v37, %v3510_v13  ;;  %4412 = vst [vmem:[#allocation1] ss:$2 sm:$0xff] %v4410_v23  ;;  %v6849_v13 = vld [vmem:[%s8879_s9 + $0xac0] sm:$0xff]  ;;  %v6888_v23 = vld [vmem:[%s8879_s9 + $0xbf8] sm:$0xff] }
 0x141   :  { %3750 = vmatpush.bf16.msrb.mxu0 %v6797_v27  ;;  %v3524_v57 = vpop.f32.mrf.mxu2  ;;  %v6830_v27 = vld [vmem:[%s8879_s9 + $0xa28] sm:$0xff] }
 0x142   :  { %3763 = vmatpush.bf16.msrb.mxu1 %v6805_v56  ;;  %v3537_v63 = vpop.f32.mrf.mxu3  ;;  %v3536_v28 = vadd.f32 %v8140_v39, %v3523_v54  ;;  %v6828_v39 = vld [vmem:[%s8879_s9 + $0xa18] sm:$0xff]  ;;  %v6843_v57 = vld [vmem:[%s8879_s9 + $0xa90] sm:$0xff] }
 0x143   :  { %3776 = vmatpush.bf16.msrb.mxu2 %v6813_v29  ;;  %v6826_v63 = vld [vmem:[%s8879_s9 + $0xa08] sm:$0xff] }
 0x144   :  { %3789 = vmatpush.bf16.msrb.mxu3 %v6821_v32 }
 0x145   :  { %3751 = vmatpush.bf16.msrb.mxu0 %v6796_v61 }
 0x146   :  { %3764 = vmatpush.bf16.msrb.mxu1 %v6804_v35  ;;  %v6837_v35 = vld [vmem:[%s8879_s9 + $0xa60] sm:$0xff] }
 0x147   :  { %3777 = vmatpush.bf16.msrb.mxu2 %v6812_v36  ;;  %v6845_v36 = vld [vmem:[%s8879_s9 + $0xaa0] sm:$0xff] }
 0x148   :  { %3790 = vmatpush.bf16.msrb.mxu3 %v6820_v38  ;;  %v6853_v38 = vld [vmem:[%s8879_s9 + $0xae0] sm:$0xff] }
 0x149   :  { %3752 = vmatpush.bf16.msrb.mxu0 %v6795_v42  ;;  %v6844_v42 = vld [vmem:[%s8879_s9 + $0xa98] sm:$0xff] }
 0x14a   :  { %3765 = vmatpush.bf16.msrb.mxu1 %v6803_v45 }
 0x14b   :  { %3778 = vmatpush.bf16.msrb.mxu2 %v6811_v43 }
 0x14c   :  { %3791 = vmatpush.bf16.msrb.mxu3 %v6819_v49 }
 0x14d   :  { %3753 = vmatpush.bf16.msrb.mxu0 %v6794_v52  ;;  %v6827_v52 = vld [vmem:[%s8879_s9 + $0xa10] sm:$0xff] }
 0x14e   :  { %3766 = vmatpush.bf16.msrb.mxu1 %v6802_v53 }
 0x14f   :  { %3779 = vmatpush.bf16.msrb.mxu2 %v6810_v55  ;;  %v6835_v55 = vld [vmem:[%s8879_s9 + $0xa50] sm:$0xff] }
 0x150   :  { %3792 = vmatpush.bf16.msrb.mxu3 %v6818_v9 }
 0x151   :  { %3754 = vmatpush.bf16.msrb.mxu0 %v6793_v0  ;;  %v3548_v56 = vpop.f32.mrf.mxu0  ;;  %v6842_v0 = vld [vmem:[%s8879_s9 + $0xa88] sm:$0xff] }
 0x152   :  { %3767 = vmatpush.bf16.msrb.mxu1 %v6801_v1  ;;  %v3549_v32 = vadd.f32 %v3548_v56, %v3536_v28  ;;  %v3561_v61 = vpop.f32.mrf.mxu1  ;;  %v6887_v28 = vld [vmem:[%s8879_s9 + $0xbf0] sm:$0xff] }
 0x153   :  { %3780 = vmatpush.bf16.msrb.mxu2 %v6809_v3 }
 0x154   :  { %3793 = vmatpush.bf16.msrb.mxu3 %v6817_v7  ;;  %3755 = vmatmul.bf16.vlgmr.msrb.gmra.mxu0 %v8080_v14  ;;  %v6838_v14 = vld [vmem:[%s8879_s9 + $0xa68] sm:$0xff]  ;;  %v3562_v37 = vadd.f32 %v3561_v61, %v3549_v32  ;;  %v6841_v7 = vld [vmem:[%s8879_s9 + $0xa80] sm:$0xff] }
 0x155   :  { %3799 = vmatpush.bf16.msra.mxu0 %v6832_v5  ;;  %3768 = vmatmul.bf16.vlgmr.msrb.gmra.mxu1 %v8084_v16  ;;  %v4066_v16 = vadd.f32 %v4065_v26, %v4064_v19  ;;  %v921_v19 = vld [vmem:[#allocation1 + $0x12] sm:$0xff] }
 0x156   :  { %3812 = vmatpush.bf16.msra.mxu1 %v6840_v12  ;;  %3781 = vmatmul.bf16.vlgmr.msrb.gmra.mxu2 %v8082_v15  ;;  %v6846_v15 = vld [vmem:[%s8879_s9 + $0xaa8] sm:$0xff]  ;;  %v6825_v12 = vld [vmem:[%s8879_s9 + $0xa00] sm:$0xff] }
 0x157   :  { %3825 = vmatpush.bf16.msra.mxu2 %v6848_v6  ;;  %3794 = vmatmul.bf16.vlgmr.msrb.gmra.mxu3 %v8086_v17  ;;  %v6854_v17 = vld [vmem:[%s8879_s9 + $0xae8] sm:$0xff]  ;;  %v8246_v29 = vadd.f32 1.0, %v4066_v16  ;;  %v6833_v6 = vld [vmem:[%s8879_s9 + $0xa40] sm:$0xff] }
 0x158   :  { %3838 = vmatpush.bf16.msra.mxu3 %v6856_v10  ;;  %v8319_v10 = vsel %vm4008_vm4, 1.0, %v6929_v2 }
 0x159   :  { %3800 = vmatpush.bf16.msra.mxu0 %v6831_v20  ;;  %6912 = vrsqrt.f32 %v8246_v29  ;;  %v3574_v44 = vpop.f32.mrf.mxu2  ;;  %v3550_v49 = vpop.f32.mrf.mxu0  ;;  %vm4157_vm5 = vweird.f32 %v8246_v29 }
 0x15a   :  { %3813 = vmatpush.bf16.msra.mxu1 %v6839_v18  ;;  %v3575_v45 = vadd.f32 %v3574_v44, %v3562_v37  ;;  %v3587_v48 = vpop.f32.mrf.mxu3  ;;  %v3563_v53 = vpop.f32.mrf.mxu1  ;;  %v8328_v18 = vshrl.u32 %v3992_v30, 7  ;;  %v6863_v30 = vld [vmem:[%s8879_s9 + $0xb30] sm:$0xff]  ;;  %v6861_v37 = vld [vmem:[%s8879_s9 + $0xb20] sm:$0xff] }
 0x15b   :  { %3826 = vmatpush.bf16.msra.mxu2 %v6847_v25  ;;  %v6904_v25 = vld [vmem:[%s8885_s2] ss:$0 sm:$0xff] }
 0x15c   :  { %3839 = vmatpush.bf16.msra.mxu3 %v6855_v24  ;;  %v8273_v51 = vadd.f32 %v3587_v48, %v3575_v45  ;;  %v3999_v24 = vpop.permute.xlu0 %3998  ;;  %vm4041_vm8 = vcmp.eq.s32.totalorder %v8328_v18, %v6904_v25  ;;  %v4038_v32 = vadd.s32 8, %v8328_v18 }
 0x15d   :  { %3801 = vmatpush.bf16.msra.mxu0 %v6830_v27  ;;  %v922_v27 = vld [vmem:[#allocation1 + $0x1b] sm:$0xff]  ;;  %v8351_v16 = vsel %vm4041_vm8, 1.0, %v6929_v2  ;;  %vm4006_vm13 = vcmp.eq.s32.totalorder %v8123_v33, %v3999_v24  ;;  %v8466_v24 = vld [vmem:[%s8886_s1 + $0x10] sm:$0xff] }
 0x15e   :  { %3814 = vmatpush.bf16.msra.mxu1 %v6838_v14  ;;  %v6871_v14 = vld [vmem:[%s8879_s9 + $0xb70] sm:$0xff]  ;;  %v4048_v56 = vsel %vm4047_vm9, %v8351_v16, 0.0  ;;  %vm4042_vm11 = vcmp.eq.s32.totalorder %v4038_v32, %v6904_v25  ;;  %v8412_v53 = vsel %vm4006_vm13, 1.0, %v6929_v2 }
 0x15f   :  { %3827 = vmatpush.bf16.msra.mxu2 %v6846_v15  ;;  %v6913_v43 = vpop.eup %6912  ;;  %v6879_v15 = vld [vmem:[%s8879_s9 + $0xbb0] sm:$0xff]  ;;  %4049 = vadd.xlane.f32.xlu0 %v4048_v56  ;;  %v926_v56 = vld [vmem:[#allocation1 + $0x3f] sm:$0xff] }
 0x160   :  { %3840 = vmatpush.bf16.msra.mxu3 %v6854_v17  ;;  %v4152_v47 = vmul.f32 %v6913_v43, %v8246_v29  ;;  %vm4158_vm6 = vweird.f32 %v6913_v43  ;;  %v6862_v29 = vld [vmem:[%s8879_s9 + $0xb28] sm:$0xff] }
 0x161   :  { %3802 = vmatpush.bf16.msra.mxu0 %v6829_v34  ;;  %v3576_v1 = vpop.f32.mrf.mxu2  ;;  %vm4159_vm7 = vmor %vm4157_vm5, %vm4158_vm6  ;;  %v6886_v34 = vld [vmem:[%s8879_s9 + $0xbe8] sm:$0xff] }
 0x162   :  { %3815 = vmatpush.bf16.msra.mxu1 %v6837_v35  ;;  %v4153_v58 = vmul.f32 %v6913_v43, %v4152_v47  ;;  %v3589_v5 = vpop.f32.mrf.mxu3 }
 0x163   :  { %3828 = vmatpush.bf16.msra.mxu2 %v6845_v36  ;;  %v6867_v5 = vld [vmem:[%s8879_s9 + $0xb50] sm:$0xff] }
 0x164   :  { %3841 = vmatpush.bf16.msra.mxu3 %v6853_v38  ;;  %v4154_v9 = vmul.f32 0.5, %v4153_v58  ;;  %v6884_v58 = vld [vmem:[%s8879_s9 + $0xbd8] sm:$0xff] }
 0x165   :  { %3803 = vmatpush.bf16.msra.mxu0 %v6828_v39  ;;  %v4002_v39 = vpop.permute.xlu0 %4001 }
 0x166   :  { %3816 = vmatpush.bf16.msra.mxu1 %v6836_v40  ;;  %v4155_v3 = vsub.f32 1.5, %v4154_v9  ;;  %v6869_v40 = vld [vmem:[%s8879_s9 + $0xb60] sm:$0xff]  ;;  %vm4007_vm12 = vcmp.eq.s32.totalorder %v8123_v33, %v4002_v39  ;;  %v6860_v33 = vld [vmem:[%s8879_s9 + $0xb18] sm:$0xff] }
 0x167   :  { %3829 = vmatpush.bf16.msra.mxu2 %v6844_v42  ;;  %v8388_v42 = vsel %vm4042_vm11, 1.0, %v6929_v2  ;;  %v8392_v45 = vsel %vm4007_vm12, 1.0, %v6929_v2 }
 0x168   :  { %3842 = vmatpush.bf16.msra.mxu3 %v6852_v46  ;;  %v4156_v20 = vmul.f32 %v6913_v43, %v4155_v3  ;;  %v6885_v46 = vld [vmem:[%s8879_s9 + $0xbe0] sm:$0xff] }
 0x169   :  { %3804 = vmatpush.bf16.msra.mxu0 %v6827_v52  ;;  %v6876_v52 = vld [vmem:[%s8879_s9 + $0xb98] sm:$0xff] }
 0x16a   :  { %3817 = vmatpush.bf16.msra.mxu1 %v6835_v55  ;;  %v8336_v54 = vsel %vm4159_vm7, %v6913_v43, %v4156_v20  ;;  %v4052_v43 = vsel %vm4051_vm10, %v8388_v42, 0.0  ;;  %v6882_v20 = vld [vmem:[%s8879_s9 + $0xbc8] sm:$0xff] }
 0x16b   :  { %3830 = vmatpush.bf16.msra.mxu2 %v6843_v57  ;;  %v4163_v26 = vmul.f32 %v8319_v10, %v8336_v54  ;;  %v4175_v35 = vmul.f32 %v8176_v59, %v8336_v54  ;;  %v6877_v59 = vld [vmem:[%s8879_s9 + $0xba0] sm:$0xff]  ;;  %4053 = vadd.xlane.f32.xlu1 %v4052_v43  ;;  %v4162_v49 = vmul.f32 %v8392_v45, %v8336_v54 }
 0x16c   :  { %3843 = vmatpush.bf16.msra.mxu3 %v6851_v62  ;;  %v4174_v1 = vmul.f32 %v8143_v41, %v8336_v54  ;;  %v4161_v3 = vmul.f32 %v8412_v53, %v8336_v54  ;;  %v6883_v41 = vld [vmem:[%s8879_s9 + $0xbd0] sm:$0xff] }
 0x16d   :  { %3805 = vmatpush.bf16.msra.mxu0 %v6826_v63  ;;  %v4170_v17 = vsel %vm4055_vm1, %v4163_v26, 0.0  ;;  %v4182_v48 = vsel %vm4055_vm1, %v4175_v35, 0.0  ;;  %v4167_v55 = vsel %vm4055_vm1, %v4162_v49, 0.0  ;;  %v8471_v26 = vld [vmem:[%s8887_s7 + $0x8] sm:$0xf] }
 0x16e   :  { %3818 = vmatpush.bf16.msra.mxu1 %v6834_v60  ;;  %4171 = vadd.xlane.f32.xlu2 %v4170_v17  ;;  %v6859_v60 = vld [vmem:[%s8879_s9 + $0xb10] sm:$0xff]  ;;  %v8484_v17 = vld [vmem:[%s8887_s7] sm:$0xff]  ;;  %s8890_s7 = sld [smem:[#allocation14_spill]] }
 0x16f   :  { %3831 = vmatpush.bf16.msra.mxu2 %v6842_v0  ;;  %4168 = vadd.xlane.f32.xlu0 %v4167_v55 }
 0x170   :  { %3844 = vmatpush.bf16.msra.mxu3 %v6850_v4  ;;  %v4173_v4 = vmul.f32 %v8161_v50, %v8336_v54  ;;  %v4164_v50 = vsel %vm4055_vm1, %v4161_v3, 0.0  ;;  %v6873_v54 = vld [vmem:[%s8879_s9 + $0xb80] sm:$0xff]  ;;  %v6894_v3 = vld [vmem:[%s8888_s11 + $0x28] sm:$0xff] }
 0x171   :  { %3806 = vmatpush.bf16.msra.mxu0 %v6825_v12  ;;  %v3600_v61 = vpop.f32.mrf.mxu0  ;;  %v6875_v12 = vld [vmem:[%s8879_s9 + $0xb90] sm:$0xff] }
 0x172   :  { %3819 = vmatpush.bf16.msra.mxu1 %v6833_v6  ;;  %v3601_v36 = vadd.f32 %v3600_v61, %v8273_v51  ;;  %v3613_v38 = vpop.f32.mrf.mxu1  ;;  %v6868_v51 = vld [vmem:[%s8879_s9 + $0xb58] sm:$0xff]  ;;  %v4179_v6 = vsel %vm4055_vm1, %v4174_v1, 0.0  ;;  %v4191_v1 = vld [vmem:[%s8889_s30] sm:$0x7] }
 0x173   :  { %3832 = vmatpush.bf16.msra.mxu2 %v6841_v7  ;;  %4180 = vadd.xlane.f32.xlu1 %v4179_v6  ;;  %v4176_v7 = vsel %vm4055_vm1, %v4173_v4, 0.0  ;;  %v4414_v4 = vld.sshfl [vmem:[#allocation1 + $0x8] sm:$0xff pattern:$0x75316420]  ;;  %v6893_v6 = vld [vmem:[%s8888_s11 + $0x20] sm:$0xff] }
 0x174   :  { %3845 = vmatpush.bf16.msra.mxu3 %v6849_v13  ;;  %3807 = vmatmul.bf16.vlgmr.msra.gmra.mxu0 %v8218_v21  ;;  %v6870_v21 = vld [vmem:[%s8879_s9 + $0xb68] sm:$0xff]  ;;  %v3614_v44 = vadd.f32 %v3613_v38, %v3601_v36 }
 0x175   :  { %3851 = vmatpush.bf16.msrb.mxu0 %v6864_v31  ;;  %3820 = vmatmul.bf16.vlgmr.msra.gmra.mxu1 %v8220_v22  ;;  %v6878_v22 = vld [vmem:[%s8879_s9 + $0xba8] sm:$0xff] }
 0x176   :  { %3864 = vmatpush.bf16.msrb.mxu1 %v6872_v8  ;;  %3833 = vmatmul.bf16.vlgmr.msra.gmra.mxu2 %v921_v19  ;;  %v6858_v31 = vld [vmem:[%s8879_s9 + $0xb08] sm:$0xff]  ;;  %v6857_v19 = vld [vmem:[%s8879_s9 + $0xb00] sm:$0xff] }
 0x177   :  { %3877 = vmatpush.bf16.msrb.mxu2 %v6880_v11  ;;  %3846 = vmatmul.bf16.vlgmr.msra.gmra.mxu3 %v922_v27  ;;  %v6866_v8 = vld [vmem:[%s8879_s9 + $0xb48] sm:$0xff] }
 0x178   :  { %3890 = vmatpush.bf16.msrb.mxu3 %v6888_v23  ;;  %4183 = vadd.xlane.f32.xlu2 %v4182_v48  ;;  %v6874_v11 = vld [vmem:[%s8879_s9 + $0xb88] sm:$0xff]  ;;  %v6865_v23 = vld [vmem:[%s8879_s9 + $0xb40] sm:$0xff] }
 0x179   :  { %3852 = vmatpush.bf16.msrb.mxu0 %v6863_v30  ;;  %v3626_v47 = vpop.f32.mrf.mxu2  ;;  %v3602_v9 = vpop.f32.mrf.mxu0  ;;  %4177 = vadd.xlane.f32.xlu0 %v4176_v7  ;;  %v6881_v30 = vld [vmem:[%s8879_s9 + $0xbc0] sm:$0xff]  ;;  %v6891_v7 = vld [vmem:[%s8888_s11 + $0x10] sm:$0xff] }
 0x17a   :  { %3865 = vmatpush.bf16.msrb.mxu1 %v6871_v14  ;;  %v3627_v57 = vadd.f32 %v3626_v47, %v3614_v44  ;;  %v3639_v62 = vpop.f32.mrf.mxu3  ;;  %v3615_v0 = vpop.f32.mrf.mxu1  ;;  %v923_v27 = vld [vmem:[#allocation1 + $0x24] sm:$0xff]  ;;  %v924_v14 = vld [vmem:[#allocation1 + $0x2d] sm:$0xff] }
 0x17b   :  { %3878 = vmatpush.bf16.msrb.mxu2 %v6879_v15  ;;  %v925_v15 = vld [vmem:[#allocation1 + $0x36] sm:$0xff] }
 0x17c   :  { %3891 = vmatpush.bf16.msrb.mxu3 %v6887_v28  ;;  %v3640_v63 = vadd.f32 %v3639_v62, %v3627_v57  ;;  %v8477_v28 = vld [vmem:[%s8886_s1 + $0x8] sm:$0xff]  ;;  %v6895_v0 = vld [vmem:[%s8888_s11 + $0x30] sm:$0xff] }
 0x17d   :  { %3853 = vmatpush.bf16.msrb.mxu0 %v6862_v29  ;;  %v3989_v29 = vld [vmem:[%s8886_s1] sm:$0xff] }
 0x17e   :  { %3866 = vmatpush.bf16.msrb.mxu1 %v6870_v21 }
 0x17f   :  { %3879 = vmatpush.bf16.msrb.mxu2 %v6878_v22 }
 0x180   :  { %3892 = vmatpush.bf16.msrb.mxu3 %v6886_v34  ;;  %4165 = vadd.xlane.f32.xlu2 %v4164_v50 }
 0x181   :  { %3854 = vmatpush.bf16.msrb.mxu0 %v6861_v37  ;;  %v3628_v13 = vpop.f32.mrf.mxu2 }
 0x182   :  { %3867 = vmatpush.bf16.msrb.mxu1 %v6869_v40  ;;  %v3641_v25 = vpop.f32.mrf.mxu3 }
 0x183   :  { %3880 = vmatpush.bf16.msrb.mxu2 %v6877_v59 }
 0x184   :  { %3893 = vmatpush.bf16.msrb.mxu3 %v6885_v46 }
 0x185   :  { %3855 = vmatpush.bf16.msrb.mxu0 %v6860_v33 }
 0x186   :  { %3868 = vmatpush.bf16.msrb.mxu1 %v6868_v51 }
 0x187   :  { %3881 = vmatpush.bf16.msrb.mxu2 %v6876_v52 }
 0x188   :  { %3894 = vmatpush.bf16.msrb.mxu3 %v6884_v58 }
 0x189   :  { %3856 = vmatpush.bf16.msrb.mxu0 %v6859_v60 }
 0x18a   :  { %3869 = vmatpush.bf16.msrb.mxu1 %v6867_v5 }
 0x18b   :  { %3882 = vmatpush.bf16.msrb.mxu2 %v6875_v12 }
 0x18c   :  { %3895 = vmatpush.bf16.msrb.mxu3 %v6883_v41  ;;  %v6892_v41 = vld [vmem:[%s8888_s11 + $0x18] sm:$0xff] }
 0x18d   :  { %3857 = vmatpush.bf16.msrb.mxu0 %v6858_v31 }
 0x18e   :  { %3870 = vmatpush.bf16.msrb.mxu1 %v6866_v8  ;;  %v6890_v8 = vld [vmem:[%s8888_s11 + $0x8] sm:$0xff] }
 0x18f   :  { %3883 = vmatpush.bf16.msrb.mxu2 %v6874_v11 }
 0x190   :  { %3896 = vmatpush.bf16.msrb.mxu3 %v6882_v20 }
 0x191   :  { %3858 = vmatpush.bf16.msrb.mxu0 %v6857_v19  ;;  %v3652_v21 = vpop.f32.mrf.mxu0  ;;  %v6889_v19 = vld [vmem:[%s8888_s11] sm:$0xff] }
 0x192   :  { %3871 = vmatpush.bf16.msrb.mxu1 %v6865_v23  ;;  %v3653_v22 = vadd.f32 %v3652_v21, %v3640_v63  ;;  %v3665_v32 = vpop.f32.mrf.mxu1 }
 0x193   :  { %3884 = vmatpush.bf16.msrb.mxu2 %v6873_v54 }
 0x194   :  { %3897 = vmatpush.bf16.msrb.mxu3 %v6881_v30  ;;  %3859 = vmatmul.bf16.vlgmr.msrb.gmra.mxu0 %v923_v27  ;;  %v3666_v34 = vadd.f32 %v3665_v32, %v3653_v22 }
 0x195   :  { %3872 = vmatmul.bf16.vlgmr.msrb.gmra.mxu1 %v924_v14 }
 0x196   :  { %4086 = vmatpush.msra.mxu1 %v8466_v24  ;;  %3885 = vmatmul.bf16.vlgmr.msrb.gmra.mxu2 %v925_v15  ;;  %v4190_v15 = vld [vmem:[%s8890_s7] sm:$0xf]  ;;  %s8891_s7 = sld [smem:[#allocation13_spill]] }
 0x197   :  { %6465 = vmatpush.msk.msra.mxu2 %vm4202_vm14, %v8471_v26  ;;  %3898 = vmatmul.bf16.vlgmr.msrb.gmra.mxu3 %v926_v56 }
 0x198   :  { %4087 = vmatpush.msra.mxu1 %v8477_v28  ;;  %6469 = vmatpush.msk.msra.mxu3 %vm4242_vm15, %v4191_v1 }
 0x199   :  { %4221 = vmatpush.msra.mxu2 %v8484_v17  ;;  %v3678_v61 = vpop.f32.mrf.mxu2  ;;  %v3654_v37 = vpop.f32.mrf.mxu0 }
 0x19a   :  { %4088 = vmatpush.msra.mxu1 %v3989_v29  ;;  %v3679_v35 = vadd.f32 %v3678_v61, %v3666_v34  ;;  %v3691_v36 = vpop.f32.mrf.mxu3  ;;  %v3667_v39 = vpop.f32.mrf.mxu1  ;;  %6480 = vmatpush.msk.msrb.mxu3 %vm4202_vm14, %v4190_v15 }
 0x19b   :  { %6477 = vmatpush.msk.msrb.mxu2 %vm4242_vm15, %v4191_v1 }
 0x19c   :  { %v3692_v38 = vadd.f32 %v3691_v36, %v3679_v35  ;;  %6473 = vmatpush.msk.msrb.mxu1 %vm4202_vm14, %v4190_v15 }
 0x1a1   :  { %v3680_v40 = vpop.f32.mrf.mxu2 }
 0x1a2   :  { %v3693_v59 = vpop.f32.mrf.mxu3 }
 0x1a5   :  { %6463 = vmatmul.msk.f32.vlgmr.msra.gmra.mxu1 %vm4047_vm9, %v8351_v16 }
 0x1a6   :  { %6466 = vmatmul.msk.f32.vlgmr.msra.gmra.mxu2 %vm4055_vm1, %v8412_v53 }
 0x1a7   :  { %6470 = vmatmul.msk.f32.vlgmr.msra.gmra.mxu3 %vm4232_vm0, %v3989_v29  ;;  %6488 = vmatpush.msk.msra.mxu2 %vm4202_vm14, %v4414_v4 }
 0x1ad   :  { %6464 = vmatmul.msk.f32.gmra.mxu1 %vm4047_vm9, %v8388_v42 }
 0x1ae   :  { %6467 = vmatmul.msk.f32.gmra.mxu2 %vm4055_vm1, %v8392_v45  ;;  %v6896_v45 = vld [vmem:[%s8888_s11 + $0x38] sm:$0xff] }
 0x1af   :  { %3973 = vmatpush.bf16.msra.mxu0 %v6896_v45  ;;  %6471 = vmatmul.msk.f32.gmra.mxu3 %vm4232_vm0, %v8477_v28  ;;  %v4413_v28 = vld.sshfl [vmem:[#allocation1] sm:$0xff pattern:$0x75316420] }
 0x1b0   :  { %6485 = vmatpush.msk.msra.mxu1 %vm4202_vm14, %v4413_v28 }
 0x1b1   :  { %v3704_v44 = vpop.f32.mrf.mxu0 }
 0x1b2   :  { %v3705_v43 = vadd.f32 %v3704_v44, %v3692_v38  ;;  %v3717_v46 = vpop.f32.mrf.mxu1 }
 0x1b3   :  { %3974 = vmatpush.bf16.msra.mxu0 %v6895_v0 }
 0x1b4   :  { %v3718_v48 = vadd.f32 %v3717_v46, %v3705_v43 }
 0x1b6   :  { %6468 = vmatmul.msk.f32.gmra.mxu2 %vm4055_vm1, %v8319_v10 }
 0x1b7   :  { %3975 = vmatpush.bf16.msra.mxu0 %v6894_v3  ;;  %6472 = vmatmul.msk.f32.gmra.mxu3 %vm4232_vm0, %v8466_v24 }
 0x1b9   :  { %v3730_v49 = vpop.f32.mrf.mxu2  ;;  %v3706_v52 = vpop.f32.mrf.mxu0 }
 0x1ba   :  { %v3731_v33 = vadd.f32 %v3730_v49, %v3718_v48  ;;  %v3743_v51 = vpop.f32.mrf.mxu3  ;;  %v3719_v53 = vpop.f32.mrf.mxu1 }
 0x1bb   :  { %3976 = vmatpush.bf16.msra.mxu0 %v6893_v6 }
 0x1bc   :  { %v3744_v47 = vadd.f32 %v3743_v51, %v3731_v33 }
 0x1bf   :  { %3977 = vmatpush.bf16.msra.mxu0 %v6892_v41  ;;  %6481 = vmatmul.msk.f32.vlgmr.msrb.gmra.mxu3 %vm4272_vm2, %v8484_v17 }
 0x1c1   :  { %v3732_v55 = vpop.f32.mrf.mxu2 }
 0x1c2   :  { %v3745_v57 = vpop.f32.mrf.mxu3 }
 0x1c3   :  { %3978 = vmatpush.bf16.msra.mxu0 %v6891_v7 }
 0x1c7   :  { %3979 = vmatpush.bf16.msra.mxu0 %v6890_v8  ;;  %6482 = vmatmul.msk.f32.gmra.mxu3 %vm4272_vm2, %v8471_v26 }
 0x1cb   :  { %3980 = vmatpush.bf16.msra.mxu0 %v6889_v19 }
 0x1d1   :  { %v3756_v58 = vpop.f32.mrf.mxu0 }
 0x1d2   :  { %v3769_v62 = vpop.f32.mrf.mxu1  ;;  %v3757_v13 = vadd.f32 %v3756_v58, %v3744_v47  ;;  %v8534_v30 = vpop.xlane.xlu0 %4049 }
 0x1d3   :  { %v4096_v24 = vmax.f32 %v8534_v30, 1.0 }
 0x1d4   :  { %v3770_v54 = vadd.f32 %v3769_v62, %v3757_v13 }
 0x1d5   :  { %6914 = vrcp.f32 %v4096_v24  ;;  %vm4103_vm3 = vweird.f32 %v4096_v24  ;;  %v4109_v33 = vand.u32 2147483648, %v4096_v24  ;;  %v4107_v47 = vand.u32 2147483647, %v4096_v24 }
 0x1d7   :  { %vm4108_vm6 = vcmp.eq.f32.partialorder %v4107_v47, 8.507059e+37 }
 0x1d9   :  { %v3782_v9 = vpop.f32.mrf.mxu2  ;;  %v3758_v63 = vpop.f32.mrf.mxu0 }
 0x1da   :  { %v3795_v10 = vpop.f32.mrf.mxu3  ;;  %v3771_v60 = vpop.f32.mrf.mxu1  ;;  %v3783_v27 = vadd.f32 %v3782_v9, %v3770_v54  ;;  %v4110_v9 = vor.u32 1.1754944e-38, %v4109_v33 }
 0x1db   :  { %v6915_v34 = vpop.eup %6914 }
 0x1dc   :  { %v3796_v29 = vadd.f32 %v3795_v10, %v3783_v27  ;;  %v4099_v36 = vmul.f32 %v6915_v34, %v4096_v24  ;;  %vm4104_vm4 = vweird.f32 %v6915_v34 }
 0x1dd   :  { %vm4105_vm5 = vmor %vm4103_vm3, %vm4104_vm4 }
 0x1de   :  { %v8545_v22 = vpop.xlane.xlu1 %4053  ;;  %v4100_v39 = vsub.f32 1.0, %v4099_v36 }
 0x1df   :  { %v4097_v32 = vmax.f32 %v8545_v22, 1.0  ;;  %v4129_v24 = vadd.f32 1.0, %v8545_v22 }
 0x1e0   :  { %v4101_v43 = vmul.f32 %v6915_v34, %v4100_v39 }
 0x1e1   :  { %v3784_v5 = vpop.f32.mrf.mxu2  ;;  %6916 = vrcp.f32 %v4097_v32  ;;  %vm4118_vm7 = vweird.f32 %v4097_v32  ;;  %v4124_v3 = vand.u32 2147483648, %v4097_v32  ;;  %v4172_v22 = vpop.xlane.xlu2 %4171 }
 0x1e2   :  { %v3797_v12 = vpop.f32.mrf.mxu3  ;;  %v4102_v52 = vadd.f32 %v6915_v34, %v4101_v43  ;;  %v4122_v5 = vand.u32 2147483647, %v4097_v32 }
 0x1e4   :  { %v4106_v10 = vsel %vm4105_vm5, %v6915_v34, %v4102_v52  ;;  %vm4123_vm11 = vcmp.eq.f32.partialorder %v4122_v5, 8.507059e+37  ;;  %vm4544_vm5 = vcmask 91136  }
 0x1e5   :  { %v4111_v1 = vsel %vm4108_vm6, %v4110_v9, %v4106_v10 }
 0x1e7   :  { %v6917_v40 = vpop.eup %6916 }
 0x1e8   :  { %v4114_v46 = vmul.f32 %v6917_v40, %v4097_v32  ;;  %vm4119_vm8 = vweird.f32 %v6917_v40 }
 0x1e9   :  { %vm4120_vm10 = vmor %vm4118_vm7, %vm4119_vm8  ;;  %vm4614_vm8 = vcmask 1041408  }
 0x1ea   :  { %v4115_v53 = vsub.f32 1.0, %v4114_v46 }
 0x1ec   :  { %v4116_v63 = vmul.f32 %v6917_v40, %v4115_v53 }
 0x1ee   :  { %v4117_v4 = vadd.f32 %v6917_v40, %v4116_v63 }
 0x1f0   :  { %v4121_v7 = vsel %vm4120_vm10, %v6917_v40, %v4117_v4  ;;  %v6906_v40 = vld [vmem:[%s8843_s13] ss:$0 sm:$0xff] }
 0x1f1   :  { %v3808_v50 = vpop.f32.mrf.mxu0 }
 0x1f2   :  { %v3821_v31 = vpop.f32.mrf.mxu1  ;;  %v3809_v21 = vadd.f32 %v3808_v50, %v3796_v29  ;;  %v4125_v50 = vor.u32 1.1754944e-38, %v4124_v3 }
 0x1f4   :  { %v3822_v61 = vadd.f32 %v3821_v31, %v3809_v21  ;;  %v4126_v8 = vsel %vm4123_vm11, %v4125_v50, %v4121_v7  ;;  %v4181_v50 = vpop.xlane.xlu1 %4180 }
 0x1f9   :  { %v3834_v11 = vpop.f32.mrf.mxu2  ;;  %v3810_v25 = vpop.f32.mrf.mxu0 }
 0x1fa   :  { %v3847_v20 = vpop.f32.mrf.mxu3  ;;  %v3823_v23 = vpop.f32.mrf.mxu1  ;;  %v3835_v35 = vadd.f32 %v3834_v11, %v3822_v61 }
 0x1fb   :  { %v4128_v23 = vadd.f32 1.0, %v8534_v30 }
 0x1fc   :  { %v3848_v37 = vadd.f32 %v3847_v20, %v3835_v35 }
 0x1fd   :  { %6918 = vrsqrt.f32 %v4128_v23  ;;  %vm4136_vm12 = vweird.f32 %v4128_v23 }
 0x1fe   :  { %6920 = vrsqrt.f32 %v4129_v24 }
 0x201   :  { %v3836_v14 = vpop.f32.mrf.mxu2 }
 0x202   :  { %v3849_v56 = vpop.f32.mrf.mxu3 }
 0x203   :  { %v6919_v27 = vpop.eup %6918 }
 0x204   :  { %v4131_v14 = vmul.f32 %v6919_v27, %v4128_v23  ;;  %v6921_v56 = vpop.eup %6920  ;;  %vm4137_vm13 = vweird.f32 %v6919_v27 }
 0x205   :  { %v4141_v21 = vmul.f32 %v6921_v56, %v4129_v24  ;;  %vm4138_vm15 = vmor %vm4136_vm12, %vm4137_vm13  ;;  %vm4147_vm3 = vweird.f32 %v6921_v56 }
 0x206   :  { %v4132_v15 = vmul.f32 %v6919_v27, %v4131_v14 }
 0x207   :  { %v4142_v61 = vmul.f32 %v6921_v56, %v4141_v21 }
 0x208   :  { %v4133_v29 = vmul.f32 0.5, %v4132_v15 }
 0x209   :  { %v4143_v30 = vmul.f32 0.5, %v4142_v61 }
 0x20a   :  { %v4134_v34 = vsub.f32 1.5, %v4133_v29 }
 0x211   :  { %v3860_v38 = vpop.f32.mrf.mxu0 }
 0x212   :  { %v3873_v59 = vpop.f32.mrf.mxu1  ;;  %v3861_v44 = vadd.f32 %v3860_v38, %v3848_v37  ;;  %v4135_v38 = vmul.f32 %v6919_v27, %v4134_v34  ;;  %v4525_v34 = vld [vmem:[%s8846_s16] sm:$0x3] }
 0x214   :  { %v3874_v48 = vadd.f32 %v3873_v59, %v3861_v44  ;;  %v4144_v44 = vsub.f32 1.5, %v4143_v30  ;;  %v4139_v43 = vsel %vm4138_vm15, %v6919_v27, %v4135_v38  ;;  %vm4826_vm15 = vcmask 261120  }
 0x215   :  { %v4188_v33 = vmul.f32 %v4139_v43, %v4139_v43 }
 0x216   :  { %v4145_v47 = vmul.f32 %v6921_v56, %v4144_v44 }
 0x219   :  { %v3886_v49 = vpop.f32.mrf.mxu2  ;;  %v3862_v55 = vpop.f32.mrf.mxu0 }
 0x21a   :  { %v3887_v51 = vadd.f32 %v3886_v49, %v3874_v48  ;;  %v3875_v57 = vpop.f32.mrf.mxu1  ;;  %v3899_v58 = vpop.f32.mrf.mxu3  ;;  %v4409_v48 = vld [vmem:[%s8844_s14] sm:$0xff] }
 0x21b   :  { %4472 = vst [vmem:[#allocation1] ss:$2 sm:$0xff] %v4409_v48  ;;  %v4767_v48 = vld [vmem:[%s8847_s22 + $0x38] sm:$0xff] }
 0x21c   :  { %v3900_v62 = vadd.f32 %v3899_v58, %v3887_v51  ;;  %v4184_v58 = vpop.xlane.xlu2 %4183 }
 0x21d   :  { %v4187_v7 = vmul.f32 %v4184_v58, %v4172_v22  ;;  %v4763_v58 = vld [vmem:[%s8847_s22 + $0x18] sm:$0xff] }
 0x21e   :  { %v3903_v45 = vmax.f32 %v3900_v62, 0.0  ;;  %v4169_v62 = vpop.xlane.xlu0 %4168 }
 0x220   :  { %v3904_v60 = vpack.c.bf16 %v3903_v45, %v3903_v45 }
 0x221   :  { %v3888_v0 = vpop.f32.mrf.mxu2 }
 0x222   :  { %3981 = vmatmul.bf16.vlgmr.msra.gmra.mxu0 %v3904_v60  ;;  %v4090_v12 = vpop.f32.mrf.mxu1  ;;  %v3901_v6 = vpop.f32.mrf.mxu3  ;;  %v4473_v63 = vld.sshfl [vmem:[#allocation1] sm:$0xff pattern:$0x75316420]  ;;  %v4474_v27 = vld.sshfl [vmem:[#allocation1 + $0x8] sm:$0xff pattern:$0x75316420] }
 0x223   :  { %v4112_v41 = vmul.f32 %v4111_v1, %v4090_v12  ;;  %6491 = vmatpush.msk.msra.mxu3 %vm4202_vm14, %v4473_v63 }
 0x224   :  { %6492 = vmatmul.msk.f32.vlgmr.msra.gmra.mxu3 %vm4272_vm2, %v8484_v17 }
 0x225   :  { %6478 = vmatmul.msk.f32.vlgmr.msrb.gmra.mxu2 %vm4232_vm0, %v4112_v41 }
 0x229   :  { %v4223_v31 = vpop.f32.mrf.mxu2 }
 0x22a   :  { %6474 = vmatmul.msk.f32.vlgmr.msrb.gmra.mxu1 %vm4272_vm2, %v4223_v31  ;;  %v4093_v11 = vpop.f32.mrf.mxu1  ;;  %v4263_v19 = vpop.f32.mrf.mxu3 }
 0x22b   :  { %v4127_v13 = vmul.f32 %v4126_v8, %v4093_v11  ;;  %v4166_v11 = vpop.xlane.xlu2 %4165 }
 0x22c   :  { %6493 = vmatmul.msk.f32.gmra.mxu3 %vm4272_vm2, %v8471_v26 }
 0x22d   :  { %6479 = vmatmul.msk.f32.gmra.mxu2 %vm4232_vm0, %v4127_v13  ;;  %vm4146_vm0 = vweird.f32 %v4129_v24  ;;  %v4178_v13 = vpop.xlane.xlu0 %4177 }
 0x22e   :  { %vm4148_vm4 = vmor %vm4146_vm0, %vm4147_vm3  ;;  %v4185_v23 = vmul.f32 %v4178_v13, %v4166_v11 }
 0x22f   :  { %v4149_v9 = vsel %vm4148_vm4, %v6921_v56, %v4145_v47  ;;  %v4765_v47 = vld [vmem:[%s8847_s22 + $0x28] sm:$0xff] }
 0x230   :  { %v4189_v1 = vmul.f32 %v4149_v9, %v4149_v9 }
 0x231   :  { %v4226_v20 = vpop.f32.mrf.mxu2 }
 0x232   :  { %6475 = vmatmul.msk.f32.gmra.mxu1 %vm4272_vm2, %v4226_v20  ;;  %v4266_v54 = vpop.f32.mrf.mxu3  ;;  %v4186_v20 = vmul.f32 %v4181_v50, %v4169_v62  ;;  %v4762_v62 = vld [vmem:[%s8847_s22 + $0x10] sm:$0xff] }
 0x239   :  { %v4229_v25 = vpop.f32.mrf.mxu2 }
 0x23a   :  { %6476 = vmatmul.msk.f32.gmra.mxu1 %vm4272_vm2, %v4229_v25  ;;  %v4269_v28 = vpop.f32.mrf.mxu3 }
 0x242   :  { %v4374_v35 = vpop.f32.mrf.mxu3 }
 0x24a   :  { %v4377_v52 = vpop.f32.mrf.mxu3 }
 0x29f   :  { %v8557_v32 = vpop.f32.mrf.mxu0 }
 0x2a7   :  { %v3984_v36 = vpop.f32.mrf.mxu0  ;;  %v4302_v37 = vpop.f32.mrf.mxu1 }
 0x2a8   :  { %v4346_v39 = vpop.f32.mrf.mxu2  ;;  %v4303_v60 = vadd.f32 %v4302_v37, %v4263_v19  ;;  %v4496_v56 = vpop.f32.mrf.mxu3  ;;  %v4527_v36 = vperm.slane %v4525_v34, 0 }
 0x2a9   :  { %v4375_v59 = vadd.f32 %v4374_v35, %v4346_v39 }
 0x2aa   :  { %v4314_v6 = vadd.f32 %v6906_v40, %v4303_v60 }
 0x2ab   :  { %v4380_v46 = vadd.f32 %v6906_v40, %v4375_v59 }
 0x2ac   :  { %v4317_v25 = vmax.f32 %v4314_v6, 0.0 }
 0x2ad   :  { %v4382_v49 = vmax.f32 %v4380_v46, 0.0 }
 0x2ae   :  { %v4320_v24 = vmul.f32 %v4317_v25, %v4185_v23  ;;  %v6930_v23 = vmov 256.0  }
 0x2af   :  { %v4305_v51 = vpop.f32.mrf.mxu1  ;;  %v4384_v53 = vmul.f32 %v4382_v49, %v4188_v33 }
 0x2b0   :  { %v4349_v55 = vpop.f32.mrf.mxu2  ;;  %v4306_v45 = vadd.f32 %v4305_v51, %v4266_v54  ;;  %v4499_v35 = vpop.f32.mrf.mxu3  ;;  %v4766_v51 = vld [vmem:[%s8847_s22 + $0x30] sm:$0xff] }
 0x2b1   :  { %v4378_v57 = vadd.f32 %v4377_v52, %v4349_v55  ;;  %v4764_v55 = vld [vmem:[%s8847_s22 + $0x20] sm:$0xff] }
 0x2b2   :  { %v4315_v4 = vadd.f32 %v6906_v40, %v4306_v45  ;;  %v4761_v45 = vld [vmem:[%s8847_s22 + $0x8] sm:$0xff] }
 0x2b3   :  { %v4381_v10 = vadd.f32 %v6906_v40, %v4378_v57  ;;  %v6905_v57 = vld [vmem:[%s8891_s7] ss:$0 sm:$0xff] }
 0x2b4   :  { %v4318_v31 = vmax.f32 %v4315_v4, 0.0  ;;  %v3983_v9 = vadd.f32 %v6905_v57, %v8557_v32  ;;  %v4671_v57 = vld [vmem:[%s8848_s19 + $0x20] sm:$0xff] }
 0x2b5   :  { %v4383_v0 = vmax.f32 %v4381_v10, 0.0  ;;  %v4760_v10 = vld [vmem:[%s8847_s22] sm:$0xff] }
 0x2b6   :  { %v4321_v54 = vmul.f32 %v4318_v31, %v4186_v20  ;;  %v3986_v63 = vmax.f32 %v3983_v9, 0.0  ;;  %v4686_v9 = vld [vmem:[%s8848_s19 + $0x98] sm:$0xff] }
 0x2b7   :  { %v4308_v3 = vpop.f32.mrf.mxu1  ;;  %v4385_v12 = vmul.f32 %v4383_v0, %v4189_v1 }
 0x2b8   :  { %v4309_v5 = vadd.f32 %v4308_v3, %v4269_v28 }
 0x2ba   :  { %v4316_v41 = vadd.f32 %v6906_v40, %v4309_v5  ;;  %v4528_v40 = vperm.slane %v4525_v34, 1 }
 0x2bc   :  { %v4319_v8 = vmax.f32 %v4316_v41, 0.0 }
 0x2be   :  { %v4322_v19 = vmul.f32 %v4319_v8, %v4187_v7 }
 0x2c0   :  { %4399 = vmatpush.msrb.mxu0 %v4322_v19 }
 0x2c2   :  { %4400 = vmatpush.msrb.mxu0 %v4321_v54  ;;  %v4682_v54 = vld [vmem:[%s8848_s19 + $0x78] sm:$0xff] }
 0x2c3   :  { %4703 = vmatpush.msrb.mxu3 %v4682_v54 }
 0x2c4   :  { %4401 = vmatpush.msrb.mxu0 %v4320_v24  ;;  %v4698_v24 = vld [vmem:[%s8848_s19 + $0xf8] sm:$0xff] }
 0x2c5   :  { %6483 = vmatmul.msk.f32.vlgmr.msrb.gmra.mxu0 %vm4047_vm9, %v8351_v16 }
 0x2c6   :  { %6494 = vmatpush.msk.msra.mxu0 %vm4202_vm14, %v4474_v27  ;;  %v4681_v27 = vld [vmem:[%s8848_s19 + $0x70] sm:$0xff] }
 0x2c7   :  { %4704 = vmatpush.msrb.mxu3 %v4681_v27  ;;  %v4659_v27 = vld [vmem:[%s8851_s18] sm:$0x3] }
 0x2c8   :  { %4723 = vmatpush.msrb.mxu0 %v4698_v24 }
 0x2cd   :  { %6484 = vmatmul.msk.f32.gmra.mxu0 %vm4047_vm9, %v8388_v42  ;;  %v6907_v42 = vld [vmem:[%s8845_s10] ss:$0 sm:$0xff] }
 0x2ce   :  { %vm4541_vm9 = vcmp.eq.s32.totalorder %v8328_v18, %v6907_v42 }
 0x2d5   :  { %6495 = vmatmul.msk.f32.vlgmr.msra.gmra.mxu0 %vm4272_vm2, %v8484_v17 }
 0x2dd   :  { %6496 = vmatmul.msk.f32.gmra.mxu0 %vm4272_vm2, %v8471_v26  ;;  %v6497_v26 = vsel %vm4541_vm9, 1.0, %v6929_v2 }
 0x2de   :  { %v4545_v17 = vsel %vm4544_vm5, %v6497_v26, 0.0 }
 0x2df   :  { %4546 = vadd.xlane.f32.xlu1 %v4545_v17 }
 0x342   :  { %v4403_v14 = vpop.f32.mrf.mxu0 }
 0x343   :  { %v4404_v15 = vadd.f32 %v4403_v14, %v4384_v53 }
 0x345   :  { %6486 = vmatmul.msk.f32.vlgmr.msra.gmra.mxu1 %vm4272_vm2, %v4404_v15  ;;  %6489 = vmatmul.msk.f32.vlgmr.msra.gmra.mxu2 %vm4272_vm2, %v4404_v15  ;;  %v4697_v15 = vld [vmem:[%s8848_s19 + $0xf0] sm:$0xff] }
 0x346   :  { %4724 = vmatpush.msrb.mxu0 %v4697_v15 }
 0x34a   :  { %v4406_v28 = vpop.f32.mrf.mxu0 }
 0x34b   :  { %v4407_v16 = vadd.f32 %v4406_v28, %v4385_v12 }
 0x34d   :  { %6487 = vmatmul.msk.f32.gmra.mxu1 %vm4272_vm2, %v4407_v16  ;;  %6490 = vmatmul.msk.f32.gmra.mxu2 %vm4272_vm2, %v4407_v16 }
 0x352   :  { %v4519_v21 = vpop.f32.mrf.mxu0  ;;  %v4547_v60 = vpop.xlane.xlu1 %4546 }
 0x353   :  { %v4548_v0 = vmax.f32 %v4547_v60, 1.0  ;;  %v4684_v60 = vld [vmem:[%s8848_s19 + $0x88] sm:$0xff] }
 0x355   :  { %6922 = vrcp.f32 %v4548_v0  ;;  %v4609_v5 = vand.u32 2147483648, %v4548_v0  ;;  %v4607_v6 = vand.u32 2147483647, %v4548_v0 }
 0x356   :  { %6924 = vrcp.f32 %v6930_v23  ;;  %v4651_v23 = vld [vmem:[%s8850_s17] sm:$0x3] }
 0x357   :  { %v4610_v41 = vor.u32 1.1754944e-38, %v4609_v5  ;;  %vm4608_vm7 = vcmp.eq.f32.partialorder %v4607_v6, 8.507059e+37  ;;  %v4756_v6 = vld [vmem:[%s8849_s21 + $0x60] sm:$0xff]  ;;  %v4654_v15 = vperm.slane %v4651_v23, 1 }
 0x35a   :  { %v4522_v39 = vpop.f32.mrf.mxu0 }
 0x35b   :  { %v6923_v1 = vpop.eup %6922 }
 0x35c   :  { %v4599_v3 = vmul.f32 %v6923_v1, %v4548_v0  ;;  %vm4604_vm2 = vweird.f32 %v6923_v1  ;;  %v6925_v14 = vpop.eup %6924 }
 0x35d   :  { %v4621_v28 = vmul.f32 256.0, %v6925_v14  ;;  %vm4625_vm10 = vweird.f32 %v6925_v14 }
 0x35e   :  { %v4600_v32 = vsub.f32 1.0, %v4599_v3  ;;  %v4759_v3 = vld [vmem:[%s8849_s21 + $0x78] sm:$0xff] }
 0x35f   :  { %v4622_v16 = vsub.f32 1.0, %v4621_v28 }
 0x360   :  { %v4601_v4 = vmul.f32 %v6923_v1, %v4600_v32  ;;  %v4758_v32 = vld [vmem:[%s8849_s21 + $0x70] sm:$0xff] }
 0x361   :  { %v4623_v42 = vmul.f32 %v6925_v14, %v4622_v16 }
 0x362   :  { %v4602_v12 = vadd.f32 %v6923_v1, %v4601_v4  ;;  %v4757_v4 = vld [vmem:[%s8849_s21 + $0x68] sm:$0xff] }
 0x3c2   :  { %v4442_v29 = vpop.f32.mrf.mxu1 }
 0x3c3   :  { %v4497_v30 = vadd.f32 %v4496_v56, %v4442_v29 }
 0x3c5   :  { %v4531_v22 = vadd.f32 %v4527_v36, %v4497_v30 }
 0x3c7   :  { %v4535_v43 = vmax.f32 %v4531_v22, 0.0  ;;  %v4696_v22 = vld [vmem:[%s8848_s19 + $0xe8] sm:$0xff] }
 0x3c8   :  { %v4465_v61 = vpop.f32.mrf.mxu2  ;;  %4725 = vmatpush.msrb.mxu0 %v4696_v22  ;;  %v4744_v22 = vld [vmem:[%s8849_s21] sm:$0xff] }
 0x3c9   :  { %v4520_v2 = vadd.f32 %v4519_v21, %v4465_v61 }
 0x3ca   :  { %v4445_v37 = vpop.f32.mrf.mxu1 }
 0x3cb   :  { %v4500_v38 = vadd.f32 %v4499_v35, %v4445_v37  ;;  %v4532_v49 = vadd.f32 %v4528_v40, %v4520_v2  ;;  %v4678_v2 = vld [vmem:[%s8848_s19 + $0x58] sm:$0xff] }
 0x3cd   :  { %v4533_v18 = vadd.f32 %v4527_v36, %v4500_v38  ;;  %v4536_v53 = vmax.f32 %v4532_v49, 0.0  ;;  %v4680_v38 = vld [vmem:[%s8848_s19 + $0x68] sm:$0xff]  ;;  %v4691_v49 = vld [vmem:[%s8848_s19 + $0xc0] sm:$0xff] }
 0x3ce   :  { %4705 = vmatpush.msrb.mxu3 %v4680_v38  ;;  %v4745_v38 = vld [vmem:[%s8849_s21 + $0x8] sm:$0xff] }
 0x3cf   :  { %v4537_v59 = vmax.f32 %v4533_v18, 0.0  ;;  %v4679_v18 = vld [vmem:[%s8848_s19 + $0x60] sm:$0xff] }
 0x3d0   :  { %v4468_v44 = vpop.f32.mrf.mxu2  ;;  %4706 = vmatpush.msrb.mxu3 %v4679_v18  ;;  %v6908_v18 = vld [vmem:[%s8852_s20] ss:$0 sm:$0xff] }
 0x3d1   :  { %v4523_v46 = vadd.f32 %v4522_v39, %v4468_v44  ;;  %6498 = vmatpush.msk.msrb.mxu1 %vm4202_vm14, %v4537_v59  ;;  %v4695_v39 = vld [vmem:[%s8848_s19 + $0xe0] sm:$0xff]  ;;  %v4677_v59 = vld [vmem:[%s8848_s19 + $0x50] sm:$0xff] }
 0x3d2   :  { %4726 = vmatpush.msrb.mxu0 %v4695_v39  ;;  %4707 = vmatpush.msrb.mxu3 %v4678_v2  ;;  %v4693_v44 = vld [vmem:[%s8848_s19 + $0xd0] sm:$0xff] }
 0x3d3   :  { %v4534_v33 = vadd.f32 %v4528_v40, %v4523_v46  ;;  %4573 = vmatpush.msrb.mxu1 %v4535_v43  ;;  %v4694_v40 = vld [vmem:[%s8848_s19 + $0xd8] sm:$0xff]  ;;  %v4676_v43 = vld [vmem:[%s8848_s19 + $0x48] sm:$0xff] }
 0x3d4   :  { %6499 = vmatmul.msk.f32.vlgmr.msrb.gmra.mxu1 %vm4055_vm1, %v6497_v26  ;;  %4727 = vmatpush.msrb.mxu0 %v4694_v40  ;;  %v4692_v46 = vld [vmem:[%s8848_s19 + $0xc8] sm:$0xff] }
 0x3d5   :  { %4780 = vmatpush.msra.mxu1 %v4767_v48  ;;  %v4538_v52 = vmax.f32 %v4534_v33, 0.0  ;;  %4708 = vmatpush.msrb.mxu3 %v4677_v59  ;;  %v4675_v48 = vld [vmem:[%s8848_s19 + $0x40] sm:$0xff]  ;;  %v4674_v33 = vld [vmem:[%s8848_s19 + $0x38] sm:$0xff] }
 0x3d6   :  { %4728 = vmatpush.msrb.mxu0 %v4693_v44 }
 0x3d7   :  { %4781 = vmatpush.msra.mxu1 %v4766_v51  ;;  %6500 = vmatpush.msk.msrb.mxu2 %vm4202_vm14, %v4538_v52  ;;  %vm4768_vm14 = vcmask 523264   ;;  %v4690_v51 = vld [vmem:[%s8848_s19 + $0xb8] sm:$0xff]  ;;  %v4673_v52 = vld [vmem:[%s8848_s19 + $0x30] sm:$0xff] }
 0x3d8   :  { %4709 = vmatpush.msrb.mxu3 %v4676_v43  ;;  %4729 = vmatpush.msrb.mxu0 %v4692_v46  ;;  %v4821_v43 = vld [vmem:[%s8855_s24 + $0x18] sm:$0xff]  ;;  %v4820_v46 = vld [vmem:[%s8855_s24 + $0x10] sm:$0xff] }
 0x3d9   :  { %4782 = vmatpush.msra.mxu1 %v4765_v47  ;;  %4593 = vmatpush.msrb.mxu2 %v4536_v53  ;;  %v4689_v47 = vld [vmem:[%s8848_s19 + $0xb0] sm:$0xff]  ;;  %v4672_v53 = vld [vmem:[%s8848_s19 + $0x28] sm:$0xff] }
 0x3da   :  { %6501 = vmatmul.msk.f32.vlgmr.msrb.gmra.mxu2 %vm4055_vm1, %v6497_v26  ;;  %vm4603_vm1 = vweird.f32 %v4548_v0  ;;  %v4624_v26 = vadd.f32 %v6925_v14, %v4623_v42  ;;  %4710 = vmatpush.msrb.mxu3 %v4675_v48  ;;  %v4667_v0 = vld [vmem:[%s8848_s19] sm:$0xff]  ;;  %v4819_v48 = vld [vmem:[%s8855_s24 + $0x8] sm:$0xff] }
 0x3db   :  { %4783 = vmatpush.msra.mxu1 %v4764_v55  ;;  %vm4605_vm6 = vmor %vm4603_vm1, %vm4604_vm2  ;;  %4730 = vmatpush.msrb.mxu0 %v4691_v49  ;;  %v4688_v55 = vld [vmem:[%s8848_s19 + $0xa8] sm:$0xff]  ;;  %v4818_v49 = vld [vmem:[%s8855_s24] sm:$0xff] }
 0x3dc   :  { %v4606_v50 = vsel %vm4605_vm6, %v6923_v1, %v4602_v12  ;;  %v8637_v17 = vsel %vm4625_vm10, %v6925_v14, %v4624_v26  ;;  %4711 = vmatpush.msrb.mxu3 %v4674_v33  ;;  %v4683_v1 = vld [vmem:[%s8848_s19 + $0x80] sm:$0xff]  ;;  %4792 = vmatpush.msra.mxu2 %v4759_v3  ;;  %v4653_v14 = vperm.slane %v4651_v23, 0  ;;  %v4661_v26 = vperm.slane %v4659_v27, 0  ;;  %v4854_v33 = vld [vmem:[%s8856_s26 + $0x18] sm:$0xff] }
 0x3dd   :  { %4784 = vmatpush.msra.mxu1 %v4763_v58  ;;  %v4611_v31 = vsel %vm4608_vm7, %v4610_v41, %v4606_v50  ;;  %4731 = vmatpush.msrb.mxu0 %v4690_v51  ;;  %v4687_v58 = vld [vmem:[%s8848_s19 + $0xa0] sm:$0xff]  ;;  %v4755_v50 = vld [vmem:[%s8849_s21 + $0x58] sm:$0xff] }
 0x3de   :  { %4712 = vmatpush.msrb.mxu3 %v4673_v52  ;;  %4793 = vmatpush.msra.mxu2 %v4758_v32  ;;  %v6909_v51 = vld [vmem:[%s8853_s23] ss:$0 sm:$0xff] }
 0x3df   :  { %4785 = vmatpush.msra.mxu1 %v4762_v62  ;;  %4732 = vmatpush.msrb.mxu0 %v4689_v47  ;;  %v4670_v62 = vld [vmem:[%s8848_s19 + $0x18] sm:$0xff] }
 0x3e0   :  { %4713 = vmatpush.msrb.mxu3 %v4672_v53  ;;  %4794 = vmatpush.msra.mxu2 %v4757_v4 }
 0x3e1   :  { %4786 = vmatpush.msra.mxu1 %v4761_v45  ;;  %4733 = vmatpush.msrb.mxu0 %v4688_v55  ;;  %v4669_v45 = vld [vmem:[%s8848_s19 + $0x10] sm:$0xff] }
 0x3e2   :  { %4714 = vmatpush.msrb.mxu3 %v4671_v57  ;;  %4795 = vmatpush.msra.mxu2 %v4756_v6 }
 0x3e3   :  { %4787 = vmatpush.msra.mxu1 %v4760_v10  ;;  %4734 = vmatpush.msrb.mxu0 %v4687_v58  ;;  %v4685_v10 = vld [vmem:[%s8848_s19 + $0x90] sm:$0xff] }
 0x3e4   :  { %6502 = vmatmul.msk.f32.vlgmr.msra.gmra.mxu1 %vm4768_vm14, %v3986_v63  ;;  %4715 = vmatpush.msrb.mxu3 %v4670_v62  ;;  %v4668_v63 = vld [vmem:[%s8848_s19 + $0x8] sm:$0xff]  ;;  %v4853_v58 = vld [vmem:[%s8856_s26 + $0x10] sm:$0xff] }
 0x3e5   :  { %4735 = vmatpush.msrb.mxu0 %v4686_v9  ;;  %4796 = vmatpush.msra.mxu2 %v4755_v50  ;;  %v4852_v62 = vld [vmem:[%s8856_s26 + $0x8] sm:$0xff]  ;;  %v4851_v9 = vld [vmem:[%s8856_s26] sm:$0xff] }
 0x3e6   :  { %4716 = vmatpush.msrb.mxu3 %v4669_v45  ;;  %4842 = vmatpush.msrb.mxu1 %v4821_v43  ;;  %v6910_v45 = vld [vmem:[%s8854_s25] ss:$0 sm:$0xff] }
 0x3e7   :  { %4736 = vmatpush.msrb.mxu0 %v4685_v10 }
 0x3e8   :  { %4717 = vmatpush.msrb.mxu3 %v4668_v63  ;;  %4843 = vmatpush.msrb.mxu1 %v4820_v46 }
 0x3e9   :  { %4737 = vmatpush.msrb.mxu0 %v4684_v60 }
 0x3ea   :  { %4718 = vmatpush.msrb.mxu3 %v4667_v0  ;;  %4844 = vmatpush.msrb.mxu1 %v4819_v48  ;;  %v6911_v0 = vld [vmem:[%s8857_s27] ss:$0 sm:$0xff] }
 0x3eb   :  { %4738 = vmatpush.msrb.mxu0 %v4683_v1 }
 0x3ec   :  { %4845 = vmatpush.msrb.mxu1 %v4818_v49  ;;  %4874 = vmatpush.msra.mxu3 %v4854_v33 }
 0x3ee   :  { %4875 = vmatpush.msra.mxu3 %v4853_v58 }
 0x3f0   :  { %4876 = vmatpush.msra.mxu3 %v4852_v62 }
 0x3f2   :  { %4877 = vmatpush.msra.mxu3 %v4851_v9 }
 0x451   :  { %v4575_v7 = vpop.f32.mrf.mxu1 }
 0x452   :  { %v4612_v8 = vmul.f32 %v4611_v31, %v4575_v7  ;;  %v4754_v7 = vld [vmem:[%s8849_s21 + $0x50] sm:$0xff] }
 0x453   :  { %4797 = vmatpush.msra.mxu2 %v4754_v7 }
 0x454   :  { %v4615_v20 = vsel %vm4614_vm8, %v4612_v8, 0.0 }
 0x45d   :  { %v4595_v11 = vpop.f32.mrf.mxu2 }
 0x45e   :  { %v4613_v13 = vmul.f32 %v4611_v31, %v4595_v11  ;;  %v4753_v31 = vld [vmem:[%s8849_s21 + $0x48] sm:$0xff] }
 0x45f   :  { %4798 = vmatpush.msra.mxu2 %v4753_v31 }
 0x460   :  { %v4616_v25 = vsel %vm4614_vm8, %v4613_v13, 0.0 }
 0x461   :  { %v4617_v19 = vadd.f32 %v4616_v25, %v4615_v20  ;;  %v4789_v52 = vpop.f32.mrf.mxu1 }
 0x463   :  { %4618 = vadd.xlane.f32.xlu2 %v4617_v19 }
 0x4d6   :  { %v4619_v56 = vpop.xlane.xlu2 %4618 }
 0x4d7   :  { %v4627_v29 = vmul.f32 %v8637_v17, %v4619_v56 }
 0x4d9   :  { %v8640_v21 = vsub.f32 %v4612_v8, %v4627_v29  ;;  %v8642_v34 = vsub.f32 %v4613_v13, %v4627_v29  ;;  %v4752_v8 = vld [vmem:[%s8849_s21 + $0x40] sm:$0xff]  ;;  %v4751_v13 = vld [vmem:[%s8849_s21 + $0x38] sm:$0xff] }
 0x4da   :  { %4799 = vmatpush.msra.mxu2 %v4752_v8 }
 0x4db   :  { %v4630_v61 = vmul.f32 %v8640_v21, %v8640_v21  ;;  %v4631_v35 = vmul.f32 %v8642_v34, %v8642_v34 }
 0x4dc   :  { %4800 = vmatpush.msra.mxu2 %v4751_v13 }
 0x4dd   :  { %v4632_v30 = vsel %vm4614_vm8, %v4630_v61, 0.0  ;;  %v4633_v36 = vsel %vm4614_vm8, %v4631_v35, 0.0 }
 0x4de   :  { %v4634_v37 = vadd.f32 %v4633_v36, %v4632_v30  ;;  %v4750_v30 = vld [vmem:[%s8849_s21 + $0x30] sm:$0xff]  ;;  %v4749_v36 = vld [vmem:[%s8849_s21 + $0x28] sm:$0xff] }
 0x4df   :  { %4801 = vmatpush.msra.mxu2 %v4750_v30 }
 0x4e0   :  { %4635 = vadd.xlane.f32.xlu0 %v4634_v37  ;;  %v4746_v37 = vld [vmem:[%s8849_s21 + $0x10] sm:$0xff] }
 0x4e1   :  { %4802 = vmatpush.msra.mxu2 %v4749_v36 }
 0x553   :  { %v4636_v5 = vpop.xlane.xlu0 %4635 }
 0x554   :  { %v4637_v12 = vmul.f32 %v4636_v5, %v8637_v17  ;;  %v4662_v17 = vperm.slane %v4659_v27, 1 }
 0x556   :  { %v4638_v41 = vadd.f32 1e-05, %v4637_v12 }
 0x558   :  { %6926 = vrsqrt.f32 %v4638_v41  ;;  %vm4645_vm12 = vweird.f32 %v4638_v41 }
 0x55e   :  { %v6927_v11 = vpop.eup %6926 }
 0x55f   :  { %v4640_v20 = vmul.f32 %v6927_v11, %v4638_v41  ;;  %vm4646_vm11 = vweird.f32 %v6927_v11 }
 0x560   :  { %vm4647_vm13 = vmor %vm4645_vm12, %vm4646_vm11 }
 0x561   :  { %v4641_v25 = vmul.f32 %v6927_v11, %v4640_v20 }
 0x563   :  { %v4642_v19 = vmul.f32 0.5, %v4641_v25 }
 0x565   :  { %v4643_v54 = vsub.f32 1.5, %v4642_v19 }
 0x567   :  { %v4644_v24 = vmul.f32 %v6927_v11, %v4643_v54 }
 0x569   :  { %v4648_v28 = vsel %vm4647_vm13, %v6927_v11, %v4644_v24 }
 0x56a   :  { %v4649_v16 = vmul.f32 %v4648_v28, %v8640_v21  ;;  %v4650_v42 = vmul.f32 %v4648_v28, %v8642_v34  ;;  %v4748_v21 = vld [vmem:[%s8849_s21 + $0x20] sm:$0xff]  ;;  %v4747_v34 = vld [vmem:[%s8849_s21 + $0x18] sm:$0xff] }
 0x56b   :  { %4803 = vmatpush.msra.mxu2 %v4748_v21 }
 0x56c   :  { %v4657_v56 = vmul.f32 %v4653_v14, %v4649_v16  ;;  %v4658_v29 = vmul.f32 %v4654_v15, %v4650_v42 }
 0x56d   :  { %4804 = vmatpush.msra.mxu2 %v4747_v34 }
 0x56e   :  { %v4665_v61 = vadd.f32 %v4661_v26, %v4657_v56  ;;  %v4666_v35 = vadd.f32 %v4662_v17, %v4658_v29 }
 0x56f   :  { %4805 = vmatpush.msra.mxu2 %v4746_v37 }
 0x570   :  { %4719 = vmatmul.f32.vlgmr.msrb.gmra.mxu3 %v4665_v61  ;;  %4739 = vmatmul.f32.vlgmr.msrb.gmra.mxu0 %v4666_v35 }
 0x571   :  { %4806 = vmatpush.msra.mxu2 %v4745_v38 }
 0x573   :  { %4807 = vmatpush.msra.mxu2 %v4744_v22 }
 0x5ed   :  { %v4740_v40 = vpop.f32.mrf.mxu0 }
 0x5f3   :  { %v4720_v39 = vpop.f32.mrf.mxu3 }
 0x5f4   :  { %v4721_v2 = vadd.f32 %v6908_v18, %v4720_v39 }
 0x5f6   :  { %v4741_v59 = vadd.f32 %v4740_v40, %v4721_v2 }
 0x5f8   :  { %v4743_v44 = vmax.f32 %v4741_v59, 0.0 }
 0x5fa   :  { %4808 = vmatmul.f32.vlgmr.msra.gmra.mxu2 %v4743_v44 }
 0x67d   :  { %v4809_v47 = vpop.f32.mrf.mxu2 }
 0x67e   :  { %v4810_v53 = vadd.f32 %v4809_v47, %v4789_v52 }
 0x680   :  { %v4816_v55 = vadd.f32 %v6909_v51, %v4810_v53 }
 0x682   :  { %v4817_v57 = vmax.f32 %v4816_v55, 0.0 }
 0x684   :  { %6503 = vmatmul.msk.f32.vlgmr.msrb.gmra.mxu1 %vm4826_vm15, %v4817_v57 }
 0x701   :  { %v4847_v10 = vpop.f32.mrf.mxu1 }
 0x702   :  { %v4848_v63 = vadd.f32 %v6910_v45, %v4847_v10 }
 0x704   :  { %v4850_v60 = vmax.f32 %v4848_v63, 0.0 }
 0x706   :  { %6504 = vmatmul.msk.f32.vlgmr.msra.gmra.mxu3 %vm4826_vm15, %v4850_v60 }
 0x789   :  { %v4879_v1 = vpop.f32.mrf.mxu3 }
 0x78a   :  { %v4880_v3 = vadd.f32 %v6911_v0, %v4879_v1 }
 0x78c   :  { %4882 = vst [vmem:[%s8858_s28] sm:$0x3] %v4880_v3 }

</bundles_post_ra>
